<compile_context>
chip_gen: v5e
topology: v5e:2x2
jax: 0.10.0
libtpu: 0.0.40
codegen_flags: <defaults>
</compile_context>

<pallas_src>
import jax
import jax.numpy as jnp
from jax import lax
from jax.experimental import pallas as pl
from jax.experimental.pallas import tpu as pltpu


def fused_kernel(gate_ref, x_ref, w1_ref, gamma_ref, beta_ref, res_ref, w2_ref,
                 o_ref):
    # gate_ref : (1, C1)       f32   pre-sigmoid SE gate (x331)
    # x_ref    : (C1, R)       bf16  x327 channel-major (free reshape of NCHW, N=1)
    # w1_ref   : (C2, C1)      bf16  conv2d108 weight, native (Cout, Cin)
    # gamma/beta: (1, C2)      f32   BN affine params
    # res_ref  : (C2, R)       f32   x350 channel-major
    # w2_ref   : (TILE_N, C2)  bf16  this step's slice of conv2d114 weight
    # o_ref    : (R, TILE_N)   f32   lane-dense output slice

    # Fold the sigmoid gate into the conv1 weight: (x * g) @ W^T == x @ (W * g)^T.
    g = jax.nn.sigmoid(gate_ref[...])                           # (1, C1) f32
    w1g = (w1_ref[...] * g).astype(jnp.bfloat16)                # (C2, C1) bf16

    # 1x1 conv #1 on the MXU: contract x's C1 (lhs dim 0) with w1's Cin (rhs dim 1).
    y = lax.dot_general(
        x_ref[...], w1g,
        dimension_numbers=(((0,), (1,)), ((), ())),
        preferred_element_type=jnp.float32)                     # (R, C2) f32

    # BatchNorm2d (training mode): batch statistics over N*H*W, biased variance.
    mean = jnp.mean(y, axis=0, keepdims=True)                   # (1, C2)
    diff = y - mean
    var = jnp.mean(diff * diff, axis=0, keepdims=True)          # (1, C2)
    y_bn = diff * lax.rsqrt(var + 1e-5) * gamma_ref[...] + beta_ref[...]

    # Residual add; in-kernel transpose of the small (C2, R) residual (XLU, cheap).
    z = res_ref[...].T + y_bn                                   # (R, C2) f32

    # 1x1 conv #2, this step's output-channel slice: contract C2 with w2's Cin.
    o_ref[...] = lax.dot_general(
        z.astype(jnp.bfloat16), w2_ref[...],
        dimension_numbers=(((1,), (1,)), ((), ())),
        preferred_element_type=jnp.float32)                     # (R, TILE_N)


def fused_forward(x331, x327, x350, w1, gamma, beta, w2, *, tile_n=640):
    """Inputs in PyTorch NCHW layout; returns NCHW f32 output."""
    n, c1, h, w = x327.shape
    c2 = w1.shape[0]          # 320
    c3 = w2.shape[0]          # 1280
    assert n == 1, "module spec is batch 1 (enables free NCHW -> (C, R) reshape)"
    r = n * h * w
    assert c3 % tile_n == 0
    grid = (c3 // tile_n,)

    # Free reshapes only — no HBM transposes. Weights stay in native (Cout, Cin).
    gate = x331.reshape(1, c1)
    x_cr = x327.reshape(c1, r).astype(jnp.bfloat16)
    res_cr = x350.reshape(c2, r)
    w1_2d = w1.reshape(c2, c1).astype(jnp.bfloat16)
    w2_2d = w2.reshape(c3, c2).astype(jnp.bfloat16)
    gamma2 = gamma.reshape(1, c2)
    beta2 = beta.reshape(1, c2)

    bytes_accessed = (gate.size * 4 + x_cr.size * 2 + w1_2d.size * 2 +
                      gamma2.size * 4 + beta2.size * 4 + res_cr.size * 4 +
                      w2_2d.size * 2 + r * c3 * 4)

    out_flat = pl.pallas_call(
        fused_kernel,
        out_shape=jax.ShapeDtypeStruct((r, c3), jnp.float32),
        grid_spec=pltpu.PrefetchScalarGridSpec(
            num_scalar_prefetch=0,
            grid=grid,
            in_specs=[
                pl.BlockSpec((1, c1), lambda j: (0, 0)),        # gate
                pl.BlockSpec((c1, r), lambda j: (0, 0)),        # x327
                pl.BlockSpec((c2, c1), lambda j: (0, 0)),       # w1 (Cout, Cin)
                pl.BlockSpec((1, c2), lambda j: (0, 0)),        # gamma
                pl.BlockSpec((1, c2), lambda j: (0, 0)),        # beta
                pl.BlockSpec((c2, r), lambda j: (0, 0)),        # residual
                pl.BlockSpec((tile_n, c2), lambda j: (j, 0)),   # w2 slice
            ],
            out_specs=pl.BlockSpec((r, tile_n), lambda j: (0, j)),
        ),
        compiler_params=pltpu.CompilerParams(
            dimension_semantics=("parallel",)),
        cost_estimate=pl.CostEstimate(
            flops=2 * r * (c1 * c2 + c2 * c3),
            transcendentals=(c1 + c2) * grid[0],
            bytes_accessed=bytes_accessed),
    )(gate, x_cr, w1_2d, gamma2, beta2, res_cr, w2_2d)

    # (R, C3) -> NCHW. Single ~250 KB transpose outside; the kernel's output
    # stays lane-dense (unmasked vector stores).
    return jnp.transpose(out_flat, (1, 0)).reshape(n, c3, h, w)


def reference_forward(x331, x327, x350, w1, gamma, beta, w2):
    """Pure-JAX f32 reference with identical math for sanity checking."""
    gate = jax.nn.sigmoid(x331)                                 # (1, C1, 1, 1)
    x = gate * x327
    y = lax.conv_general_dilated(
        x, w1, window_strides=(1, 1), padding="VALID",
        dimension_numbers=("NCHW", "OIHW", "NCHW"))
    mean = jnp.mean(y, axis=(0, 2, 3), keepdims=True)
    var = jnp.mean((y - mean) ** 2, axis=(0, 2, 3), keepdims=True)
    y_bn = (y - mean) * lax.rsqrt(var + 1e-5)
    y_bn = y_bn * gamma.reshape(1, -1, 1, 1) + beta.reshape(1, -1, 1, 1)
    z = x350 + y_bn
    return lax.conv_general_dilated(
        z, w2, window_strides=(1, 1), padding="VALID",
        dimension_numbers=("NCHW", "OIHW", "NCHW"))


# TODO(synk): BatchNorm running_mean/running_var momentum updates (training-mode
# side effect) are not materialized; only batch-statistic normalization is done.

if __name__ == "__main__":
    key = jax.random.PRNGKey(0)
    k1, k2, k3, k4, k5 = jax.random.split(key, 5)

    N, C1, H, W = 1, 1152, 7, 7
    C2, C3 = 320, 1280

    # Inputs (deterministic).
    x327 = jax.random.normal(k1, (N, C1, H, W), dtype=jnp.float32)
    x331 = jax.random.normal(k2, (N, C1, 1, 1), dtype=jnp.float32)
    x350 = jax.random.normal(k3, (N, C2, H, W), dtype=jnp.float32)

    # Parameters (deterministic; PyTorch BN init: gamma=1, beta=0).
    w_conv108 = jax.random.normal(k4, (C2, C1, 1, 1), dtype=jnp.float32) * 0.02
    w_conv114 = jax.random.normal(k5, (C3, C2, 1, 1), dtype=jnp.float32) * 0.02
    bn_gamma = jnp.ones((C2,), dtype=jnp.float32)
    bn_beta = jnp.zeros((C2,), dtype=jnp.float32)

    fwd = jax.jit(fused_forward)
    out = fwd(x331, x327, x350, w_conv108, bn_gamma, bn_beta, w_conv114)
    out = jax.block_until_ready(out)

    ref = reference_forward(x331, x327, x350, w_conv108, bn_gamma, bn_beta,
                            w_conv114)
    ref = jax.block_until_ready(ref)

    assert out.shape == (N, C3, H, W), out.shape
    # bf16 MXU inputs (f32 accumulation / BN / residual) give ~1e-2 max abs error
    # vs. the pure-f32 reference at these magnitudes.
    max_err = float(jnp.max(jnp.abs(out - ref)))
    assert jnp.allclose(out, ref, atol=2e-2, rtol=2e-2), max_err

    print("KERNEL_OK")
</pallas_src>

<mosaic_0001>
module attributes {stable_mosaic.version = 11 : i64} {
  func.func @fused_kernel(%arg0: i32, %arg1: memref<1x1152xf32, #tpu.memory_space<vmem>>, %arg2: memref<1152x49xbf16, #tpu.memory_space<vmem>>, %arg3: memref<320x1152xbf16, #tpu.memory_space<vmem>>, %arg4: memref<1x320xf32, #tpu.memory_space<vmem>>, %arg5: memref<1x320xf32, #tpu.memory_space<vmem>>, %arg6: memref<320x49xf32, #tpu.memory_space<vmem>>, %arg7: memref<640x320xbf16, #tpu.memory_space<vmem>>, %arg8: memref<49x640xf32, #tpu.memory_space<vmem>>) attributes {dimension_semantics = [#tpu.dimension_semantics<parallel>], iteration_bounds = array<i64: 2>, scalar_prefetch = 0 : i64, scratch_operands = 0 : i64, tpu.core_type = #tpu.core_type<tc>, window_params = [{pipeline_mode = #tpu.pipeline_mode<synchronous>, transform_indices = @transform_0, window_bounds = array<i64: 1, 1152>}, {pipeline_mode = #tpu.pipeline_mode<synchronous>, transform_indices = @transform_1, window_bounds = array<i64: 1152, 49>}, {pipeline_mode = #tpu.pipeline_mode<synchronous>, transform_indices = @transform_2, window_bounds = array<i64: 320, 1152>}, {pipeline_mode = #tpu.pipeline_mode<synchronous>, transform_indices = @transform_3, window_bounds = array<i64: 1, 320>}, {pipeline_mode = #tpu.pipeline_mode<synchronous>, transform_indices = @transform_4, window_bounds = array<i64: 1, 320>}, {pipeline_mode = #tpu.pipeline_mode<synchronous>, transform_indices = @transform_5, window_bounds = array<i64: 320, 49>}, {transform_indices = @transform_6, window_bounds = array<i64: 640, 320>}, {transform_indices = @transform_7, window_bounds = array<i64: 49, 640>}]} {
    %c0 = arith.constant 0 : index
    %c0_0 = arith.constant 0 : index
    %0 = vector.load %arg1[%c0, %c0_0] : memref<1x1152xf32, #tpu.memory_space<vmem>>, vector<1x1152xf32>
    %1 = arith.negf %0 : vector<1x1152xf32>
    %2 = math.exp %1 : vector<1x1152xf32>
    %cst = arith.constant 1.000000e+00 : f32
    %3 = vector.broadcast %cst : f32 to vector<1x1152xf32>
    %4 = arith.addf %3, %2 : vector<1x1152xf32>
    %5 = arith.divf %3, %4 : vector<1x1152xf32>
    %c0_1 = arith.constant 0 : index
    %c0_2 = arith.constant 0 : index
    %6 = vector.load %arg3[%c0_1, %c0_2] : memref<320x1152xbf16, #tpu.memory_space<vmem>>, vector<320x1152xbf16>
    %7 = arith.extf %6 : vector<320x1152xbf16> to vector<320x1152xf32>
    %8 = vector.broadcast %5 : vector<1x1152xf32> to vector<320x1152xf32>
    %9 = arith.mulf %7, %8 : vector<320x1152xf32>
    %10 = arith.truncf %9 : vector<320x1152xf32> to vector<320x1152xbf16>
    %c0_3 = arith.constant 0 : index
    %c0_4 = arith.constant 0 : index
    %11 = vector.load %arg2[%c0_3, %c0_4] : memref<1152x49xbf16, #tpu.memory_space<vmem>>, vector<1152x49xbf16>
    %cst_5 = arith.constant dense<0.000000e+00> : vector<49x320xf32>
    %12 = tpu.matmul %11, %10, %cst_5 {dimension_numbers = #tpu.dot_dimension_numbers<[0], [1], [1], [0], [0, 1, 1, 0], [], []>} : vector<1152x49xbf16>, vector<320x1152xbf16>, vector<49x320xf32> -> vector<49x320xf32>
    %cst_6 = arith.constant dense<0.000000e+00> : vector<320xf32>
    %13 = vector.multi_reduction <add>, %12, %cst_6 [0] : vector<49x320xf32> to vector<320xf32>
    %14 = vector.shape_cast %13 : vector<320xf32> to vector<1x320xf32>
    %cst_7 = arith.constant 4.900000e+01 : f32
    %15 = vector.broadcast %cst_7 : f32 to vector<1x320xf32>
    %16 = arith.divf %14, %15 : vector<1x320xf32>
    %17 = vector.broadcast %16 : vector<1x320xf32> to vector<49x320xf32>
    %18 = arith.subf %12, %17 : vector<49x320xf32>
    %19 = arith.mulf %18, %18 : vector<49x320xf32>
    %cst_8 = arith.constant dense<0.000000e+00> : vector<320xf32>
    %20 = vector.multi_reduction <add>, %19, %cst_8 [0] : vector<49x320xf32> to vector<320xf32>
    %21 = vector.shape_cast %20 : vector<320xf32> to vector<1x320xf32>
    %cst_9 = arith.constant 4.900000e+01 : f32
    %22 = vector.broadcast %cst_9 : f32 to vector<1x320xf32>
    %23 = arith.divf %21, %22 : vector<1x320xf32>
    %cst_10 = arith.constant 9.99999974E-6 : f32
    %24 = vector.broadcast %cst_10 : f32 to vector<1x320xf32>
    %25 = arith.addf %23, %24 : vector<1x320xf32>
    %26 = math.rsqrt %25 : vector<1x320xf32>
    %27 = vector.broadcast %26 : vector<1x320xf32> to vector<49x320xf32>
    %28 = arith.mulf %18, %27 : vector<49x320xf32>
    %c0_11 = arith.constant 0 : index
    %c0_12 = arith.constant 0 : index
    %29 = vector.load %arg4[%c0_11, %c0_12] : memref<1x320xf32, #tpu.memory_space<vmem>>, vector<1x320xf32>
    %30 = vector.broadcast %29 : vector<1x320xf32> to vector<49x320xf32>
    %31 = arith.mulf %28, %30 : vector<49x320xf32>
    %c0_13 = arith.constant 0 : index
    %c0_14 = arith.constant 0 : index
    %32 = vector.load %arg5[%c0_13, %c0_14] : memref<1x320xf32, #tpu.memory_space<vmem>>, vector<1x320xf32>
    %33 = vector.broadcast %32 : vector<1x320xf32> to vector<49x320xf32>
    %34 = arith.addf %31, %33 : vector<49x320xf32>
    %c0_15 = arith.constant 0 : index
    %c0_16 = arith.constant 0 : index
    %35 = vector.load %arg6[%c0_15, %c0_16] : memref<320x49xf32, #tpu.memory_space<vmem>>, vector<320x49xf32>
    %36 = tpu.transpose %35, [1, 0] : vector<320x49xf32> -> vector<49x320xf32>
    %37 = arith.addf %36, %34 : vector<49x320xf32>
    %38 = arith.truncf %37 : vector<49x320xf32> to vector<49x320xbf16>
    %c0_17 = arith.constant 0 : index
    %c0_18 = arith.constant 0 : index
    %39 = vector.load %arg7[%c0_17, %c0_18] : memref<640x320xbf16, #tpu.memory_space<vmem>>, vector<640x320xbf16>
    %cst_19 = arith.constant dense<0.000000e+00> : vector<49x640xf32>
    %40 = tpu.matmul %38, %39, %cst_19 {dimension_numbers = #tpu.dot_dimension_numbers<[1], [1], [0], [0], [0, 0, 1, 0], [], []>} : vector<49x320xbf16>, vector<640x320xbf16>, vector<49x640xf32> -> vector<49x640xf32>
    %c0_20 = arith.constant 0 : index
    %c0_21 = arith.constant 0 : index
    %41 = vector.load %arg8[%c0_20, %c0_21] : memref<49x640xf32, #tpu.memory_space<vmem>>, vector<49x640xf32>
    tpu.vector_store %arg8[%c0_20, %c0_21], %40 {strides = array<i32>} : memref<49x640xf32, #tpu.memory_space<vmem>>, vector<49x640xf32>,
    return
  }
  func.func @transform_0(%arg0: i32) -> (i32, i32) {
    %c0_i32 = arith.constant 0 : i32
    %c0_i32_0 = arith.constant 0 : i32
    %c0_i32_1 = arith.constant 0 : i32
    return %c0_i32, %c0_i32_0 : i32, i32
  }
  func.func @transform_1(%arg0: i32) -> (i32, i32) {
    %c0_i32 = arith.constant 0 : i32
    %c0_i32_0 = arith.constant 0 : i32
    %c0_i32_1 = arith.constant 0 : i32
    return %c0_i32, %c0_i32_0 : i32, i32
  }
  func.func @transform_2(%arg0: i32) -> (i32, i32) {
    %c0_i32 = arith.constant 0 : i32
    %c0_i32_0 = arith.constant 0 : i32
    %c0_i32_1 = arith.constant 0 : i32
    return %c0_i32, %c0_i32_0 : i32, i32
  }
  func.func @transform_3(%arg0: i32) -> (i32, i32) {
    %c0_i32 = arith.constant 0 : i32
    %c0_i32_0 = arith.constant 0 : i32
    %c0_i32_1 = arith.constant 0 : i32
    return %c0_i32, %c0_i32_0 : i32, i32
  }
  func.func @transform_4(%arg0: i32) -> (i32, i32) {
    %c0_i32 = arith.constant 0 : i32
    %c0_i32_0 = arith.constant 0 : i32
    %c0_i32_1 = arith.constant 0 : i32
    return %c0_i32, %c0_i32_0 : i32, i32
  }
  func.func @transform_5(%arg0: i32) -> (i32, i32) {
    %c0_i32 = arith.constant 0 : i32
    %c0_i32_0 = arith.constant 0 : i32
    %c0_i32_1 = arith.constant 0 : i32
    return %c0_i32, %c0_i32_0 : i32, i32
  }
  func.func @transform_6(%arg0: i32) -> (i32, i32) {
    %c0_i32 = arith.constant 0 : i32
    %c0_i32_0 = arith.constant 0 : i32
    return %arg0, %c0_i32 : i32, i32
  }
  func.func @transform_7(%arg0: i32) -> (i32, i32) {
    %c0_i32 = arith.constant 0 : i32
    %c0_i32_0 = arith.constant 0 : i32
    return %c0_i32, %arg0 : i32, i32
  }
}

</mosaic_0001>

<bundles_post_ra>
// kernel: fused_forward.1
= control target key start
LH: loop header
LB: loop body
LE: loop exit
PB: predicated region body
PF: predicated region fallthrough
CT: control target
= control target key end

     0   :  { %s6226_s24 = smov 0   ;;  %s6228_s25 = smov 0   ;;  %s9798_s0 = inlined_call_operand.vmem [shape: f32[1,1152], index: 0, kind: input, shape index: {}]   ;;  %s9799_s1 = inlined_call_operand.vmem [shape: bf16[1152,49], index: 1, kind: input, shape index: {}]   ;;  %s9800_s2 = inlined_call_operand.vmem [shape: bf16[320,1152], index: 2, kind: input, shape index: {}]   ;;  %s9801_s3 = inlined_call_operand.vmem [shape: f32[1,320], index: 3, kind: input, shape index: {}]   ;;  %s9802_s4 = inlined_call_operand.vmem [shape: f32[1,320], index: 4, kind: input, shape index: {}]   ;;  %s9803_s5 = inlined_call_operand.vmem [shape: f32[320,49], index: 5, kind: input, shape index: {}]   ;;  %s9804_s6 = inlined_call_operand.vmem [shape: bf16[1280,320], index: 6, kind: input, shape index: {}]   ;;  %s9805_s7 = inlined_call_operand.vmem [shape: f32[49,1280], index: 7, kind: output, shape index: {}]  }
   0x1   :  { %s6230_s26 = smov 0  }
   0x2 LB: > { %s6239_s27 = sadd.s32 4294967295, %s6173_s26   ;;  %s6241_s28 = sadd.s32 1, %s6173_s26   ;;  %s6173_s26 = sphi %s6230_s26, %s9878_s26   ;;  %s6169_s25 = sphi %s6228_s25, %s9877_s25   ;;  %s6165_s24 = sphi %s6226_s24, %s9876_s24  }
   0x3   : > { %s173_s29 = ssub.s32 %s6173_s26, %s6241_s28  ;;  %s176_s30 = sadd.s32 1, %s6169_s25 }
   0x4   : > { %p174_p0 = scmp.eq.s32.totalorder %s173_s29, 0  ;;  %p186_p1 = scmp.ne.s32.totalorder %s6169_s25, %s6165_s24 }
   0x5   : > { %p187_p2 = scmp.eq.s32.totalorder %s6239_s27, 1  ;;  %p4841_p3 = scmp.ge.s32.totalorder %s6173_s26, 1 }
   0x6   : > { %s6249_s8 = scalar_select %p174_p0, %s6169_s25, %s176_s30  }
   0x7   : > { %p6251_p4 = por %p187_p2, %p186_p1  ;;  %p239_p5 = scmp.lt.s32.totalorder %s6173_s26, 3 }
   0x9   : > { %p240_p6 = pnand %p4841_p3, %p239_p5 }
   0xb   : > { %243 = sbr.rel (%p240_p6) target bundleno = 1272 (0x4f8), region = 48 }
  0x10   : > { %v5676_v0 = vld [vmem:[%s9799_s1 + $0x140] sm:$0xff]  ;;  %v6276_v7 = vld [vmem:[%s9799_s1 + $0x78] sm:$0xff]  ;;  %v6282_v8 = vld [vmem:[%s9799_s1 + $0x70] sm:$0xff]  ;;  %vm2921_vm8 = vcmask 1040384   ;;  %s271_s19 = smul.u32 80, %s6239_s27  ;;  %s268_s21 = sand.u32 1, %s6165_s24  }
  0x11   : > { %v5668_v1 = vld [vmem:[%s9799_s1 + $0x100] sm:$0xff]  ;;  %2096 = vxpose.xlu2.c.b16.start [1/8] (narrow) %v5676_v0, 64  ;;  %5923 = vmatpush.lsf.bf16.msrb.mxu1 %v6276_v7  ;;  %v5677_v10 = vld [vmem:[%s9799_s1 + $0x148] sm:$0xff]  ;;  %v6315_v18 = vld [vmem:[%s9799_s1 + $0x58] sm:$0xff]  ;;  %s5828_s24 = smul.u32 (%p6251_p4), 40, %s6239_s27 }
  0x12   : > { %v5692_v2 = vld [vmem:[%s9799_s1 + $0x1c0] sm:$0xff]  ;;  %v6291_v11 = vld [vmem:[%s9799_s1 + $0x68] sm:$0xff]  ;;  %v6320_v21 = vld [vmem:[%s9799_s1 + $0x38] sm:$0xff]  ;;  %p272_p7 = scmp.lt.s32.totalorder %s271_s19, 159 }
  0x13   : > { %v5660_v3 = vld [vmem:[%s9799_s1 + $0xc0] sm:$0xff]  ;;  %6101 = vxpose.binary.xlu1.c.b16.start [1/16] (narrow) %v5668_v1, %v5692_v2, 64  ;;  %v5669_v12 = vld [vmem:[%s9799_s1 + $0x108] sm:$0xff]  ;;  %v5659_v22 = vld [vmem:[%s9799_s1 + $0xb8] sm:$0xff]  ;;  %s9718_s29 = scalar_lea.vmem (%p6251_p4), %s9805_s7, %s5828_s24 }
  0x14   : > { %v5684_v4 = vld [vmem:[%s9799_s1 + $0x180] sm:$0xff]  ;;  %v5693_v13 = vld [vmem:[%s9799_s1 + $0x1c8] sm:$0xff]  ;;  %v6329_v24 = vld [vmem:[%s9799_s1 + $0x50] sm:$0xff]  ;;  %5863 = vmatpush.lsf.bf16.msrb.mxu0 %v6320_v21  ;;  %5966 = vmatpush.lsf.bf16.msrb.mxu2 %v5659_v22  ;;  %s9880_s19 = smov (!%p272_p7, %s271_s19), 159 }
  0x15   : > { %6085 = vxpose.binary.xlu0.c.b16.start [1/16] (narrow) %v5684_v4, %v5660_v3, 64  ;;  %v280_v5 = vld [vmem:[%s9798_s0] sm:$0xff]  ;;  %v5661_v15 = vld [vmem:[%s9799_s1 + $0xc8] sm:$0xff]  ;;  %v6335_v27 = vld [vmem:[%s9799_s1 + $0x30] sm:$0xff]  ;;  %s6058_s22 = smul.u32 12, %s9880_s19 }
  0x16   : > { %v4843_v6 = vmul.f32 -1.442695, %v280_v5  ;;  %5924 = vmatpush.lsf.bf16.msrb.mxu1 %v6282_v8  ;;  %v5685_v16 = vld [vmem:[%s9799_s1 + $0x188] sm:$0xff]  ;;  %v6309_v17 = vld [vmem:[%s9799_s1 + $0x60] sm:$0xff]  ;;  %v5658_v28 = vld [vmem:[%s9799_s1 + $0xb0] sm:$0xff]  ;;  %6023 = vmatpush.lsf.bf16.msrb.mxu3 %v5659_v22 }
  0x17   : > { %v5678_v29 = vld [vmem:[%s9799_s1 + $0x150] sm:$0xff]  ;;  %v390_v33 = vld [vmem:[%s9800_s2 + $0x1f8] sm:$0xff]  ;;  %v6361_v37 = vld [vmem:[%s9800_s2 + $0x200] sm:$0xff]  ;;  %s8737_s10 = scalar_lea.vmem %s9804_s6, %s6058_s22  ;;  %s6057_s22 = smul.u32 280, %s268_s21 }
  0x18   : > { %6117 = vpow2.f32 %v4843_v6  ;;  %v395_v34 = vld [vmem:[%s9800_s2 + $0x21c] sm:$0xff]  ;;  %v6366_v38 = vld [vmem:[%s9800_s2 + $0x224] sm:$0xff]  ;;  %5864 = vmatpush.lsf.bf16.msrb.mxu0 %v6335_v27  ;;  %5967 = vmatpush.lsf.bf16.msrb.mxu2 %v5658_v28  ;;  %v5670_v40 = vld [vmem:[%s9799_s1 + $0x110] sm:$0xff]  ;;  %v647_v45 = vunpack.c.h.bf16 %v390_v33  ;;  %v648_v51 = vunpack.c.l.bf16 %v6361_v37  ;;  %v646_v53 = vunpack.c.l.bf16 %v390_v33 }
  0x19   : > { %v6372_v39 = vld [vmem:[%s9799_s1 + $0x48] sm:$0xff]  ;;  %v5694_v41 = vld [vmem:[%s9799_s1 + $0x1d0] sm:$0xff]  ;;  %v656_v46 = vunpack.c.h.bf16 %v395_v34  ;;  %v657_v52 = vunpack.c.l.bf16 %v6366_v38  ;;  %v6411_v54 = vld [vmem:[%s9800_s2 + $0x1b8] sm:$0xff]  ;;  %v655_v58 = vunpack.c.l.bf16 %v395_v34  ;;  %s9559_s23 = scalar_lea.vmem [#allocation2], %s6057_s22 }
  0x1a   : > { %5925 = vmatpush.lsf.bf16.msrb.mxu1 %v6291_v11  ;;  %v5662_v42 = vld [vmem:[%s9799_s1 + $0xd0] sm:$0xff]  ;;  %6024 = vmatpush.lsf.bf16.msrb.mxu3 %v5658_v28  ;;  %v6396_v48 = vld [vmem:[%s9799_s1 + $0x28] sm:$0xff]  ;;  %v6428_v60 = vld [vmem:[%s9800_s2 + $0x1dc] sm:$0xff]  ;;  %v630_v4 = vunpack.c.l.bf16 %v6411_v54 }
  0x1b   : > { %v5686_v43 = vld [vmem:[%s9799_s1 + $0x190] sm:$0xff]  ;;  %v5657_v55 = vld [vmem:[%s9799_s1 + $0xa8] sm:$0xff]  ;;  %v6434_v61 = vld [vmem:[%s9799_s1 + $0x40] sm:$0xff]  ;;  %v639_v5 = vunpack.c.l.bf16 %v6428_v60 }
  0x1c   : > { %v6391_v47 = vld [vmem:[%s9800_s2 + $0x1b0] sm:$0xff]  ;;  %5865 = vmatpush.lsf.bf16.msrb.mxu0 %v6396_v48  ;;  %v6442_v2 = vld [vmem:[%s9799_s1 + $0x20] sm:$0xff]  ;;  %5968 = vmatpush.lsf.bf16.msrb.mxu2 %v5657_v55  ;;  %v370_v22 = vld [vmem:[%s9800_s2 + $0x168] sm:$0xff] }
  0x1d   : > { %v385_v50 = vld [vmem:[%s9800_s2 + $0x1d4] sm:$0xff]  ;;  %v629_v0 = vunpack.c.h.bf16 %v6391_v47  ;;  %v5656_v6 = vld [vmem:[%s9799_s1 + $0xa0] sm:$0xff] }
  0x1e   : > { %v6118_v9 = vpop.eup %6117  ;;  %5926 = vmatpush.lsf.bf16.msrb.mxu1 %v6309_v17  ;;  %v638_v1 = vunpack.c.h.bf16 %v385_v50  ;;  %v5655_v28 = vld [vmem:[%s9799_s1 + $0x98] sm:$0xff]  ;;  %v6477_v31 = vld [vmem:[%s9800_s2 + $0x170] sm:$0xff]  ;;  %6025 = vmatpush.lsf.bf16.msrb.mxu3 %v5657_v55  ;;  %v360_v55 = vld [vmem:[%s9800_s2 + $0x120] sm:$0xff] }
  0x1f   : > { %v288_v14 = vadd.f32 1.0, %v6118_v9  ;;  %v6488_v33 = vld [vmem:[%s9799_s1 + $0x10] sm:$0xff] }
  0x20   : > { %5866 = vmatpush.lsf.bf16.msrb.mxu0 %v6442_v2  ;;  %5969 = vmatpush.lsf.bf16.msrb.mxu2 %v5656_v6 }
  0x21   : > { %6119 = vrcp.f32 %v288_v14  ;;  %2097 = vxpose.xlu2.c.b16.cont [2/8] (narrow) %v5677_v10, 64  ;;  %v301_v23 = vand.u32 2147483648, %v288_v14  ;;  %vm295_vm0 = vweird.f32 %v288_v14  ;;  %v299_v26 = vand.u32 2147483647, %v288_v14 }
  0x22   : > { %5927 = vmatpush.lsf.bf16.msrb.mxu1 %v6315_v18  ;;  %6026 = vmatpush.lsf.bf16.msrb.mxu3 %v5656_v6  ;;  %v6546_v6 = vld [vmem:[%s9800_s2 + $0x14c] sm:$0xff] }
  0x23   : > { %6102 = vxpose.binary.xlu1.c.b16.cont [2/16] (narrow) %v5669_v12, %v5693_v13, 64  ;;  %v302_v32 = vor.u32 1.1754944e-38, %v301_v23  ;;  %vm6354_vm3 = vcmp.eq.f32.partialorder %v299_v26, 8.507059e+37  ;;  %v375_v23 = vld [vmem:[%s9800_s2 + $0x18c] sm:$0xff]  ;;  %v637_v26 = vunpack.c.l.bf16 %v385_v50  ;;  %v5663_v50 = vld [vmem:[%s9799_s1 + $0xd8] sm:$0xff] }
  0x24   : > { %v620_v36 = vunpack.c.h.bf16 %v375_v23 }
  0x25   : > { %6086 = vxpose.binary.xlu0.c.b16.cont [2/16] (narrow) %v5685_v16, %v5661_v15, 64 }
  0x26   : > { %5928 = vmatpush.lsf.bf16.msrb.mxu1 %v6329_v24  ;;  %6027 = vmatpush.lsf.bf16.msrb.mxu3 %v5655_v28 }
  0x27   : > { %v6120_v19 = vpop.eup %6119 }
  0x28   : > { %v291_v20 = vmul.f32 %v6120_v19, %v288_v14  ;;  %vm296_vm1 = vweird.f32 %v6120_v19 }
  0x29   : > { %vm6343_vm2 = vmor %vm295_vm0, %vm296_vm1  ;;  %vm2943_vm0 = vcmask 523264   ;;  %vm2955_vm1 = vcmask 516096  }
  0x2a   : > { %v292_v25 = vsub.f32 1.0, %v291_v20  ;;  %5929 = vmatpush.lsf.bf16.msrb.mxu1 %v6372_v39  ;;  %v6460_v20 = vld [vmem:[%s9799_s1 + $0x18] sm:$0xff] }
  0x2c   : > { %v293_v30 = vmul.f32 %v6120_v19, %v292_v25  ;;  %v628_v25 = vunpack.c.l.bf16 %v6391_v47  ;;  %v5695_v47 = vld [vmem:[%s9799_s1 + $0x1d8] sm:$0xff] }
  0x2e   : > { %v294_v35 = vadd.f32 %v6120_v19, %v293_v30  ;;  %5930 = vmatpush.lsf.bf16.msrb.mxu1 %v6434_v61 }
  0x30   : > { %v298_v44 = vsel %vm6343_vm2, %v6120_v19, %v294_v35  ;;  %5931 = vllmr.8.mxu1  ;;  %v611_v35 = vunpack.c.h.bf16 %v370_v22 }
  0x31   : > { %v6400_v49 = vsel %vm6354_vm3, %v302_v32, %v298_v44  ;;  %2098 = vxpose.xlu2.c.b16.cont [3/8] (narrow) %v5678_v29, 64  ;;  %v6482_v32 = vld [vmem:[%s9800_s2 + $0x194] sm:$0xff] }
  0x32   : > { %v6417_v56 = vperm.slane %v6400_v49, 1  ;;  %v6420_v57 = vperm.slane %v6400_v49, 2  ;;  %v6423_v59 = vperm.slane %v6400_v49, 0 }
  0x33   : > { %6103 = vxpose.binary.xlu1.c.b16.cont [3/16] (narrow) %v5670_v40, %v5694_v41, 64 }
  0x34   : > { %9836 = vst [vmem:[#allocation3_spill] sm:$0xff] %v6417_v56  ;;  %v1027_v62 = vmul.f32 %v6417_v56, %v647_v45  ;;  %v1036_v63 = vmul.f32 %v6417_v56, %v656_v46  ;;  %v1028_v3 = vmul.f32 %v6420_v57, %v648_v51  ;;  %v1037_v10 = vmul.f32 %v6420_v57, %v657_v52  ;;  %v5671_v46 = vld [vmem:[%s9799_s1 + $0x118] sm:$0xff] }
  0x35   : > { %6087 = vxpose.binary.xlu0.c.b16.cont [3/16] (narrow) %v5686_v43, %v5662_v42, 64  ;;  %v1026_v12 = vmul.f32 %v6423_v59, %v646_v53  ;;  %v1035_v13 = vmul.f32 %v6423_v59, %v655_v58  ;;  %v1009_v14 = vmul.f32 %v6417_v56, %v629_v0  ;;  %v6496_v42 = vld [vmem:[%s9799_s1 + $0x90] sm:$0xff]  ;;  %v5679_v43 = vld [vmem:[%s9799_s1 + $0x158] sm:$0xff]  ;;  %v621_v45 = vunpack.c.l.bf16 %v6482_v32  ;;  %v6529_v0 = vld [vmem:[%s9799_s1 + $0x88] sm:$0xff] }
  0x36   : > { %v1324_v9 = vpack.c.bf16 %v1036_v63, %v1027_v62  ;;  %v1018_v15 = vmul.f32 %v6417_v56, %v638_v1  ;;  %v1325_v16 = vpack.c.bf16 %v1037_v10, %v1028_v3  ;;  %v1010_v29 = vmul.f32 %v6420_v57, %v630_v4  ;;  %v5687_v51 = vld [vmem:[%s9799_s1 + $0x198] sm:$0xff]  ;;  %v6536_v4 = vld [vmem:[%s9799_s1 + $0x8] sm:$0xff]  ;;  %6028 = vmatpush.lsf.bf16.msrb.mxu3 %v6496_v42 }
  0x37   : > { %v1323_v19 = vpack.c.bf16 %v1035_v13, %v1026_v12  ;;  %v1019_v30 = vmul.f32 %v6420_v57, %v639_v5  ;;  %v1008_v40 = vmul.f32 %v6423_v59, %v628_v25  ;;  %v1017_v41 = vmul.f32 %v6423_v59, %v637_v26  ;;  %v6541_v5 = vld [vmem:[%s9800_s2 + $0x128] sm:$0xff] }
  0x38   : > { %2188 = vmatpush.bf16.xpose.msra.mxu1 %v1324_v9  ;;  %2216 = vmatpush.bf16.xpose.msra.mxu2 %v1325_v16  ;;  %v1315_v34 = vpack.c.bf16 %v1018_v15, %v1009_v14  ;;  %v991_v52 = vmul.f32 %v6417_v56, %v611_v35  ;;  %v1000_v53 = vmul.f32 %v6417_v56, %v620_v36  ;;  %v610_v62 = vunpack.c.l.bf16 %v370_v22  ;;  %v6554_v15 = vld [vmem:[%s9799_s1 + $0x80] sm:$0xff] }
  0x39   : > { %2160 = vmatpush.bf16.xpose.msra.mxu0 %v1323_v19  ;;  %v1316_v44 = vpack.c.bf16 %v1019_v30, %v1010_v29  ;;  %v1314_v58 = vpack.c.bf16 %v1017_v41, %v1008_v40  ;;  %v619_v63 = vunpack.c.l.bf16 %v375_v23  ;;  %v1001_v3 = vmul.f32 %v6420_v57, %v621_v45  ;;  %v6562_v23 = vld [vmem:[%s9799_s1] sm:$0xff]  ;;  %v350_v29 = vld [vmem:[%s9800_s2 + $0xd8] sm:$0xff] }
  0x3a   : > { %v1306_v9 = vpack.c.bf16 %v1000_v53, %v991_v52  ;;  %v593_v10 = vunpack.c.h.bf16 %v360_v55  ;;  %v990_v13 = vmul.f32 %v6423_v59, %v610_v62  ;;  %v594_v19 = vunpack.c.l.bf16 %v6541_v5  ;;  %v355_v30 = vld [vmem:[%s9800_s2 + $0xfc] sm:$0xff]  ;;  %v6585_v41 = vld [vmem:[%s9800_s2 + $0x104] sm:$0xff]  ;;  %v340_v62 = vld [vmem:[%s9800_s2 + $0x90] sm:$0xff]  ;;  %6029 = vmatpush.lsf.bf16.msrb.mxu3 %v6529_v0 }
  0x3b   : > { %v999_v14 = vmul.f32 %v6423_v59, %v619_v63  ;;  %v603_v22 = vunpack.c.l.bf16 %v6546_v6  ;;  %v592_v35 = vunpack.c.l.bf16 %v360_v55  ;;  %v6580_v40 = vld [vmem:[%s9800_s2 + $0xe0] sm:$0xff]  ;;  %v574_v63 = vunpack.c.l.bf16 %v350_v29 }
  0x3c   : > { %v973_v25 = vmul.f32 %v6417_v56, %v593_v10  ;;  %v5696_v52 = vld [vmem:[%s9799_s1 + $0x1e0] sm:$0xff] }
  0x3d   : > { %v972_v45 = vmul.f32 %v6423_v59, %v592_v35  ;;  %v5664_v53 = vld [vmem:[%s9799_s1 + $0xe0] sm:$0xff] }
  0x3e   : > { %v5688_v55 = vld [vmem:[%s9799_s1 + $0x1a0] sm:$0xff]  ;;  %6030 = vmatpush.lsf.bf16.msrb.mxu3 %v6554_v15 }
  0x40   : > { %5940 = vmatpush.lsf.bf16.msrb.mxu1 %v6320_v21  ;;  %5970 = vmatpush.lsf.bf16.msrb.mxu2 %v5655_v28  ;;  %v612_v21 = vunpack.c.l.bf16 %v6477_v31  ;;  %v983_v28 = vmul.f32 %v6420_v57, %v603_v22 }
  0x41   : > { %5867 = vmatpush.lsf.bf16.msrb.mxu0 %v6460_v20  ;;  %2099 = vxpose.xlu2.c.b16.cont [4/8] (narrow) %v5679_v43, 64 }
  0x42   : > { %v992_v1 = vmul.f32 %v6420_v57, %v612_v21  ;;  %v584_v21 = vunpack.c.h.bf16 %v355_v30  ;;  %6031 = vllmr.8.mxu3 }
  0x43   : > { %6104 = vxpose.binary.xlu1.c.b16.cont [4/16] (narrow) %v5671_v46, %v5695_v47, 64  ;;  %v5680_v47 = vld [vmem:[%s9799_s1 + $0x160] sm:$0xff] }
  0x44   : > { %5941 = vmatpush.lsf.bf16.msrb.mxu1 %v6335_v27  ;;  %v365_v27 = vld [vmem:[%s9800_s2 + $0x144] sm:$0xff]  ;;  %5971 = vmatpush.lsf.bf16.msrb.mxu2 %v6496_v42  ;;  %v1307_v16 = vpack.c.bf16 %v1001_v3, %v992_v1  ;;  %v583_v1 = vunpack.c.l.bf16 %v355_v30 }
  0x45   : > { %5868 = vmatpush.lsf.bf16.msrb.mxu0 %v6488_v33  ;;  %v602_v12 = vunpack.c.h.bf16 %v365_v27  ;;  %v601_v36 = vunpack.c.l.bf16 %v365_v27  ;;  %v5672_v42 = vld [vmem:[%s9799_s1 + $0x120] sm:$0xff]  ;;  %6040 = vmatpush.lsf.bf16.msrb.mxu3 %v6276_v7 }
  0x46   : > { %6088 = vxpose.binary.xlu0.c.b16.cont [4/16] (narrow) %v5687_v51, %v5663_v50, 64  ;;  %v585_v51 = vunpack.c.l.bf16 %v6585_v41  ;;  %v963_v22 = vmul.f32 %v6423_v59, %v583_v1 }
  0x47   : > { %v982_v26 = vmul.f32 %v6417_v56, %v602_v12  ;;  %v981_v46 = vmul.f32 %v6423_v59, %v601_v36  ;;  %v6625_v12 = vld [vmem:[%s9800_s2 + $0x98] sm:$0xff]  ;;  %v330_v36 = vld [vmem:[%s9800_s2 + $0x48] sm:$0xff] }
  0x48   : > { %2189 = vmatpush.bf16.xpose.msra.mxu1 %v1315_v34  ;;  %2217 = vmatpush.bf16.xpose.msra.mxu2 %v1316_v44  ;;  %v1305_v34 = vpack.c.bf16 %v999_v14, %v990_v13  ;;  %v575_v44 = vunpack.c.h.bf16 %v350_v29  ;;  %v965_v10 = vmul.f32 %v6420_v57, %v585_v51  ;;  %v557_v13 = vunpack.c.h.bf16 %v340_v62 }
  0x49   : > { %2161 = vmatpush.bf16.xpose.msra.mxu0 %v1314_v58  ;;  %v1297_v43 = vpack.c.bf16 %v982_v26, %v973_v25  ;;  %v964_v58 = vmul.f32 %v6417_v56, %v584_v21  ;;  %v1296_v3 = vpack.c.bf16 %v981_v46, %v972_v45  ;;  %v558_v25 = vunpack.c.l.bf16 %v6625_v12  ;;  %v6659_v21 = vld [vmem:[%s9800_s2 + $0x74] sm:$0xff]  ;;  %6041 = vmatpush.lsf.bf16.msrb.mxu3 %v6282_v8 }
  0x4a   : > { %v955_v27 = vmul.f32 %v6417_v56, %v575_v44  ;;  %v937_v30 = vmul.f32 %v6417_v56, %v557_v13  ;;  %v6653_v44 = vld [vmem:[%s9800_s2 + $0x50] sm:$0xff]  ;;  %v539_v46 = vunpack.c.h.bf16 %v330_v36 }
  0x4b   : > { %v540_v51 = vunpack.c.l.bf16 %v6653_v44 }
  0x4c   : > { %v1288_v14 = vpack.c.bf16 %v964_v58, %v955_v27  ;;  %v5673_v27 = vld [vmem:[%s9799_s1 + $0x128] sm:$0xff] }
  0x4d   : > { %v5665_v58 = vld [vmem:[%s9799_s1 + $0xe8] sm:$0xff]  ;;  %v920_v13 = vmul.f32 %v6420_v57, %v540_v51 }
  0x50   : > { %5972 = vmatpush.lsf.bf16.msrb.mxu2 %v6529_v0  ;;  %5942 = vmatpush.lsf.bf16.msrb.mxu1 %v6396_v48  ;;  %v974_v48 = vmul.f32 %v6420_v57, %v594_v19  ;;  %v6630_v0 = vld [vmem:[%s9800_s2 + $0xbc] sm:$0xff]  ;;  %v954_v19 = vmul.f32 %v6423_v59, %v574_v63  ;;  %v325_v63 = vld [vmem:[%s9800_s2 + $0x24] sm:$0xff] }
  0x51   : > { %5869 = vmatpush.lsf.bf16.msrb.mxu0 %v6536_v4  ;;  %2100 = vxpose.xlu2.c.b16.cont [5/8] (narrow) %v5680_v47, 64  ;;  %v567_v26 = vunpack.c.l.bf16 %v6630_v0 }
  0x52   : > { %v1298_v50 = vpack.c.bf16 %v983_v28, %v974_v48  ;;  %v1287_v35 = vpack.c.bf16 %v963_v22, %v954_v19  ;;  %v938_v48 = vmul.f32 %v6420_v57, %v558_v25  ;;  %v530_v22 = vunpack.c.h.bf16 %v325_v63  ;;  %v6704_v25 = vld [vmem:[%s9800_s2 + $0x8] sm:$0xff] }
  0x53   : > { %6105 = vxpose.binary.xlu1.c.b16.cont [5/16] (narrow) %v5672_v42, %v5696_v52, 64  ;;  %v947_v28 = vmul.f32 %v6420_v57, %v567_v26  ;;  %v549_v42 = vunpack.c.l.bf16 %v6659_v21  ;;  %v649_v52 = vunpack.c.h.bf16 %v6361_v37  ;;  %v5689_v37 = vld [vmem:[%s9799_s1 + $0x1a8] sm:$0xff] }
  0x54   : > { %2190 = vmatpush.bf16.xpose.msra.mxu1 %v1306_v9  ;;  %5973 = vmatpush.lsf.bf16.msrb.mxu2 %v6554_v15  ;;  %v556_v15 = vunpack.c.l.bf16 %v340_v62  ;;  %v320_v62 = vld [vmem:[%s9800_s2] sm:$0xff]  ;;  %v6709_v26 = vld [vmem:[%s9800_s2 + $0x2c] sm:$0xff] }
  0x55   : > { %5870 = vmatpush.lsf.bf16.msrb.mxu0 %v6562_v23  ;;  %v521_v19 = vunpack.c.h.bf16 %v320_v62 }
  0x56   : > { %5974 = vllmr.8.mxu2 }
  0x57   : > { %5871 = vllmr.8.mxu0 }
  0x58   : > { %2218 = vmatpush.bf16.xpose.msra.mxu2 %v1307_v16 }
  0x59   : > { %2162 = vmatpush.bf16.xpose.msra.mxu0 %v1305_v34 }
  0x5a   : > { %6089 = vxpose.binary.xlu0.c.b16.cont [5/16] (narrow) %v5688_v55, %v5664_v53, 64  ;;  %v658_v53 = vunpack.c.h.bf16 %v6366_v38  ;;  %v6673_v55 = vperm.slane %v6400_v49, 3 }
  0x5c   : > { %5943 = vmatpush.lsf.bf16.msrb.mxu1 %v6442_v2  ;;  %v576_v2 = vunpack.c.l.bf16 %v6580_v40  ;;  %v1029_v1 = vmul.f32 %v6673_v55, %v649_v52  ;;  %v6735_v52 = vld [vmem:[%s9800_s2 + $0x210] sm:$0xff] }
  0x5e   : > { %v956_v9 = vmul.f32 %v6420_v57, %v576_v2 }
  0x60   : > { %5983 = vmatpush.lsf.bf16.msrb.mxu2 %v6276_v7  ;;  %5944 = vmatpush.lsf.bf16.msrb.mxu1 %v6460_v20  ;;  %v345_v20 = vld [vmem:[%s9800_s2 + $0xb4] sm:$0xff]  ;;  %v1289_v29 = vpack.c.bf16 %v965_v10, %v956_v9  ;;  %v5681_v7 = vld [vmem:[%s9799_s1 + $0x168] sm:$0xff]  ;;  %v538_v9 = vunpack.c.l.bf16 %v330_v36 }
  0x61   : > { %v566_v16 = vunpack.c.h.bf16 %v345_v20  ;;  %2163 = vmatpush.bf16.xpose.msra.mxu0 %v1296_v3  ;;  %2101 = vxpose.xlu2.c.b16.cont [6/8] (narrow) %v5681_v7, 64 }
  0x63   : > { %v946_v34 = vmul.f32 %v6417_v56, %v566_v16 }
  0x64   : > { %2191 = vmatpush.bf16.xpose.msra.mxu1 %v1297_v43  ;;  %5984 = vmatpush.lsf.bf16.msrb.mxu2 %v6282_v8  ;;  %v565_v43 = vunpack.c.l.bf16 %v345_v20  ;;  %v919_v8 = vmul.f32 %v6417_v56, %v539_v46  ;;  %v1038_v20 = vmul.f32 %v6673_v55, %v658_v53  ;;  %v520_v46 = vunpack.c.l.bf16 %v320_v62  ;;  %v6740_v53 = vld [vmem:[%s9800_s2 + $0x234] sm:$0xff] }
  0x65   : > { %v1279_v45 = vpack.c.bf16 %v946_v34, %v937_v30  ;;  %v918_v30 = vmul.f32 %v6423_v59, %v538_v9 }
  0x66   : > { %v945_v2 = vmul.f32 %v6423_v59, %v565_v43  ;;  %v1326_v16 = vpack.c.bf16 %v1038_v20, %v1029_v1  ;;  %v910_v43 = vmul.f32 %v6417_v56, %v530_v22  ;;  %v661_v1 = vunpack.c.l.bf16 %v6740_v53  ;;  %v387_v22 = vld [vmem:[%s9800_s2 + $0x1e4] sm:$0xff] }
  0x67   : > { %v6756_v20 = vperm.slane %v6400_v49, 6 }
  0x68   : > { %2219 = vmatpush.bf16.xpose.msra.mxu2 %v1298_v50  ;;  %v936_v50 = vmul.f32 %v6423_v59, %v556_v15  ;;  %2244 = vmatpush.bf16.xpose.msra.mxu3 %v1326_v16  ;;  %v901_v15 = vmul.f32 %v6417_v56, %v521_v19  ;;  %v382_v19 = vld [vmem:[%s9800_s2 + $0x1c0] sm:$0xff] }
  0x69   : > { %2164 = vmatpush.bf16.xpose.msra.mxu0 %v1287_v35  ;;  %v631_v35 = vunpack.c.h.bf16 %v6411_v54  ;;  %v392_v54 = vld [vmem:[%s9800_s2 + $0x208] sm:$0xff] }
  0x6a   : > { %v1278_v3 = vpack.c.bf16 %v945_v2, %v936_v50  ;;  %6090 = vxpose.binary.xlu0.c.b16.cont [6/16] (narrow) %v5689_v37, %v5665_v58, 64  ;;  %v1261_v7 = vpack.c.bf16 %v910_v43, %v901_v15  ;;  %v613_v37 = vunpack.c.h.bf16 %v6477_v31  ;;  %v5674_v31 = vld [vmem:[%s9799_s1 + $0x130] sm:$0xff]  ;;  %v633_v43 = vunpack.c.h.bf16 %v382_v19 }
  0x6c   : > { %5945 = vmatpush.lsf.bf16.msrb.mxu1 %v6488_v33  ;;  %v335_v33 = vld [vmem:[%s9800_s2 + $0x6c] sm:$0xff] }
  0x6d   : > { %v548_v47 = vunpack.c.h.bf16 %v335_v33  ;;  %v547_v10 = vunpack.c.l.bf16 %v335_v33  ;;  %v522_v33 = vunpack.c.l.bf16 %v6704_v25 }
  0x6f   : > { %v928_v38 = vmul.f32 %v6417_v56, %v548_v47  ;;  %v927_v34 = vmul.f32 %v6423_v59, %v547_v10  ;;  %v529_v47 = vunpack.c.l.bf16 %v325_v63  ;;  %v902_v50 = vmul.f32 %v6420_v57, %v522_v33  ;;  %v5666_v10 = vld [vmem:[%s9799_s1 + $0xf0] sm:$0xff] }
  0x70   : > { %5985 = vmatpush.lsf.bf16.msrb.mxu2 %v6291_v11  ;;  %2192 = vmatpush.bf16.xpose.msra.mxu1 %v1288_v14  ;;  %v929_v14 = vmul.f32 %v6420_v57, %v549_v42  ;;  %v651_v42 = vunpack.c.h.bf16 %v392_v54  ;;  %v652_v63 = vunpack.c.l.bf16 %v6735_v52  ;;  %v1041_v33 = vmul.f32 %v6756_v20, %v661_v1 }
  0x71   : > { %2165 = vmatpush.bf16.xpose.msra.mxu0 %v1278_v3  ;;  %6042 = vmatpush.lsf.bf16.msrb.mxu3 %v6291_v11  ;;  %v1269_v11 = vpack.c.bf16 %v927_v34, %v918_v30  ;;  %v909_v58 = vmul.f32 %v6423_v59, %v529_v47  ;;  %v993_v3 = vmul.f32 %v6673_v55, %v613_v37  ;;  %v6783_v34 = vperm.slane %v6400_v49, 4 }
  0x72   : > { %v1271_v36 = vpack.c.bf16 %v929_v14, %v920_v13  ;;  %v595_v47 = vunpack.c.h.bf16 %v6541_v5  ;;  %v372_v5 = vld [vmem:[%s9800_s2 + $0x178] sm:$0xff] }
  0x73   : > { %9837 = vst [vmem:[#allocation4_spill] sm:$0xff] %v6783_v34  ;;  %v615_v1 = vunpack.c.h.bf16 %v372_v5 }
  0x74   : > { %2220 = vmatpush.bf16.xpose.msra.mxu2 %v1289_v29  ;;  %v1270_v29 = vpack.c.bf16 %v928_v38, %v919_v8  ;;  %v622_v8 = vunpack.c.h.bf16 %v6482_v32  ;;  %v5682_v38 = vld [vmem:[%s9799_s1 + $0x170] sm:$0xff] }
  0x75   : > { %6043 = vmatpush.lsf.bf16.msrb.mxu3 %v6309_v17  ;;  %v5698_v32 = vld [vmem:[%s9799_s1 + $0x1f0] sm:$0xff]  ;;  %2102 = vxpose.xlu2.c.b16.cont [7/8] (narrow) %v5682_v38, 64  ;;  %v6822_v38 = vld [vmem:[%s9800_s2 + $0x180] sm:$0xff] }
  0x76   : > { %v1002_v9 = vmul.f32 %v6673_v55, %v622_v8  ;;  %v641_v8 = vunpack.c.l.bf16 %v387_v22 }
  0x78   : > { %5946 = vmatpush.lsf.bf16.msrb.mxu1 %v6536_v4  ;;  %v1280_v4 = vpack.c.bf16 %v947_v28, %v938_v48  ;;  %v531_v48 = vunpack.c.l.bf16 %v6709_v26  ;;  %v640_v28 = vunpack.c.h.bf16 %v6428_v60  ;;  %v397_v60 = vld [vmem:[%s9800_s2 + $0x22c] sm:$0xff] }
  0x79   : > { %2166 = vmatpush.bf16.xpose.msra.mxu0 %v1269_v11  ;;  %v659_v30 = vunpack.c.l.bf16 %v397_v60 }
  0x7a   : > { %v911_v2 = vmul.f32 %v6420_v57, %v531_v48  ;;  %v6790_v48 = vld [vmem:[%s9800_s2 + $0x1c8] sm:$0xff] }
  0x7b   : > { %v634_v11 = vunpack.c.l.bf16 %v6790_v48 }
  0x7c   : > { %5986 = vmatpush.lsf.bf16.msrb.mxu2 %v6309_v17  ;;  %5947 = vmatpush.lsf.bf16.msrb.mxu1 %v6562_v23  ;;  %v5697_v23 = vld [vmem:[%s9799_s1 + $0x1e8] sm:$0xff]  ;;  %v900_v17 = vmul.f32 %v6423_v59, %v520_v46  ;;  %v1262_v62 = vpack.c.bf16 %v911_v2, %v902_v50  ;;  %v1039_v46 = vmul.f32 %v6783_v34, %v659_v30 }
  0x7d   : > { %6106 = vxpose.binary.xlu1.c.b16.cont [6/16] (narrow) %v5673_v27, %v5697_v23, 64  ;;  %v660_v27 = vunpack.c.h.bf16 %v397_v60  ;;  %v6744_v23 = vperm.slane %v6400_v49, 5  ;;  %v975_v2 = vmul.f32 %v6673_v55, %v595_v47  ;;  %v6868_v47 = vld [vmem:[%s9800_s2 + $0x138] sm:$0xff] }
  0x7e   : > { %v1260_v16 = vpack.c.bf16 %v909_v58, %v900_v17  ;;  %v1014_v58 = vmul.f32 %v6756_v20, %v634_v11 }
  0x7f   : > { %v1031_v13 = vmul.f32 %v6744_v23, %v651_v42  ;;  %v1040_v14 = vmul.f32 %v6744_v23, %v660_v27  ;;  %v632_v27 = vunpack.c.l.bf16 %v382_v19 }
  0x80   : > { %5987 = vmatpush.lsf.bf16.msrb.mxu2 %v6315_v18  ;;  %2193 = vmatpush.bf16.xpose.msra.mxu1 %v1279_v45  ;;  %v1011_v45 = vmul.f32 %v6673_v55, %v631_v35  ;;  %v1308_v35 = vpack.c.bf16 %v1002_v9, %v993_v3  ;;  %v586_v3 = vunpack.c.h.bf16 %v6585_v41  ;;  %v5683_v9 = vld [vmem:[%s9799_s1 + $0x178] sm:$0xff] }
  0x81   : > { %v1328_v15 = vpack.c.bf16 %v1040_v14, %v1031_v13  ;;  %2167 = vmatpush.bf16.xpose.msra.mxu0 %v1260_v16  ;;  %v616_v13 = vunpack.c.l.bf16 %v6822_v38  ;;  %v5699_v41 = vld [vmem:[%s9799_s1 + $0x1f8] sm:$0xff] }
  0x82   : > { %v966_v19 = vmul.f32 %v6673_v55, %v586_v3 }
  0x84   : > { %2221 = vmatpush.bf16.xpose.msra.mxu2 %v1280_v4  ;;  %v1020_v4 = vmul.f32 %v6673_v55, %v640_v28  ;;  %v6795_v28 = vld [vmem:[%s9800_s2 + $0x1ec] sm:$0xff] }
  0x85   : > { %v643_v50 = vunpack.c.l.bf16 %v6795_v28  ;;  %2103 = vxpose.xlu2.c.b16.end [8/8] (narrow) %v5683_v9, 64  ;;  %v6899_v9 = vld [vmem:[%s9800_s2 + $0xf0] sm:$0xff] }
  0x86   : > { %v1317_v51 = vpack.c.bf16 %v1020_v4, %v1011_v45  ;;  %v642_v45 = vunpack.c.h.bf16 %v387_v22  ;;  %v604_v4 = vunpack.c.h.bf16 %v6546_v6  ;;  %v6814_v6 = vld [vmem:[%s9800_s2 + $0x19c] sm:$0xff] }
  0x87   : > { %v1023_v37 = vmul.f32 %v6756_v20, %v643_v50  ;;  %v5667_v22 = vld [vmem:[%s9799_s1 + $0xf8] sm:$0xff] }
  0x88   : > { %2194 = vmatpush.bf16.xpose.msra.mxu1 %v1270_v29  ;;  %2245 = vmatpush.bf16.xpose.msra.mxu3 %v1317_v51  ;;  %v650_v29 = vunpack.c.l.bf16 %v392_v54  ;;  %v984_v51 = vmul.f32 %v6673_v55, %v604_v4  ;;  %v1022_v42 = vmul.f32 %v6744_v23, %v642_v45  ;;  %v996_v45 = vmul.f32 %v6756_v20, %v616_v13  ;;  %v6873_v4 = vld [vmem:[%s9800_s2 + $0x15c] sm:$0xff] }
  0x89   : > { %5872 = vmatmul.lmr.bf16.vlgmr.msra.gmra.8.mxu0 }
  0x8a   : > { %v1030_v54 = vmul.f32 %v6783_v34, %v650_v29  ;;  %v1299_v17 = vpack.c.bf16 %v984_v51, %v975_v2  ;;  %v995_v29 = vmul.f32 %v6744_v23, %v615_v1  ;;  %v559_v51 = vunpack.c.h.bf16 %v6625_v12 }
  0x8c   : > { %5988 = vmatpush.lsf.bf16.msrb.mxu2 %v6329_v24 }
  0x8d   : > { %6107 = vxpose.binary.xlu1.c.b16.cont [7/16] (narrow) %v5674_v31, %v5698_v32, 64  ;;  %v624_v31 = vunpack.c.h.bf16 %v6814_v6  ;;  %v1012_v32 = vmul.f32 %v6783_v34, %v632_v27  ;;  %v939_v27 = vmul.f32 %v6673_v55, %v559_v51 }
  0x8f   : > { %v1004_v30 = vmul.f32 %v6744_v23, %v624_v31  ;;  %v281_v31 = vld [vmem:[%s9798_s0 + $0x8] sm:$0x1] }
  0x90   : > { %2222 = vmatpush.bf16.xpose.msra.mxu2 %v1271_v36  ;;  %6044 = vmatpush.lsf.bf16.msrb.mxu3 %v6315_v18  ;;  %v5690_v18 = vld [vmem:[%s9799_s1 + $0x1b0] sm:$0xff]  ;;  %v1032_v36 = vmul.f32 %v6756_v20, %v652_v63 }
  0x91   : > { %2195 = vmatpush.bf16.xpose.msra.mxu1 %v1261_v7  ;;  %v1013_v7 = vmul.f32 %v6744_v23, %v633_v43  ;;  %5873 = vmatmul.lmr.bf16.gmra.8.mxu0 }
  0x92   : > { %6091 = vxpose.binary.xlu0.c.b16.cont [7/16] (narrow) %v5690_v18, %v5666_v10, 64  ;;  %v1329_v60 = vpack.c.bf16 %v1041_v33, %v1032_v36  ;;  %v1320_v10 = vpack.c.bf16 %v1023_v37, %v1014_v58  ;;  %v1021_v18 = vmul.f32 %v6783_v34, %v641_v8  ;;  %v367_v36 = vld [vmem:[%s9800_s2 + $0x154] sm:$0xff]  ;;  %v614_v33 = vunpack.c.l.bf16 %v372_v5  ;;  %v357_v37 = vld [vmem:[%s9800_s2 + $0x10c] sm:$0xff] }
  0x93   : > { %v1319_v63 = vpack.c.bf16 %v1022_v42, %v1013_v7  ;;  %v606_v50 = vunpack.c.h.bf16 %v367_v36  ;;  %v568_v7 = vunpack.c.h.bf16 %v6630_v0  ;;  %v352_v0 = vld [vmem:[%s9800_s2 + $0xe8] sm:$0xff] }
  0x94   : > { %2246 = vmatpush.bf16.xpose.msra.mxu3 %v1308_v35  ;;  %v362_v35 = vld [vmem:[%s9800_s2 + $0x130] sm:$0xff]  ;;  %v1318_v43 = vpack.c.bf16 %v1021_v18, %v1012_v32  ;;  %v994_v2 = vmul.f32 %v6783_v34, %v614_v33  ;;  %v579_v13 = vunpack.c.h.bf16 %v352_v0 }
  0x95   : > { %v597_v11 = vunpack.c.h.bf16 %v362_v35  ;;  %v986_v12 = vmul.f32 %v6744_v23, %v606_v50  ;;  %v596_v8 = vunpack.c.l.bf16 %v362_v35  ;;  %v6927_v50 = vld [vmem:[%s9800_s2 + $0xa8] sm:$0xff] }
  0x96   : > { %v959_v33 = vmul.f32 %v6744_v23, %v579_v13 }
  0x97   : > { %v977_v58 = vmul.f32 %v6744_v23, %v597_v11  ;;  %v587_v11 = vunpack.c.l.bf16 %v357_v37 }
  0x98   : > { %5989 = vmatpush.lsf.bf16.msrb.mxu2 %v6372_v39  ;;  %5932 = vmatmul.lmr.bf16.vlgmr.msra.gmra.8.mxu1 }
  0x99   : > { %2300 = vmatpush.bf16.xpose.msra.mxu1 %v1328_v15  ;;  %v1301_v18 = vpack.c.bf16 %v986_v12, %v977_v58  ;;  %5874 = vmatmul.lmr.bf16.gmra.8.mxu0 }
  0x9c   : > { %5990 = vmatpush.lsf.bf16.msrb.mxu2 %v6434_v61  ;;  %6045 = vmatpush.lsf.bf16.msrb.mxu3 %v6329_v24  ;;  %v1327_v24 = vpack.c.bf16 %v1039_v46, %v1030_v54  ;;  %v623_v46 = vunpack.c.l.bf16 %v6814_v6  ;;  %v598_v6 = vunpack.c.l.bf16 %v6868_v47 }
  0x9e   : > { %2272 = vmatpush.bf16.xpose.msra.mxu0 %v1327_v24  ;;  %v1003_v5 = vmul.f32 %v6783_v34, %v623_v46  ;;  %v607_v24 = vunpack.c.l.bf16 %v6873_v4 }
  0xa0   : > { %2223 = vmatpush.bf16.xpose.msra.mxu2 %v1262_v62  ;;  %6046 = vmatpush.lsf.bf16.msrb.mxu3 %v6372_v39  ;;  %v6827_v62 = vld [vmem:[%s9800_s2 + $0x1a4] sm:$0xff]  ;;  %v577_v39 = vunpack.c.h.bf16 %v6580_v40  ;;  %v5675_v40 = vld [vmem:[%s9799_s1 + $0x138] sm:$0xff]  ;;  %v1309_v32 = vpack.c.bf16 %v1003_v5, %v994_v2  ;;  %v987_v3 = vmul.f32 %v6756_v20, %v607_v24  ;;  %v6932_v2 = vld [vmem:[%s9800_s2 + $0xcc] sm:$0xff]  ;;  %v562_v5 = vunpack.c.l.bf16 %v6927_v50 }
  0xa1   : > { %v625_v14 = vunpack.c.l.bf16 %v6827_v62  ;;  %5933 = vmatmul.lmr.bf16.gmra.8.mxu1  ;;  %5875 = vmatmul.lmr.bf16.gmra.8.mxu0  ;;  %v523_v24 = vunpack.c.h.bf16 %v6704_v25 }
  0xa2   : > { %v957_v16 = vmul.f32 %v6673_v55, %v577_v39  ;;  %2301 = vmatpush.bf16.xpose.msra.mxu1 %v1319_v63  ;;  %v605_v63 = vunpack.c.l.bf16 %v367_v36  ;;  %v978_v39 = vmul.f32 %v6756_v20, %v598_v6  ;;  %v571_v6 = vunpack.c.l.bf16 %v6932_v2 }
  0xa3   : > { %v1005_v54 = vmul.f32 %v6756_v20, %v625_v14  ;;  %6108 = vxpose.binary.xlu1.c.b16.end [8/16] (narrow) %v5675_v40, %v5699_v41, 64  ;;  %v588_v14 = vunpack.c.h.bf16 %v357_v37  ;;  %v4844_v40 = vmul.f32 -1.442695, %v281_v31  ;;  %v976_v41 = vmul.f32 %v6783_v34, %v596_v8 }
  0xa4   : > { %2247 = vmatpush.bf16.xpose.msra.mxu3 %v1299_v17  ;;  %v1290_v15 = vpack.c.bf16 %v966_v19, %v957_v16  ;;  %v948_v17 = vmul.f32 %v6673_v55, %v568_v7  ;;  %v985_v16 = vmul.f32 %v6783_v34, %v605_v63  ;;  %v541_v19 = vunpack.c.h.bf16 %v6653_v44  ;;  %v342_v44 = vld [vmem:[%s9800_s2 + $0xa0] sm:$0xff] }
  0xa5   : > { %v1311_v42 = vpack.c.bf16 %v1005_v54, %v996_v45  ;;  %6121 = vpow2.f32 %v4844_v40  ;;  %v561_v7 = vunpack.c.h.bf16 %v342_v44  ;;  %v903_v37 = vmul.f32 %v6673_v55, %v523_v24  ;;  %v6957_v40 = vld [vmem:[%s9800_s2 + $0x60] sm:$0xff] }
  0xa6   : > { %2273 = vmatpush.bf16.xpose.msra.mxu0 %v1318_v43  ;;  %v1281_v1 = vpack.c.bf16 %v948_v17, %v939_v27  ;;  %v921_v35 = vmul.f32 %v6673_v55, %v541_v19  ;;  %v1300_v43 = vpack.c.bf16 %v985_v16, %v976_v41  ;;  %v532_v27 = vunpack.c.h.bf16 %v6709_v26  ;;  %v332_v26 = vld [vmem:[%s9800_s2 + $0x58] sm:$0xff]  ;;  %v6962_v41 = vld [vmem:[%s9800_s2 + $0x84] sm:$0xff] }
  0xa7   : > { %5975 = vmatmul.lmr.bf16.vlgmr.msra.gmra.8.mxu2  ;;  %v941_v63 = vmul.f32 %v6744_v23, %v561_v7  ;;  %v560_v25 = vunpack.c.l.bf16 %v342_v44  ;;  %v543_v19 = vunpack.c.h.bf16 %v332_v26  ;;  %v6972_v44 = vperm.slane %v6400_v49, 7  ;;  %v327_v49 = vld [vmem:[%s9800_s2 + $0x34] sm:$0xff] }
  0xa8   : > { %2328 = vmatpush.bf16.xpose.msra.mxu2 %v1329_v60  ;;  %v1310_v60 = vpack.c.bf16 %v1004_v30, %v995_v29  ;;  %v580_v29 = vunpack.c.l.bf16 %v6899_v9  ;;  %v912_v8 = vmul.f32 %v6673_v55, %v532_v27 }
  0xa9   : > { %5934 = vmatmul.lmr.bf16.gmra.8.mxu1  ;;  %5876 = vmatmul.lmr.bf16.gmra.8.mxu0 }
  0xaa   : > { %2302 = vmatpush.bf16.xpose.msra.mxu1 %v1310_v60  ;;  %v960_v54 = vmul.f32 %v6756_v20, %v580_v29  ;;  %v578_v60 = vunpack.c.l.bf16 %v352_v0  ;;  %v967_v0 = vmul.f32 %v6783_v34, %v587_v11 }
  0xab   : > { %v6122_v17 = vpop.eup %6121 }
  0xac   : > { %6047 = vmatpush.lsf.bf16.msrb.mxu3 %v6434_v61  ;;  %v5691_v61 = vld [vmem:[%s9799_s1 + $0x1b8] sm:$0xff]  ;;  %v958_v12 = vmul.f32 %v6783_v34, %v578_v60  ;;  %v6952_v13 = vadd.f32 1.0, %v6122_v17  ;;  %v534_v17 = vunpack.c.h.bf16 %v327_v49 }
  0xad   : > { %6092 = vxpose.binary.xlu0.c.b16.end [8/16] (narrow) %v5691_v61, %v5667_v22, 64  ;;  %v550_v22 = vunpack.c.h.bf16 %v6659_v21  ;;  %v1302_v61 = vpack.c.bf16 %v987_v3, %v978_v39  ;;  %v347_v21 = vld [vmem:[%s9800_s2 + $0xc4] sm:$0xff]  ;;  %v942_v39 = vmul.f32 %v6756_v20, %v562_v5  ;;  %v951_v3 = vmul.f32 %v6756_v20, %v571_v6  ;;  %v6997_v5 = vld [vmem:[%s9800_s2 + $0x18] sm:$0xff] }
  0xae   : > { %2274 = vmatpush.bf16.xpose.msra.mxu0 %v1309_v32  ;;  %v569_v31 = vunpack.c.l.bf16 %v347_v21  ;;  %v337_v32 = vld [vmem:[%s9800_s2 + $0x7c] sm:$0xff]  ;;  %6123 = vrcp.f32 %v6952_v13  ;;  %vm310_vm4 = vweird.f32 %v6952_v13 }
  0xaf   : > { %5976 = vmatmul.lmr.bf16.gmra.8.mxu2  ;;  %v930_v36 = vmul.f32 %v6673_v55, %v550_v22  ;;  %v552_v22 = vunpack.c.h.bf16 %v337_v32  ;;  %v1284_v29 = vpack.c.bf16 %v951_v3, %v942_v39  ;;  %v7002_v6 = vld [vmem:[%s9800_s2 + $0x3c] sm:$0xff] }
  0xb0   : > { %2329 = vmatpush.bf16.xpose.msra.mxu2 %v1320_v10  ;;  %2248 = vmatpush.bf16.xpose.msra.mxu3 %v1290_v15  ;;  %v6904_v10 = vld [vmem:[%s9800_s2 + $0x114] sm:$0xff]  ;;  %v968_v15 = vmul.f32 %v6744_v23, %v588_v14  ;;  %v1291_v14 = vpack.c.bf16 %v967_v0, %v958_v12  ;;  %v635_v0 = vunpack.c.h.bf16 %v6790_v48  ;;  %v7028_v39 = vld [vmem:[%s9799_s1 + $0x200] sm:$0xff] }
  0xb1   : > { %v589_v30 = vunpack.c.l.bf16 %v6904_v10  ;;  %5935 = vmatmul.lmr.bf16.gmra.8.mxu1  ;;  %v1272_v45 = vpack.c.bf16 %v930_v36, %v921_v35  ;;  %v544_v35 = vunpack.c.l.bf16 %v6957_v40  ;;  %v553_v36 = vunpack.c.l.bf16 %v6962_v41  ;;  %5877 = vmatmul.lmr.bf16.gmra.8.mxu0  ;;  %v7033_v3 = vld [vmem:[%s9800_s2 + $0x45c] sm:$0xff] }
  0xb2   : > { %2303 = vmatpush.bf16.xpose.msra.mxu1 %v1301_v18  ;;  %v1292_v51 = vpack.c.bf16 %v968_v15, %v959_v33  ;;  %v1263_v18 = vpack.c.bf16 %v912_v8, %v903_v37  ;;  %v653_v33 = vunpack.c.h.bf16 %v6735_v52  ;;  %v662_v15 = vunpack.c.h.bf16 %v6740_v53  ;;  %v322_v52 = vld [vmem:[%s9800_s2 + $0x10] sm:$0xff] }
  0xb3   : > { %v969_v46 = vmul.f32 %v6756_v20, %v589_v30  ;;  %v949_v30 = vmul.f32 %v6783_v34, %v569_v31  ;;  %v542_v53 = vunpack.c.l.bf16 %v332_v26  ;;  %v924_v11 = vmul.f32 %v6756_v20, %v544_v35 }
  0xb4   : > { %v525_v27 = vunpack.c.h.bf16 %v322_v52  ;;  %v644_v37 = vunpack.c.h.bf16 %v6795_v28  ;;  %v7013_v31 = vmul.f32 %v6972_v44, %v635_v0  ;;  %v914_v28 = vmul.f32 %v6744_v23, %v534_v17  ;;  %v7083_v17 = vld [vmem:[%s9799_s1 + $0x228] sm:$0xff] }
  0xb5   : > { %v1293_v58 = vpack.c.bf16 %v969_v46, %v960_v54  ;;  %v6980_v54 = vmul.f32 %v6972_v44, %v662_v15  ;;  %v551_v46 = vunpack.c.l.bf16 %v337_v32  ;;  %v7023_v32 = vld [vmem:[%s9800_s2 + $0x438] sm:$0xff]  ;;  %v799_v15 = vunpack.c.l.bf16 %v7033_v3 }
  0xb6   : > { %2275 = vmatpush.bf16.xpose.msra.mxu0 %v1300_v43  ;;  %v932_v43 = vmul.f32 %v6744_v23, %v552_v22  ;;  %v7016_v26 = vmul.f32 %v6972_v44, %v644_v37  ;;  %v905_v48 = vmul.f32 %v6744_v23, %v525_v27  ;;  %v790_v35 = vunpack.c.l.bf16 %v7023_v32 }
  0xb7   : > { %5977 = vmatmul.lmr.bf16.gmra.8.mxu2  ;;  %v931_v12 = vmul.f32 %v6783_v34, %v551_v46  ;;  %v626_v46 = vunpack.c.h.bf16 %v6827_v62  ;;  %v7072_v62 = vld [vmem:[%s9800_s2 + $0x414] sm:$0xff]  ;;  %v316_v27 = vand.u32 2147483648, %v6952_v13  ;;  %v314_v0 = vand.u32 2147483647, %v6952_v13 }
  0xb8   : > { %2330 = vmatpush.bf16.xpose.msra.mxu2 %v1311_v42  ;;  %2249 = vmatpush.bf16.xpose.msra.mxu3 %v1281_v1  ;;  %v570_v42 = vunpack.c.h.bf16 %v347_v21  ;;  %v923_v21 = vmul.f32 %v6744_v23, %v543_v19  ;;  %v7040_v19 = vld [vmem:[%s9799_s1 + $0x238] sm:$0xff] }
  0xb9   : > { %5936 = vmatmul.lmr.bf16.gmra.8.mxu1  ;;  %5878 = vmatmul.lmr.bf16.gmra.8.mxu0  ;;  %vm315_vm7 = vcmp.eq.f32.partialorder %v314_v0, 8.507059e+37  ;;  %v581_v0 = vunpack.c.h.bf16 %v6899_v9 }
  0xba   : > { %2304 = vmatpush.bf16.xpose.msra.mxu1 %v1292_v51  ;;  %v950_v1 = vmul.f32 %v6744_v23, %v570_v42  ;;  %v933_v51 = vmul.f32 %v6756_v20, %v553_v36  ;;  %v6992_v42 = vpop.eup %6123  ;;  %v1274_v24 = vpack.c.bf16 %v932_v43, %v923_v21  ;;  %v7050_v36 = vld [vmem:[%s9799_s1 + $0x230] sm:$0xff]  ;;  %v617_v43 = vunpack.c.h.bf16 %v6822_v38 }
  0xbb   : > { %v7067_v38 = vld [vmem:[%s9800_s2 + $0x3f0] sm:$0xff]  ;;  %vm311_vm5 = vweird.f32 %v6992_v42 }
  0xbc   : > { %v1283_v16 = vpack.c.bf16 %v950_v1, %v941_v63  ;;  %v1275_v8 = vpack.c.bf16 %v933_v51, %v924_v11  ;;  %v526_v63 = vunpack.c.l.bf16 %v6997_v5  ;;  %v535_v1 = vunpack.c.l.bf16 %v7002_v6  ;;  %vm7091_vm6 = vmor %vm310_vm4, %vm311_vm5 }
  0xbd   : > { %2144 = vxpose.xlu0.c.b16.start [1/8] (narrow) %v7028_v39, 64  ;;  %v7061_v11 = vmul.f32 %v6972_v44, %v617_v43  ;;  %v1179_v51 = vmul.f32 %v6423_v59, %v799_v15  ;;  %v394_v15 = vld [vmem:[%s9800_s2 + $0x218] sm:$0xf] }
  0xbe   : > { %2276 = vmatpush.bf16.xpose.msra.mxu0 %v1291_v14  ;;  %v524_v14 = vunpack.c.l.bf16 %v322_v52  ;;  %v906_v22 = vmul.f32 %v6756_v20, %v526_v63  ;;  %v781_v63 = vunpack.c.l.bf16 %v7072_v62  ;;  %v7140_v43 = vld [vmem:[%s9799_s1 + $0x218] sm:$0xff] }
  0xbf   : > { %5978 = vmatmul.lmr.bf16.gmra.8.mxu2 }
  0xc0   : > { %2331 = vmatpush.bf16.xpose.msra.mxu2 %v1302_v61  ;;  %2250 = vmatpush.bf16.xpose.msra.mxu3 %v1272_v45  ;;  %v940_v61 = vmul.f32 %v6783_v34, %v560_v25  ;;  %v6977_v45 = vmul.f32 %v6972_v44, %v653_v33  ;;  %v306_v25 = vmul.f32 %v6992_v42, %v6952_v13  ;;  %v7101_v13 = vld [vmem:[%s9799_s1 + $0x220] sm:$0xff] }
  0xc1   : > { %5937 = vmatmul.lmr.bf16.gmra.8.mxu1  ;;  %v1265_v33 = vpack.c.bf16 %v914_v28, %v905_v48  ;;  %v904_v21 = vmul.f32 %v6783_v34, %v524_v14  ;;  %5879 = vmatmul.lmr.bf16.gmra.8.mxu0  ;;  %v317_v28 = vor.u32 1.1754944e-38, %v316_v27  ;;  %v608_v14 = vunpack.c.h.bf16 %v6873_v4  ;;  %v7123_v4 = vld [vmem:[%s9800_s2 + $0x3cc] sm:$0xff] }
  0xc2   : > { %2305 = vmatpush.bf16.xpose.msra.mxu1 %v1283_v16  ;;  %v1282_v60 = vpack.c.bf16 %v949_v30, %v940_v61  ;;  %v1330_v7 = vpack.c.bf16 %v6980_v54, %v6977_v45  ;;  %v1321_v16 = vpack.c.bf16 %v7016_v26, %v7013_v31  ;;  %v915_v61 = vmul.f32 %v6756_v20, %v535_v1  ;;  %v6137_v31 = vld [vmem:[%s9799_s1 + $0x18] sm:$0xff] }
  0xc3   : > { %v307_v30 = vsub.f32 1.0, %v306_v25  ;;  %v7096_v25 = vpop.trf.xlu2  ;;  %v654_v27 = vunpack.c.l.bf16 %v394_v15  ;;  %v800_v1 = vunpack.c.h.bf16 %v7033_v3 }
  0xc4   : > { %v1266_v52 = vpack.c.bf16 %v915_v61, %v906_v22  ;;  %9840 = vst [vmem:[#allocation5_spill] sm:$0xff] %v7096_v25 }
  0xc6   : > { %2277 = vmatpush.bf16.xpose.msra.mxu0 %v1282_v60  ;;  %v1170_v60 = vmul.f32 %v6423_v59, %v790_v35  ;;  %v7129_v35 = vmul.f32 %v6972_v44, %v608_v14 }
  0xc7   : > { %5979 = vmatmul.lmr.bf16.gmra.8.mxu2 }
  0xc8   : > { %2332 = vmatpush.bf16.xpose.msra.mxu2 %v1293_v58  ;;  %2251 = vmatpush.bf16.xpose.msra.mxu3 %v1263_v18  ;;  %v922_v58 = vmul.f32 %v6783_v34, %v542_v53  ;;  %v308_v53 = vmul.f32 %v6992_v42, %v307_v30  ;;  %v1395_v48 = vpack.c.bf16 %v1179_v51, %v1170_v60  ;;  %v7152_v60 = vld [vmem:[%s9799_s1 + $0x210] sm:$0xff]  ;;  %v763_v51 = vunpack.c.l.bf16 %v7123_v4 }
  0xc9   : > { %5938 = vmatmul.lmr.bf16.gmra.8.mxu1 }
  0xca   : > { %2306 = vmatpush.bf16.xpose.msra.mxu1 %v1274_v24  ;;  %v1273_v18 = vpack.c.bf16 %v931_v12, %v922_v58  ;;  %v7077_v24 = vmul.f32 %v6972_v44, %v626_v46  ;;  %v309_v12 = vadd.f32 %v6992_v42, %v308_v53  ;;  %v1143_v3 = vmul.f32 %v6423_v59, %v763_v51 }
  0xcb   : > { %v7206_v45 = vpop.trf.xlu2 }
  0xcc   : > { %v1312_v37 = vpack.c.bf16 %v7077_v24, %v7061_v11  ;;  %v313_v22 = vsel %vm7091_vm6, %v6992_v42, %v309_v12  ;;  %v5701_v42 = vld [vmem:[%s9799_s1 + $0x208] sm:$0xff]  ;;  %9842 = vst [vmem:[#allocation7_spill] sm:$0xff] %v7206_v45 }
  0xcd   : > { %2145 = vxpose.xlu0.c.b16.cont [2/8] (narrow) %v5701_v42, 64 }
  0xce   : > { %5880 = vmatpush.lsf.bf16.msrb.mxu0 %v7040_v19 }
  0xcf   : > { %5980 = vmatmul.lmr.bf16.gmra.8.mxu2 }
  0xd0   : > { %2333 = vmatpush.bf16.xpose.msra.mxu2 %v1284_v29  ;;  %v533_v29 = vunpack.c.l.bf16 %v327_v49 }
  0xd1   : > { %5939 = vmatmul.lmr.bf16.gmra.8.mxu1 }
  0xd2   : > { %2278 = vmatpush.bf16.xpose.msra.mxu0 %v1273_v18  ;;  %v913_v49 = vmul.f32 %v6783_v34, %v533_v29  ;;  %2307 = vmatpush.bf16.xpose.msra.mxu1 %v1265_v33  ;;  %v599_v18 = vunpack.c.h.bf16 %v6868_v47  ;;  %v1161_v29 = vmul.f32 %v6423_v59, %v781_v63  ;;  %v7118_v47 = vld [vmem:[%s9800_s2 + $0x3a8] sm:$0xff]  ;;  %v318_v33 = vsel %vm315_vm7, %v317_v28, %v313_v22 }
  0xd3   : > { %v754_v46 = vunpack.c.l.bf16 %v7118_v47  ;;  %v7155_v12 = vperm.slane %v318_v33, 0  ;;  %v791_v63 = vunpack.c.h.bf16 %v7023_v32 }
  0xd4   : > { %v1264_v58 = vpack.c.bf16 %v913_v49, %v904_v21  ;;  %v7113_v30 = vmul.f32 %v6972_v44, %v599_v18  ;;  %v399_v21 = vld [vmem:[%s9800_s2 + $0x23c] sm:$0xf]  ;;  %v7168_v18 = vmul.f32 %v6972_v44, %v581_v0 }
  0xd5   : > { %v6133_v49 = vld [vmem:[%s9799_s1 + $0x38] sm:$0xff]  ;;  %v1134_v32 = vmul.f32 %v6423_v59, %v754_v46  ;;  %v1034_v14 = vmul.f32 %v7155_v12, %v654_v27  ;;  %v1171_v15 = vmul.f32 %v6417_v56, %v791_v63  ;;  %v6135_v46 = vld [vmem:[%s9799_s1 + $0x28] sm:$0xff]  ;;  %v572_v63 = vunpack.c.h.bf16 %v6932_v2 }
  0xd7   : > { %5981 = vmatmul.lmr.bf16.gmra.8.mxu2  ;;  %v1377_v54 = vpack.c.bf16 %v1143_v3, %v1134_v32  ;;  %v7232_v3 = vld [vmem:[%s9800_s2 + $0x318] sm:$0xff] }
  0xd8   : > { %2334 = vmatpush.bf16.xpose.msra.mxu2 %v1275_v8  ;;  %v772_v8 = vunpack.c.l.bf16 %v7067_v38  ;;  %5948 = vllmr.8.mxu1 }
  0xd9   : > { %2308 = vmatmul.bf16.vlgmr.msra.gmra.mxu1 %v7096_v25 }
  0xda   : > { %5881 = vmatpush.lsf.bf16.msrb.mxu0 %v7050_v36  ;;  %v1152_v61 = vmul.f32 %v6423_v59, %v772_v8  ;;  %2412 = vmatpush.bf16.xpose.msra.mxu1 %v1395_v48  ;;  %v590_v8 = vunpack.c.h.bf16 %v6904_v10  ;;  %v6134_v48 = vld [vmem:[%s9799_s1 + $0x30] sm:$0xff] }
  0xdc   : > { %v1386_v53 = vpack.c.bf16 %v1161_v29, %v1152_v61  ;;  %v7171_v9 = vmul.f32 %v6972_v44, %v590_v8  ;;  %v7183_v61 = vld [vmem:[%s9800_s2 + $0x360] sm:$0xff]  ;;  %v563_v8 = vunpack.c.h.bf16 %v6927_v50 }
  0xdd   : > { %v7188_v29 = vld [vmem:[%s9800_s2 + $0x384] sm:$0xff]  ;;  %v736_v51 = vunpack.c.l.bf16 %v7183_v61  ;;  %2146 = vxpose.xlu0.c.b16.cont [3/8] (narrow) %v7152_v60, 64 }
  0xde   : > { %5882 = vmatpush.lsf.bf16.msrb.mxu0 %v7083_v17  ;;  %v1294_v33 = vpack.c.bf16 %v7171_v9, %v7168_v18  ;;  %v745_v27 = vunpack.c.l.bf16 %v7188_v29  ;;  %v7222_v50 = vmul.f32 %v6972_v44, %v563_v8 }
  0xdf   : > { %5982 = vmatmul.lmr.bf16.gmra.8.mxu2  ;;  %v7164_v28 = vpop.trf.xlu1 }
  0xe0   : > { %2335 = vmatpush.bf16.xpose.msra.mxu2 %v1266_v52  ;;  %v1303_v52 = vpack.c.bf16 %v7129_v35, %v7113_v30  ;;  %9841 = vst [vmem:[#allocation6_spill] sm:$0xff] %v7164_v28 }
  0xe2   : > { %2279 = vmatpush.bf16.xpose.msra.mxu0 %v1264_v58  ;;  %v663_v58 = vunpack.c.l.bf16 %v399_v21  ;;  %2413 = vmatpush.bf16.xpose.msra.mxu1 %v1386_v53  ;;  %v1180_v21 = vmul.f32 %v6417_v56, %v800_v1  ;;  %v389_v53 = vld [vmem:[%s9800_s2 + $0x1f4] sm:$0xf] }
  0xe3   : > { %v645_v0 = vunpack.c.l.bf16 %v389_v53 }
  0xe4   : > { %v1043_v22 = vmul.f32 %v7155_v12, %v663_v58  ;;  %v1396_v1 = vpack.c.bf16 %v1180_v21, %v1171_v15  ;;  %v7243_v15 = vld [vmem:[%s9800_s2 + $0x33c] sm:$0xff]  ;;  %v374_v21 = vld [vmem:[%s9800_s2 + $0x188] sm:$0xf] }
  0xe6   : > { %5991 = vllmr.8.mxu2 }
  0xe7   : > { %v7218_v32 = vpop.trf.xlu1 }
  0xe8   : > { %6000 = vmatpush.lsf.bf16.msrb.mxu2 %v6133_v49  ;;  %v384_v49 = vld [vmem:[%s9800_s2 + $0x1d0] sm:$0xf] }
  0xe9   : > { %v7173_v10 = vpop.trf.xlu0  ;;  %v636_v58 = vunpack.c.l.bf16 %v384_v49  ;;  %2313 = vmatmul.bf16.gmra.mxu1 %v7206_v45  ;;  %2280 = vmatmul.bf16.vlgmr.msra.gmra.mxu0 %v7218_v32  ;;  %v379_v49 = vld [vmem:[%s9800_s2 + $0x1ac] sm:$0xf] }
  0xea   : > { %5883 = vmatpush.lsf.bf16.msrb.mxu0 %v7101_v13  ;;  %2252 = vmatmul.bf16.vlgmr.msra.gmra.mxu3 %v7173_v10  ;;  %v627_v8 = vunpack.c.l.bf16 %v379_v49  ;;  %v7297_v49 = vld [vmem:[%s9800_s2 + $0x2f4] sm:$0xff] }
  0xeb   : > { %2356 = vmatpush.bf16.xpose.msra.mxu3 %v1330_v7  ;;  %v1331_v7 = vpack.c.bf16 %v1043_v22, %v1034_v14  ;;  %2414 = vmatpush.bf16.xpose.msra.mxu1 %v1377_v54  ;;  %v7235_v14 = vmul.f32 %v6972_v44, %v572_v63  ;;  %v1025_v22 = vmul.f32 %v7155_v12, %v645_v0  ;;  %v618_v0 = vunpack.c.l.bf16 %v374_v21  ;;  %v7292_v21 = vld [vmem:[%s9800_s2 + $0x2d0] sm:$0xff] }
  0xec   : > { %6001 = vmatpush.lsf.bf16.msrb.mxu2 %v6134_v48  ;;  %v773_v48 = vunpack.c.h.bf16 %v7067_v38  ;;  %v1116_v38 = vmul.f32 %v6423_v59, %v736_v51  ;;  %v718_v51 = vunpack.c.l.bf16 %v7232_v3  ;;  %v554_v63 = vunpack.c.h.bf16 %v6962_v41 }
  0xed   : > { %2147 = vxpose.xlu0.c.b16.cont [4/8] (narrow) %v7140_v43, 64 }
  0xee   : > { %5884 = vmatpush.lsf.bf16.msrb.mxu0 %v7140_v43  ;;  %v1153_v53 = vmul.f32 %v6417_v56, %v773_v48  ;;  %v755_v48 = vunpack.c.h.bf16 %v7118_v47  ;;  %v1007_v47 = vmul.f32 %v7155_v12, %v627_v8  ;;  %v7315_v8 = vpop.trf.xlu2  ;;  %v719_v43 = vunpack.c.h.bf16 %v7232_v3 }
  0xef   : > { %9844 = vst [vmem:[#allocation9_spill] sm:$0xff] %v7315_v8 }
  0xf0   : > { %6002 = vmatpush.lsf.bf16.msrb.mxu2 %v6135_v46  ;;  %v782_v46 = vunpack.c.h.bf16 %v7072_v62  ;;  %v1125_v62 = vmul.f32 %v6423_v59, %v745_v27 }
  0xf1   : > { %v7224_v2 = vpop.trf.xlu0 }
  0xf2   : > { %5885 = vmatpush.lsf.bf16.msrb.mxu0 %v7152_v60  ;;  %2336 = vmatmul.bf16.vlgmr.msra.gmra.mxu2 %v7224_v2  ;;  %v1162_v54 = vmul.f32 %v6417_v56, %v782_v46  ;;  %v1368_v27 = vpack.c.bf16 %v1125_v62, %v1116_v38  ;;  %v764_v46 = vunpack.c.h.bf16 %v7123_v4  ;;  %v1098_v38 = vmul.f32 %v6423_v59, %v718_v51  ;;  %v6139_v4 = vld [vmem:[%s9799_s1 + $0x10] sm:$0xff] }
  0xf3   : > { %2357 = vmatpush.bf16.xpose.msra.mxu3 %v1321_v16  ;;  %v545_v16 = vunpack.c.h.bf16 %v6957_v40  ;;  %v7278_v40 = vmul.f32 %v6972_v44, %v554_v63 }
  0xf4   : > { %v1387_v60 = vpack.c.bf16 %v1162_v54, %v1153_v53  ;;  %2415 = vmatpush.bf16.xpose.msra.mxu1 %v1368_v27  ;;  %v1135_v54 = vmul.f32 %v6417_v56, %v755_v48  ;;  %v1144_v51 = vmul.f32 %v6417_v56, %v764_v46  ;;  %v364_v27 = vld [vmem:[%s9800_s2 + $0x140] sm:$0xf]  ;;  %v737_v46 = vunpack.c.h.bf16 %v7183_v61 }
  0xf5   : > { %v7275_v62 = vmul.f32 %v6972_v44, %v545_v16  ;;  %v600_v16 = vunpack.c.l.bf16 %v364_v27 }
  0xf6   : > { %5886 = vmatpush.lsf.bf16.msrb.mxu0 %v5701_v42  ;;  %v6136_v42 = vld [vmem:[%s9799_s1 + $0x20] sm:$0xff]  ;;  %v1378_v48 = vpack.c.bf16 %v1144_v51, %v1135_v54  ;;  %v7346_v54 = vld [vmem:[%s9800_s2 + $0x288] sm:$0xff] }
  0xf7   : > { %6003 = vmatpush.lsf.bf16.msrb.mxu2 %v6136_v42  ;;  %v7271_v42 = vpop.trf.xlu1  ;;  %v1276_v53 = vpack.c.bf16 %v7278_v40, %v7275_v62  ;;  %v980_v61 = vmul.f32 %v7155_v12, %v600_v16  ;;  %v7351_v51 = vld [vmem:[%s9800_s2 + $0x2ac] sm:$0xff]  ;;  %v682_v35 = vunpack.c.l.bf16 %v7346_v54  ;;  %v6148_v62 = vld [vmem:[%s9799_s1 + $0x80] sm:$0xff] }
  0xf8   : > { %9843 = vst [vmem:[#allocation8_spill] sm:$0xff] %v7271_v42 }
  0xf9   : > { %v7280_v41 = vpop.trf.xlu0  ;;  %2318 = vmatmul.bf16.gmra.mxu1 %v7315_v8 }
  0xfa   : > { %5887 = vmatpush.lsf.bf16.msrb.mxu0 %v7028_v39  ;;  %v1016_v39 = vmul.f32 %v7155_v12, %v636_v58  ;;  %v727_v58 = vunpack.c.l.bf16 %v7243_v15  ;;  %2257 = vmatmul.bf16.gmra.mxu3 %v7280_v41 }
  0xfb   : > { %2440 = vmatpush.bf16.xpose.msra.mxu2 %v1396_v1  ;;  %v6138_v1 = vld [vmem:[%s9799_s1 + $0xb8] sm:$0xff]  ;;  %2358 = vmatpush.bf16.xpose.msra.mxu3 %v1312_v37  ;;  %v700_v37 = vunpack.c.l.bf16 %v7292_v21 }
  0xfc   : > { %5888 = vllmr.8.mxu0  ;;  %v1322_v26 = vpack.c.bf16 %v1025_v22, %v1016_v39  ;;  %v1107_v39 = vmul.f32 %v6423_v59, %v727_v58  ;;  %v998_v22 = vmul.f32 %v7155_v12, %v618_v0  ;;  %v369_v58 = vld [vmem:[%s9800_s2 + $0x164] sm:$0xf]  ;;  %v6140_v0 = vld [vmem:[%s9799_s1 + $0xb0] sm:$0xff] }
  0xfd   : > { %v609_v63 = vunpack.c.l.bf16 %v369_v58  ;;  %v1117_v58 = vmul.f32 %v6417_v56, %v737_v46  ;;  %v6144_v46 = vld [vmem:[%s9799_s1 + $0xa0] sm:$0xff]  ;;  %2148 = vxpose.xlu0.c.b16.cont [5/8] (narrow) %v7101_v13, 64  ;;  %v6147_v13 = vld [vmem:[%s9799_s1 + $0x88] sm:$0xff] }
  0xfe   : > { %2384 = vmatpush.bf16.xpose.msra.mxu0 %v1331_v7  ;;  %v1285_v7 = vpack.c.bf16 %v7235_v14, %v7222_v50  ;;  %v1359_v11 = vpack.c.bf16 %v1107_v39, %v1098_v38  ;;  %v1313_v24 = vpack.c.bf16 %v1007_v47, %v998_v22  ;;  %v746_v38 = vunpack.c.h.bf16 %v7188_v29 }
  0xff   : > { %v7327_v39 = vpop.trf.xlu1  ;;  %v989_v29 = vmul.f32 %v7155_v12, %v609_v63 }
 0x100   : > { %9845 = vst [vmem:[#allocation10_spill] sm:$0xff] %v7327_v39  ;;  %2416 = vmatpush.bf16.xpose.msra.mxu1 %v1359_v11  ;;  %2285 = vmatmul.bf16.gmra.mxu0 %v7327_v39  ;;  %v354_v11 = vld [vmem:[%s9800_s2 + $0xf8] sm:$0xf] }
 0x101   : > { %v582_v16 = vunpack.c.l.bf16 %v354_v11  ;;  %v344_v11 = vld [vmem:[%s9800_s2 + $0xb0] sm:$0xf] }
 0x103   : > { %6004 = vmatpush.lsf.bf16.msrb.mxu2 %v6137_v31  ;;  %v709_v31 = vunpack.c.l.bf16 %v7297_v49  ;;  %2359 = vmatpush.bf16.xpose.msra.mxu3 %v1303_v52  ;;  %v691_v52 = vunpack.c.l.bf16 %v7351_v51  ;;  %v962_v3 = vmul.f32 %v7155_v12, %v582_v16  ;;  %v701_v16 = vunpack.c.h.bf16 %v7292_v21 }
 0x106   : > { %5897 = vmatpush.lsf.bf16.msrb.mxu0 %v6138_v1  ;;  %v527_v1 = vunpack.c.h.bf16 %v6997_v5  ;;  %v1080_v5 = vmul.f32 %v6423_v59, %v700_v37  ;;  %v6142_v37 = vld [vmem:[%s9799_s1 + $0xa8] sm:$0xff] }
 0x107   : > { %6005 = vmatpush.lsf.bf16.msrb.mxu2 %v6139_v4  ;;  %v7335_v4 = vpop.trf.xlu0 }
 0x108   : > { %v7330_v22 = vmul.f32 %v6972_v44, %v527_v1  ;;  %9846 = vst [vmem:[#allocation11_spill] sm:$0xff] %v7335_v4  ;;  %2341 = vmatmul.bf16.gmra.mxu2 %v7335_v4 }
 0x10a   : > { %2385 = vmatpush.bf16.xpose.msra.mxu0 %v1322_v26  ;;  %v6141_v26 = vld [vmem:[%s9799_s1 + $0x8] sm:$0xff] }
 0x10b   : > { %2441 = vmatpush.bf16.xpose.msra.mxu2 %v1387_v60  ;;  %v536_v60 = vunpack.c.h.bf16 %v7002_v6  ;;  %v1089_v6 = vmul.f32 %v6423_v59, %v709_v31  ;;  %v6143_v31 = vld [vmem:[%s9799_s1] sm:$0xff]  ;;  %2360 = vmatpush.bf16.xpose.msra.mxu3 %v1294_v33 }
 0x10d   : > { %v7333_v47 = vmul.f32 %v6972_v44, %v536_v60  ;;  %v1350_v30 = vpack.c.bf16 %v1089_v6, %v1080_v5  ;;  %v728_v60 = vunpack.c.h.bf16 %v7243_v15  ;;  %v1062_v5 = vmul.f32 %v6423_v59, %v682_v35  ;;  %2149 = vxpose.xlu0.c.b16.cont [6/8] (narrow) %v7083_v17, 64 }
 0x10e   : > { %v1071_v6 = vmul.f32 %v6423_v59, %v691_v52  ;;  %v564_v52 = vunpack.c.l.bf16 %v344_v11  ;;  %v6146_v11 = vld [vmem:[%s9799_s1 + $0x90] sm:$0xff] }
 0x10f   : > { %2417 = vmatpush.bf16.xpose.msra.mxu1 %v1350_v30  ;;  %v7413_v30 = vpop.trf.xlu2 }
 0x110   : > { %9848 = vst [vmem:[#allocation13_spill] sm:$0xff] %v7413_v30  ;;  %v1341_v18 = vpack.c.bf16 %v1071_v6, %v1062_v5  ;;  %2323 = vmatmul.bf16.gmra.mxu1 %v7413_v30  ;;  %v944_v21 = vmul.f32 %v7155_v12, %v564_v52  ;;  %v7433_v5 = vld [vmem:[%s9800_s2 + $0x448] sm:$0xff] }
 0x111   : > { %v7438_v6 = vld [vmem:[%s9800_s2 + $0x46c] sm:$0xff]  ;;  %v794_v14 = vunpack.c.l.bf16 %v7433_v5 }
 0x112   : > { %5898 = vmatpush.lsf.bf16.msrb.mxu0 %v6140_v0  ;;  %v1126_v0 = vmul.f32 %v6417_v56, %v746_v38  ;;  %v7382_v38 = vpop.trf.xlu0 }
 0x113   : > { %6006 = vmatpush.lsf.bf16.msrb.mxu2 %v6141_v26  ;;  %v1304_v26 = vpack.c.bf16 %v989_v29, %v980_v61  ;;  %2262 = vmatmul.bf16.gmra.mxu3 %v7382_v38  ;;  %v7392_v61 = vld [vmem:[%s9800_s2 + $0x240] sm:$0xff] }
 0x114   : > { %v1369_v1 = vpack.c.bf16 %v1126_v0, %v1117_v58  ;;  %v7397_v29 = vld [vmem:[%s9800_s2 + $0x264] sm:$0xff]  ;;  %v1099_v58 = vmul.f32 %v6417_v56, %v719_v43  ;;  %v1108_v0 = vmul.f32 %v6417_v56, %v728_v60  ;;  %v664_v9 = vunpack.c.l.bf16 %v7392_v61  ;;  %2361 = vmatpush.bf16.xpose.msra.mxu3 %v1285_v7 }
 0x115   : > { %v673_v33 = vunpack.c.l.bf16 %v7397_v29  ;;  %v803_v7 = vunpack.c.l.bf16 %v7438_v6  ;;  %v2197_v40 = vpop.f32.mrf.mxu1 }
 0x116   : > { %2386 = vmatpush.bf16.xpose.msra.mxu0 %v1313_v24  ;;  %v359_v24 = vld [vmem:[%s9800_s2 + $0x11c] sm:$0xf]  ;;  %v1044_v60 = vmul.f32 %v6423_v59, %v664_v9 }
 0x117   : > { %2442 = vmatpush.bf16.xpose.msra.mxu2 %v1378_v48  ;;  %v591_v63 = vunpack.c.l.bf16 %v359_v24  ;;  %v7377_v48 = vpop.trf.xlu1  ;;  %v349_v24 = vld [vmem:[%s9800_s2 + $0xd4] sm:$0xf]  ;;  %2418 = vmatpush.bf16.xpose.msra.mxu1 %v1341_v18 }
 0x118   : > { %9847 = vst [vmem:[#allocation12_spill] sm:$0xff] %v7377_v48 }
 0x119   : > { %v971_v15 = vmul.f32 %v7155_v12, %v591_v63  ;;  %v710_v63 = vunpack.c.h.bf16 %v7297_v49 }
 0x11a   : > { %v7422_v43 = vpop.trf.xlu0 }
 0x11b   : > { %v1295_v35 = vpack.c.bf16 %v971_v15, %v962_v3  ;;  %9850 = vst [vmem:[#allocation15_spill] sm:$0xff] %v7422_v43  ;;  %2346 = vmatmul.bf16.gmra.mxu2 %v7422_v43  ;;  %v1081_v3 = vmul.f32 %v6417_v56, %v701_v16  ;;  %v1090_v15 = vmul.f32 %v6417_v56, %v710_v63 }
 0x11c   : > { %v1183_v16 = vmul.f32 %v6783_v34, %v803_v7  ;;  %2362 = vmatpush.bf16.xpose.msra.mxu3 %v1276_v53 }
 0x11d   : > { %v1351_v9 = vpack.c.bf16 %v1090_v15, %v1081_v3  ;;  %2150 = vxpose.xlu0.c.b16.cont [7/8] (narrow) %v7050_v36, 64 }
 0x11e   : > { %5899 = vmatpush.lsf.bf16.msrb.mxu0 %v6142_v37  ;;  %v6145_v37 = vld [vmem:[%s9799_s1 + $0x98] sm:$0xff] }
 0x11f   : > { %6007 = vmatpush.lsf.bf16.msrb.mxu2 %v6143_v31  ;;  %v573_v31 = vunpack.c.l.bf16 %v349_v24 }
 0x121   : > { %v953_v49 = vmul.f32 %v7155_v12, %v573_v31 }
 0x122   : > { %5900 = vmatpush.lsf.bf16.msrb.mxu0 %v6144_v46  ;;  %v1053_v46 = vmul.f32 %v6423_v59, %v673_v33  ;;  %v683_v33 = vunpack.c.h.bf16 %v7346_v54  ;;  %v7464_v31 = vpop.trf.xlu0  ;;  %v7471_v54 = vld [vmem:[%s9800_s2 + $0x400] sm:$0xff] }
 0x123   : > { %2443 = vmatpush.bf16.xpose.msra.mxu2 %v1369_v1  ;;  %v7420_v1 = vpop.trf.xlu1  ;;  %v1286_v24 = vpack.c.bf16 %v953_v49, %v944_v21  ;;  %2267 = vmatmul.bf16.gmra.mxu3 %v7464_v31  ;;  %v329_v21 = vld [vmem:[%s9800_s2 + $0x44] sm:$0xf]  ;;  %v776_v15 = vunpack.c.l.bf16 %v7471_v54 }
 0x124   : > { %9849 = vst [vmem:[#allocation14_spill] sm:$0xff] %v7420_v1  ;;  %2290 = vmatmul.bf16.gmra.mxu0 %v7420_v1  ;;  %v1332_v50 = vpack.c.bf16 %v1053_v46, %v1044_v60  ;;  %v324_v46 = vld [vmem:[%s9800_s2 + $0x20] sm:$0xf]  ;;  %v1063_v49 = vmul.f32 %v6417_v56, %v683_v33 }
 0x126   : > { %2387 = vmatpush.bf16.xpose.msra.mxu0 %v1304_v26  ;;  %v1360_v26 = vpack.c.bf16 %v1108_v0, %v1099_v58  ;;  %v334_v58 = vld [vmem:[%s9800_s2 + $0x68] sm:$0xf]  ;;  %v339_v0 = vld [vmem:[%s9800_s2 + $0x8c] sm:$0xf]  ;;  %2419 = vmatpush.bf16.xpose.msra.mxu1 %v1332_v50  ;;  %v528_v50 = vunpack.c.l.bf16 %v324_v46  ;;  %v7525_v46 = vld [vmem:[%s9800_s2 + $0x3dc] sm:$0xff] }
 0x127   : > { %v555_v18 = vunpack.c.l.bf16 %v339_v0  ;;  %v471_v0 = vld [vmem:[%s9800_s2 + $0x440] sm:$0xff] }
 0x129   : > { %v935_v60 = vmul.f32 %v7155_v12, %v555_v18 }
 0x12b   : > { %2444 = vmatpush.bf16.xpose.msra.mxu2 %v1360_v26  ;;  %v7459_v52 = vpop.trf.xlu1  ;;  %v1174_v26 = vmul.f32 %v6783_v34, %v794_v14  ;;  %v537_v14 = vunpack.c.l.bf16 %v329_v21  ;;  %v9853_v21 = vpack.c.bf16 %v7333_v47, %v7330_v22  ;;  %v7543_v22 = vpop.f32.mrf.mxu1 }
 0x12d   : > { %v1399_v53 = vpack.c.bf16 %v1183_v16, %v1174_v26  ;;  %5949 = vmatmul.lmr.bf16.vlgmr.msra.gmra.8.mxu1  ;;  %v908_v26 = vmul.f32 %v7155_v12, %v528_v50  ;;  %2363 = vmatpush.bf16.xpose.msra.mxu3 %v9853_v21  ;;  %v7540_v50 = vld [vmem:[%s9800_s2 + $0x41c] sm:$0xff] }
 0x12e   : > { %5901 = vmatpush.lsf.bf16.msrb.mxu0 %v6145_v37  ;;  %v546_v37 = vunpack.c.l.bf16 %v334_v58  ;;  %2151 = vxpose.xlu0.c.b16.end [8/8] (narrow) %v7040_v19, 64 }
 0x12f   : > { %2524 = vmatpush.bf16.xpose.msra.mxu1 %v1399_v53  ;;  %v7535_v53 = vld [vmem:[%s9800_s2 + $0x3f8] sm:$0xff] }
 0x130   : > { %v926_v63 = vmul.f32 %v7155_v12, %v546_v37  ;;  %v674_v37 = vunpack.c.h.bf16 %v7397_v29  ;;  %v774_v17 = vunpack.c.l.bf16 %v7535_v53 }
 0x132   : > { %2388 = vmatpush.bf16.xpose.msra.mxu0 %v1295_v35  ;;  %v692_v35 = vunpack.c.h.bf16 %v7351_v51  ;;  %v7476_v51 = vld [vmem:[%s9800_s2 + $0x424] sm:$0xff]  ;;  %v1277_v7 = vpack.c.bf16 %v935_v60, %v926_v63  ;;  %v1054_v16 = vmul.f32 %v6417_v56, %v674_v37  ;;  %v2169_v63 = vpop.f32.mrf.mxu0  ;;  %v7520_v60 = vld [vmem:[%s9800_s2 + $0x3b8] sm:$0xff]  ;;  %v793_v37 = vunpack.c.h.bf16 %v471_v0 }
 0x133   : > { %2445 = vmatpush.bf16.xpose.msra.mxu2 %v1351_v9  ;;  %v785_v58 = vunpack.c.l.bf16 %v7476_v51  ;;  %v792_v9 = vunpack.c.l.bf16 %v471_v0  ;;  %v1154_v21 = vmul.f32 %v6420_v57, %v774_v17 }
 0x134   : > { %v1072_v3 = vmul.f32 %v6417_v56, %v692_v35  ;;  %v7505_v35 = vpop.trf.xlu1  ;;  %2364 = vmatmul.bf16.vlgmr.msra.gmra.mxu3 %v7164_v28  ;;  %v1173_v0 = vmul.f32 %v6673_v55, %v793_v37 }
 0x135   : > { %9851 = vst [vmem:[#allocation16_spill] sm:$0xff] %v7505_v35  ;;  %v1165_v27 = vmul.f32 %v6783_v34, %v785_v58  ;;  %2295 = vmatmul.bf16.gmra.mxu0 %v7505_v35  ;;  %5950 = vmatmul.lmr.bf16.gmra.8.mxu1 }
 0x136   : > { %v1342_v18 = vpack.c.bf16 %v1072_v3, %v1063_v49  ;;  %v1172_v49 = vmul.f32 %v6420_v57, %v792_v9 }
 0x13a   : > { %5902 = vmatpush.lsf.bf16.msrb.mxu0 %v6146_v11  ;;  %v476_v11 = vld [vmem:[%s9800_s2 + $0x464] sm:$0xff] }
 0x13b   : > { %v801_v33 = vunpack.c.l.bf16 %v476_v11  ;;  %2446 = vmatpush.bf16.xpose.msra.mxu2 %v1342_v18  ;;  %v802_v18 = vunpack.c.h.bf16 %v476_v11 }
 0x13d   : > { %v1181_v3 = vmul.f32 %v6420_v57, %v801_v33  ;;  %v1182_v11 = vmul.f32 %v6673_v55, %v802_v18  ;;  %v777_v18 = vunpack.c.h.bf16 %v7471_v54  ;;  %5951 = vmatmul.lmr.bf16.gmra.8.mxu1 }
 0x13e   : > { %5903 = vmatpush.lsf.bf16.msrb.mxu0 %v6147_v13  ;;  %v1156_v13 = vmul.f32 %v6783_v34, %v776_v15  ;;  %v2198_v15 = vadd.f32 %v2197_v40, %v2169_v63  ;;  %v767_v40 = vunpack.c.l.bf16 %v7525_v46  ;;  %v783_v63 = vunpack.c.l.bf16 %v7540_v50 }
 0x13f   : > { %v1398_v37 = vpack.c.bf16 %v1182_v11, %v1173_v0  ;;  %v1157_v54 = vmul.f32 %v6744_v23, %v777_v18 }
 0x140   : > { %v1390_v58 = vpack.c.bf16 %v1165_v27, %v1156_v13  ;;  %v795_v27 = vunpack.c.h.bf16 %v7433_v5  ;;  %v1397_v13 = vpack.c.bf16 %v1181_v3, %v1172_v49  ;;  %v1163_v49 = vmul.f32 %v6420_v57, %v783_v63  ;;  %v7572_v3 = vpop.f32.mrf.mxu0 }
 0x142   : > { %2389 = vmatpush.bf16.xpose.msra.mxu0 %v1286_v24  ;;  %v665_v24 = vunpack.c.h.bf16 %v7392_v61  ;;  %v917_v61 = vmul.f32 %v7155_v12, %v537_v14  ;;  %v758_v14 = vunpack.c.l.bf16 %v7520_v60  ;;  %2525 = vmatpush.bf16.xpose.msra.mxu1 %v1390_v58  ;;  %v1175_v5 = vmul.f32 %v6744_v23, %v795_v27  ;;  %v7582_v58 = vld [vmem:[%s9800_s2 + $0x3d4] sm:$0xff] }
 0x143   : > { %2468 = vmatpush.bf16.xpose.msra.mxu3 %v1397_v13  ;;  %v786_v13 = vunpack.c.h.bf16 %v7476_v51  ;;  %v765_v63 = vunpack.c.l.bf16 %v7582_v58  ;;  %v7600_v51 = vld [vmem:[%s9800_s2 + $0x328] sm:$0xff]  ;;  %v766_v43 = vunpack.c.h.bf16 %v7582_v58 }
 0x144   : > { %v1045_v29 = vmul.f32 %v6417_v56, %v665_v24  ;;  %v1268_v47 = vpack.c.bf16 %v917_v61, %v908_v26  ;;  %v804_v24 = vunpack.c.h.bf16 %v7438_v6  ;;  %v1138_v26 = vmul.f32 %v6783_v34, %v758_v14  ;;  %2369 = vmatmul.bf16.gmra.mxu3 %v7271_v42 }
 0x145   : > { %v1147_v61 = vmul.f32 %v6783_v34, %v767_v40  ;;  %v1145_v0 = vmul.f32 %v6420_v57, %v765_v63  ;;  %v722_v18 = vunpack.c.l.bf16 %v7600_v51  ;;  %v768_v63 = vunpack.c.h.bf16 %v7525_v46  ;;  %5952 = vmatmul.lmr.bf16.gmra.8.mxu1 }
 0x146   : > { %v1333_v33 = vpack.c.bf16 %v1054_v16, %v1045_v29  ;;  %v1184_v6 = vmul.f32 %v6744_v23, %v804_v24  ;;  %v7563_v29 = vld [vmem:[%s9800_s2 + $0x370] sm:$0xff] }
 0x147   : > { %v7568_v16 = vld [vmem:[%s9800_s2 + $0x394] sm:$0xff]  ;;  %v1381_v14 = vpack.c.bf16 %v1147_v61, %v1138_v26  ;;  %v740_v40 = vunpack.c.l.bf16 %v7563_v29  ;;  %v775_v26 = vunpack.c.h.bf16 %v7535_v53  ;;  %v784_v61 = vunpack.c.h.bf16 %v7540_v50  ;;  %v7605_v53 = vld [vmem:[%s9800_s2 + $0x34c] sm:$0xff] }
 0x148   : > { %2447 = vmatpush.bf16.xpose.msra.mxu2 %v1333_v33  ;;  %v749_v27 = vunpack.c.l.bf16 %v7568_v16  ;;  %v1400_v24 = vpack.c.bf16 %v1184_v6, %v1175_v5  ;;  %v1388_v33 = vpack.c.bf16 %v1163_v49, %v1154_v21  ;;  %v1166_v50 = vmul.f32 %v6744_v23, %v786_v13  ;;  %v2174_v11 = vpop.f32.mrf.mxu0  ;;  %v3176_v13 = vld [vmem:[%s9803_s5] sm:$0xff] }
 0x149   : > { %v1120_v56 = vmul.f32 %v6783_v34, %v740_v40  ;;  %v1155_v21 = vmul.f32 %v6673_v55, %v775_v26  ;;  %v1164_v49 = vmul.f32 %v6673_v55, %v784_v61  ;;  %v7615_v40 = vld [vmem:[%s9800_s2 + $0x368] sm:$0xff]  ;;  %3216 = vxpose.xlu1.b32.start [1/16] (narrow) %v3176_v13, 56 }
 0x14a   : > { %5904 = vmatpush.lsf.bf16.msrb.mxu0 %v6148_v62  ;;  %v7509_v62 = vpop.trf.xlu0  ;;  %2526 = vmatpush.bf16.xpose.msra.mxu1 %v1381_v14  ;;  %v1129_v5 = vmul.f32 %v6783_v34, %v749_v27  ;;  %v7620_v27 = vld [vmem:[%s9800_s2 + $0x38c] sm:$0xff]  ;;  %v1391_v36 = vpack.c.bf16 %v1166_v50, %v1157_v54  ;;  %v1148_v50 = vmul.f32 %v6744_v23, %v768_v63 }
 0x14b   : > { %9852 = vst [vmem:[#allocation17_spill] sm:$0xff] %v7509_v62  ;;  %2351 = vmatmul.bf16.gmra.mxu2 %v7509_v62  ;;  %2469 = vmatpush.bf16.xpose.msra.mxu3 %v1388_v33  ;;  %v731_v33 = vunpack.c.l.bf16 %v7605_v53  ;;  %v748_v42 = vunpack.c.h.bf16 %v7620_v27 }
 0x14d   : > { %v1111_v46 = vmul.f32 %v6783_v34, %v731_v33  ;;  %5953 = vmatmul.lmr.bf16.gmra.8.mxu1 }
 0x14e   : > { %2390 = vmatpush.bf16.xpose.msra.mxu0 %v1277_v7  ;;  %v2225_v7 = vpop.f32.mrf.mxu2 }
 0x14f   : > { %v7549_v9 = vadd.f32 %v2225_v7, %v2198_v15  ;;  %v7577_v15 = vld [vmem:[%s9800_s2 + $0x3b0] sm:$0xff] }
 0x150   : > { %v756_v17 = vunpack.c.l.bf16 %v7577_v15  ;;  %v757_v62 = vunpack.c.h.bf16 %v7577_v15  ;;  %v7651_v15 = vld [vmem:[%s9800_s2 + $0x304] sm:$0xff] }
 0x152   : > { %v1136_v6 = vmul.f32 %v6420_v57, %v756_v17  ;;  %v759_v17 = vunpack.c.h.bf16 %v7520_v60  ;;  %v1102_v60 = vmul.f32 %v6783_v34, %v722_v18  ;;  %v7667_v18 = vld [vmem:[%s9800_s2 + $0x344] sm:$0xff] }
 0x153   : > { %v730_v28 = vunpack.c.h.bf16 %v7667_v18 }
 0x154   : > { %v1379_v61 = vpack.c.bf16 %v1145_v0, %v1136_v6  ;;  %v1139_v54 = vmul.f32 %v6744_v23, %v759_v17  ;;  %v7646_v6 = vld [vmem:[%s9800_s2 + $0x2e0] sm:$0xff]  ;;  %v713_v17 = vunpack.c.l.bf16 %v7651_v15  ;;  %2374 = vmatmul.bf16.gmra.mxu3 %v7377_v48 }
 0x155   : > { %v704_v13 = vunpack.c.l.bf16 %v7646_v6  ;;  %5954 = vmatmul.lmr.bf16.gmra.8.mxu1 }
 0x156   : > { %2391 = vmatpush.bf16.xpose.msra.mxu0 %v1268_v47  ;;  %v2202_v47 = vpop.f32.mrf.mxu1  ;;  %v7586_v7 = vpop.f32.mrf.mxu2  ;;  %2470 = vmatpush.bf16.xpose.msra.mxu3 %v1379_v61 }
 0x157   : > { %v2203_v14 = vadd.f32 %v2202_v47, %v2174_v11  ;;  %v1389_v11 = vpack.c.bf16 %v1164_v49, %v1155_v21  ;;  %v7655_v21 = vpop.f32.mrf.mxu0  ;;  %v1137_v49 = vmul.f32 %v6673_v55, %v757_v62  ;;  %v1382_v62 = vpack.c.bf16 %v1148_v50, %v1139_v54 }
 0x158   : > { %v1084_v54 = vmul.f32 %v6783_v34, %v704_v13 }
 0x15b   : > { %5992 = vmatmul.lmr.bf16.vlgmr.msra.gmra.8.mxu2 }
 0x15c   : > { %2552 = vmatpush.bf16.xpose.msra.mxu2 %v1400_v24 }
 0x15d   : > { %5889 = vmatmul.lmr.bf16.vlgmr.msra.gmra.8.mxu0  ;;  %5955 = vmatmul.lmr.bf16.gmra.8.mxu1 }
 0x15e   : > { %2496 = vmatpush.bf16.xpose.msra.mxu0 %v1398_v37  ;;  %v7623_v24 = vpop.f32.mrf.mxu1  ;;  %v1372_v37 = vpack.c.bf16 %v1129_v5, %v1120_v56  ;;  %v2230_v47 = vpop.f32.mrf.mxu2  ;;  %v738_v56 = vunpack.c.l.bf16 %v7615_v40  ;;  %v747_v5 = vunpack.c.l.bf16 %v7620_v27 }
 0x15f   : > { %v7632_v26 = vadd.f32 %v2230_v47, %v2203_v14  ;;  %v1146_v14 = vmul.f32 %v6673_v55, %v766_v43  ;;  %v1363_v47 = vpack.c.bf16 %v1111_v46, %v1102_v60  ;;  %v3177_v43 = vld [vmem:[%s9803_s5 + $0x8] sm:$0xff]  ;;  %v739_v46 = vunpack.c.h.bf16 %v7615_v40  ;;  %v7693_v40 = vld [vmem:[%s9800_s2 + $0x2bc] sm:$0xff] }
 0x160   : > { %2527 = vmatpush.bf16.xpose.msra.mxu1 %v1372_v37  ;;  %v1118_v58 = vmul.f32 %v6420_v57, %v738_v56  ;;  %v1127_v0 = vmul.f32 %v6420_v57, %v747_v5  ;;  %v7662_v37 = vld [vmem:[%s9800_s2 + $0x320] sm:$0xff]  ;;  %3217 = vxpose.xlu1.b32.cont [2/16] (narrow) %v3177_v43, 56  ;;  %v750_v56 = vunpack.c.h.bf16 %v7568_v16  ;;  %v7688_v16 = vld [vmem:[%s9800_s2 + $0x298] sm:$0xff] }
 0x161   : > { %v720_v5 = vunpack.c.l.bf16 %v7662_v37  ;;  %v1380_v60 = vpack.c.bf16 %v1146_v14, %v1137_v49  ;;  %v2179_v49 = vpop.f32.mrf.mxu0  ;;  %v1119_v14 = vmul.f32 %v6673_v55, %v739_v46  ;;  %v7708_v43 = vld [vmem:[%s9800_s2 + $0x2fc] sm:$0xff]  ;;  %v721_v4 = vunpack.c.h.bf16 %v7662_v37  ;;  %v7739_v37 = vld [vmem:[%s9800_s2 + $0x274] sm:$0xff] }
 0x162   : > { %v1370_v61 = vpack.c.bf16 %v1127_v0, %v1118_v58  ;;  %v1130_v27 = vmul.f32 %v6744_v23, %v750_v56  ;;  %v3178_v56 = vld [vmem:[%s9803_s5 + $0x10] sm:$0xff] }
 0x163   : > { %5993 = vmatmul.lmr.bf16.gmra.8.mxu2  ;;  %v1100_v58 = vmul.f32 %v6420_v57, %v720_v5  ;;  %v723_v5 = vunpack.c.h.bf16 %v7600_v51 }
 0x164   : > { %2553 = vmatpush.bf16.xpose.msra.mxu2 %v1391_v36  ;;  %v741_v36 = vunpack.c.h.bf16 %v7563_v29  ;;  %v1093_v29 = vmul.f32 %v6783_v34, %v713_v17  ;;  %2471 = vmatpush.bf16.xpose.msra.mxu3 %v1370_v61  ;;  %v7703_v17 = vld [vmem:[%s9800_s2 + $0x2d8] sm:$0xff]  ;;  %v686_v61 = vunpack.c.l.bf16 %v7688_v16 }
 0x165   : > { %5890 = vmatmul.lmr.bf16.gmra.8.mxu0  ;;  %5956 = vmatmul.lmr.bf16.gmra.8.mxu1 }
 0x166   : > { %2497 = vmatpush.bf16.xpose.msra.mxu0 %v1389_v11  ;;  %v2207_v33 = vpop.f32.mrf.mxu1  ;;  %v7671_v63 = vpop.f32.mrf.mxu2  ;;  %v729_v11 = vunpack.c.l.bf16 %v7667_v18  ;;  %v1121_v50 = vmul.f32 %v6744_v23, %v741_v36  ;;  %v1354_v36 = vpack.c.bf16 %v1093_v29, %v1084_v54  ;;  %v702_v54 = vunpack.c.l.bf16 %v7703_v17  ;;  %2379 = vmatmul.bf16.gmra.mxu3 %v7459_v52 }
 0x167   : > { %v2208_v13 = vadd.f32 %v2207_v33, %v2179_v49  ;;  %v711_v29 = vunpack.c.l.bf16 %v7708_v43  ;;  %v1066_v51 = vmul.f32 %v6783_v34, %v686_v61  ;;  %v7755_v61 = vld [vmem:[%s9800_s2 + $0x2b4] sm:$0xff] }
 0x168   : > { %2528 = vmatpush.bf16.xpose.msra.mxu1 %v1363_v47  ;;  %v1109_v0 = vmul.f32 %v6420_v57, %v729_v11  ;;  %v1128_v47 = vmul.f32 %v6673_v55, %v748_v42  ;;  %v695_v42 = vunpack.c.l.bf16 %v7693_v40  ;;  %v732_v11 = vunpack.c.h.bf16 %v7605_v53  ;;  %3218 = vxpose.xlu1.b32.cont [3/16] (narrow) %v3178_v56, 56 }
 0x169   : > { %v1373_v19 = vpack.c.bf16 %v1130_v27, %v1121_v50  ;;  %v1103_v50 = vmul.f32 %v6744_v23, %v723_v5  ;;  %v1082_v18 = vmul.f32 %v6420_v57, %v702_v54  ;;  %v677_v5 = vunpack.c.l.bf16 %v7739_v37 }
 0x16a   : > { %v1361_v46 = vpack.c.bf16 %v1109_v0, %v1100_v58  ;;  %v1371_v49 = vpack.c.bf16 %v1128_v47, %v1119_v14  ;;  %v1075_v53 = vmul.f32 %v6783_v34, %v695_v42  ;;  %v1112_v27 = vmul.f32 %v6744_v23, %v732_v11  ;;  %v7734_v58 = vld [vmem:[%s9800_s2 + $0x250] sm:$0xff]  ;;  %v7743_v14 = vpop.f32.mrf.mxu0 }
 0x16b   : > { %5994 = vmatmul.lmr.bf16.gmra.8.mxu2  ;;  %v1091_v0 = vmul.f32 %v6420_v57, %v711_v29  ;;  %v1101_v47 = vmul.f32 %v6673_v55, %v721_v4  ;;  %v668_v56 = vunpack.c.l.bf16 %v7734_v58  ;;  %v714_v54 = vunpack.c.h.bf16 %v7651_v15 }
 0x16c   : > { %2554 = vmatpush.bf16.xpose.msra.mxu2 %v1382_v62  ;;  %2472 = vmatpush.bf16.xpose.msra.mxu3 %v1361_v46  ;;  %v1364_v4 = vpack.c.bf16 %v1112_v27, %v1103_v50  ;;  %v712_v50 = vunpack.c.h.bf16 %v7708_v43  ;;  %v1057_v27 = vmul.f32 %v6783_v34, %v677_v5 }
 0x16d   : > { %5891 = vmatmul.lmr.bf16.gmra.8.mxu0  ;;  %v1352_v46 = vpack.c.bf16 %v1091_v0, %v1082_v18  ;;  %v474_v18 = vld [vmem:[%s9800_s2 + $0x458] sm:$0xf]  ;;  %v479_v0 = vld [vmem:[%s9800_s2 + $0x47c] sm:$0xf] }
 0x16e   : > { %2498 = vmatpush.bf16.xpose.msra.mxu0 %v1380_v60  ;;  %v7711_v62 = vpop.f32.mrf.mxu1  ;;  %v2235_v33 = vpop.f32.mrf.mxu2 }
 0x16f   : > { %v7720_v60 = vadd.f32 %v2235_v33, %v2208_v13  ;;  %v1110_v13 = vmul.f32 %v6673_v55, %v730_v28  ;;  %v1345_v33 = vpack.c.bf16 %v1075_v53, %v1066_v51  ;;  %v705_v28 = vunpack.c.h.bf16 %v7646_v6 }
 0x170   : > { %2529 = vmatpush.bf16.xpose.msra.mxu1 %v1354_v36  ;;  %v7750_v36 = vld [vmem:[%s9800_s2 + $0x290] sm:$0xff]  ;;  %v703_v53 = vunpack.c.h.bf16 %v7703_v17  ;;  %v1048_v6 = vmul.f32 %v6783_v34, %v668_v56  ;;  %v1094_v17 = vmul.f32 %v6744_v23, %v714_v54  ;;  %v1092_v56 = vmul.f32 %v6673_v55, %v712_v50  ;;  %v3180_v50 = vld [vmem:[%s9803_s5 + $0x20] sm:$0xff] }
 0x171   : > { %v684_v29 = vunpack.c.l.bf16 %v7750_v36  ;;  %v1362_v51 = vpack.c.bf16 %v1110_v13, %v1101_v47  ;;  %v1085_v15 = vmul.f32 %v6744_v23, %v705_v28  ;;  %v7787_v28 = vld [vmem:[%s9800_s2 + $0x248] sm:$0xff]  ;;  %v798_v54 = vunpack.c.l.bf16 %v474_v18 }
 0x172   : > { %v2184_v13 = vpop.f32.mrf.mxu0  ;;  %v666_v48 = vunpack.c.l.bf16 %v7787_v28 }
 0x173   : > { %5995 = vmatmul.lmr.bf16.gmra.8.mxu2  ;;  %v1064_v43 = vmul.f32 %v6420_v57, %v684_v29  ;;  %v807_v29 = vunpack.c.l.bf16 %v479_v0 }
 0x174   : > { %2555 = vmatpush.bf16.xpose.msra.mxu2 %v1373_v19  ;;  %v3179_v19 = vld [vmem:[%s9803_s5 + $0x18] sm:$0xff]  ;;  %2473 = vmatpush.bf16.xpose.msra.mxu3 %v1352_v46  ;;  %v1336_v46 = vpack.c.bf16 %v1057_v27, %v1048_v6  ;;  %v685_v27 = vunpack.c.h.bf16 %v7750_v36  ;;  %v469_v36 = vld [vmem:[%s9800_s2 + $0x434] sm:$0xf] }
 0x175   : > { %5892 = vmatmul.lmr.bf16.gmra.8.mxu0  ;;  %3219 = vxpose.xlu1.b32.cont [4/16] (narrow) %v3179_v19, 56  ;;  %v1187_v18 = vmul.f32 %v7155_v12, %v807_v29  ;;  %v789_v29 = vunpack.c.l.bf16 %v469_v36 }
 0x176   : > { %2499 = vmatpush.bf16.xpose.msra.mxu0 %v1371_v49  ;;  %v2212_v42 = vpop.f32.mrf.mxu1  ;;  %v7759_v11 = vpop.f32.mrf.mxu2  ;;  %v693_v49 = vunpack.c.l.bf16 %v7755_v61 }
 0x177   : > { %v2213_v5 = vadd.f32 %v2212_v42, %v2184_v13  ;;  %v1355_v13 = vpack.c.bf16 %v1094_v17, %v1085_v15  ;;  %v464_v17 = vld [vmem:[%s9800_s2 + $0x410] sm:$0xf] }
 0x178   : > { %2530 = vmatpush.bf16.xpose.msra.mxu1 %v1345_v33  ;;  %v1073_v47 = vmul.f32 %v6420_v57, %v693_v49  ;;  %v1083_v33 = vmul.f32 %v6673_v55, %v703_v53  ;;  %v696_v53 = vunpack.c.h.bf16 %v7693_v40  ;;  %v1178_v40 = vmul.f32 %v7155_v12, %v798_v54 }
 0x17a   : > { %v1343_v34 = vpack.c.bf16 %v1073_v47, %v1064_v43  ;;  %v1353_v6 = vpack.c.bf16 %v1092_v56, %v1083_v33  ;;  %v1076_v0 = vmul.f32 %v6744_v23, %v696_v53  ;;  %v2186_v47 = vpop.f32.mrf.mxu0  ;;  %v1065_v33 = vmul.f32 %v6673_v55, %v685_v27 }
 0x17b   : > { %5996 = vmatmul.lmr.bf16.gmra.8.mxu2  ;;  %v669_v53 = vunpack.c.h.bf16 %v7734_v58 }
 0x17c   : > { %2556 = vmatpush.bf16.xpose.msra.mxu2 %v1364_v4  ;;  %v7792_v4 = vld [vmem:[%s9800_s2 + $0x26c] sm:$0xff]  ;;  %2474 = vmatpush.bf16.xpose.msra.mxu3 %v1343_v34  ;;  %v7828_v34 = vpack.c.bf16 %v1187_v18, %v1178_v40  ;;  %v667_v40 = vunpack.c.h.bf16 %v7787_v28 }
 0x17d   : > { %5893 = vmatmul.lmr.bf16.gmra.8.mxu0  ;;  %3220 = vxpose.xlu1.b32.cont [5/16] (narrow) %v3180_v50, 56  ;;  %v3181_v50 = vld [vmem:[%s9803_s5 + $0x28] sm:$0xff]  ;;  %v676_v18 = vunpack.c.h.bf16 %v7792_v4 }
 0x17e   : > { %2500 = vmatpush.bf16.xpose.msra.mxu0 %v1362_v51  ;;  %v2214_v19 = vpop.f32.mrf.mxu1  ;;  %v2240_v49 = vpop.f32.mrf.mxu2  ;;  %v687_v51 = vunpack.c.h.bf16 %v7688_v16  ;;  %v694_v16 = vunpack.c.h.bf16 %v7755_v61  ;;  %v1046_v61 = vmul.f32 %v6420_v57, %v666_v48  ;;  %v780_v48 = vunpack.c.l.bf16 %v464_v17  ;;  %v459_v28 = vld [vmem:[%s9800_s2 + $0x3ec] sm:$0xf] }
 0x17f   : > { %v7796_v42 = vadd.f32 %v2240_v49, %v2213_v5  ;;  %v675_v19 = vunpack.c.l.bf16 %v7792_v4  ;;  %v473_v5 = vld [vmem:[%s9800_s2 + $0x450] sm:$0xff] }
 0x180   : > { %2531 = vmatpush.bf16.xpose.msra.mxu1 %v1336_v46  ;;  %v1067_v15 = vmul.f32 %v6744_v23, %v687_v51  ;;  %v1074_v56 = vmul.f32 %v6673_v55, %v694_v16  ;;  %v478_v46 = vld [vmem:[%s9800_s2 + $0x474] sm:$0xff]  ;;  %v1160_v58 = vmul.f32 %v7155_v12, %v780_v48  ;;  %v771_v48 = vunpack.c.l.bf16 %v459_v28 }
 0x181   : > { %v1055_v43 = vmul.f32 %v6420_v57, %v675_v19  ;;  %v678_v19 = vunpack.c.h.bf16 %v7739_v37  ;;  %v805_v27 = vunpack.c.l.bf16 %v478_v46  ;;  %v1049_v37 = vmul.f32 %v6744_v23, %v669_v53 }
 0x182   : > { %v1346_v51 = vpack.c.bf16 %v1076_v0, %v1067_v15  ;;  %v1344_v16 = vpack.c.bf16 %v1074_v56, %v1065_v33  ;;  %v1169_v15 = vmul.f32 %v7155_v12, %v789_v29  ;;  %v454_v0 = vld [vmem:[%s9800_s2 + $0x3c8] sm:$0xf] }
 0x183   : > { %5997 = vmatmul.lmr.bf16.gmra.8.mxu2  ;;  %v1058_v4 = vmul.f32 %v6744_v23, %v678_v19  ;;  %v1185_v36 = vmul.f32 %v6756_v20, %v805_v27  ;;  %v762_v56 = vunpack.c.l.bf16 %v454_v0  ;;  %v463_v29 = vld [vmem:[%s9800_s2 + $0x408] sm:$0xff]  ;;  %v806_v19 = vunpack.c.h.bf16 %v478_v46 }
 0x184   : > { %2557 = vmatpush.bf16.xpose.msra.mxu2 %v1355_v13  ;;  %v1334_v13 = vpack.c.bf16 %v1055_v43, %v1046_v61  ;;  %v1047_v61 = vmul.f32 %v6673_v55, %v667_v40  ;;  %v1056_v43 = vmul.f32 %v6673_v55, %v676_v18  ;;  %v7855_v33 = vpack.c.bf16 %v1169_v15, %v1160_v58  ;;  %v444_v58 = vld [vmem:[%s9800_s2 + $0x380] sm:$0xf] }
 0x185   : > { %5894 = vmatmul.lmr.bf16.gmra.8.mxu0  ;;  %3221 = vxpose.xlu1.b32.cont [6/16] (narrow) %v3181_v50, 56  ;;  %v1337_v53 = vpack.c.bf16 %v1058_v4, %v1049_v37  ;;  %v778_v27 = vunpack.c.l.bf16 %v463_v29  ;;  %v1142_v40 = vmul.f32 %v7155_v12, %v762_v56  ;;  %v1151_v18 = vmul.f32 %v7155_v12, %v771_v48  ;;  %v2253_v4 = vpop.f32.mrf.mxu3  ;;  %v7891_v56 = vld [vmem:[%s9800_s2 + $0x3e4] sm:$0xff] }
 0x186   : > { %2501 = vmatpush.bf16.xpose.msra.mxu0 %v1353_v6  ;;  %v7826_v54 = vpop.f32.mrf.mxu1  ;;  %v2242_v49 = vpop.f32.mrf.mxu2  ;;  %v796_v6 = vunpack.c.l.bf16 %v473_v5  ;;  %2475 = vmatpush.bf16.xpose.msra.mxu3 %v1334_v13  ;;  %v797_v13 = vunpack.c.h.bf16 %v473_v5  ;;  %v449_v5 = vld [vmem:[%s9800_s2 + $0x3a4] sm:$0xf]  ;;  %v1186_v15 = vmul.f32 %v6972_v44, %v806_v19  ;;  %v2254_v48 = vadd.f32 %v2253_v4, %v7549_v9 }
 0x187   : > { %2532 = vmatmul.bf16.vlgmr.msra.gmra.mxu1 %v7218_v32  ;;  %v468_v49 = vld [vmem:[%s9800_s2 + $0x42c] sm:$0xff]  ;;  %v1158_v37 = vmul.f32 %v6756_v20, %v778_v27  ;;  %v779_v19 = vunpack.c.h.bf16 %v463_v29  ;;  %v769_v9 = vunpack.c.l.bf16 %v7891_v56  ;;  %v439_v29 = vld [vmem:[%s9800_s2 + $0x35c] sm:$0xf] }
 0x188   : > { %2636 = vmatpush.bf16.xpose.msra.mxu1 %v7828_v34  ;;  %v1176_v17 = vmul.f32 %v6756_v20, %v796_v6  ;;  %v1335_v6 = vpack.c.bf16 %v1056_v43, %v1047_v61  ;;  %v1177_v46 = vmul.f32 %v6972_v44, %v797_v13  ;;  %v753_v61 = vunpack.c.l.bf16 %v449_v5  ;;  %v7886_v43 = vld [vmem:[%s9800_s2 + $0x3c0] sm:$0xff] }
 0x18a   : > { %v1401_v50 = vpack.c.bf16 %v1185_v36, %v1176_v17  ;;  %v7881_v17 = vpack.c.bf16 %v1151_v18, %v1142_v40  ;;  %v744_v36 = vunpack.c.l.bf16 %v444_v58  ;;  %v1402_v13 = vpack.c.bf16 %v1186_v15, %v1177_v46 }
 0x18b   : > { %5998 = vmatmul.lmr.bf16.gmra.8.mxu2  ;;  %v760_v40 = vunpack.c.l.bf16 %v7886_v43  ;;  %v1133_v58 = vmul.f32 %v7155_v12, %v753_v61  ;;  %v1149_v15 = vmul.f32 %v6756_v20, %v769_v9  ;;  %v735_v61 = vunpack.c.l.bf16 %v439_v29 }
 0x18c   : > { %2558 = vmatpush.bf16.xpose.msra.mxu2 %v1346_v51  ;;  %v3182_v51 = vld [vmem:[%s9803_s5 + $0x30] sm:$0xff]  ;;  %v1124_v18 = vmul.f32 %v7155_v12, %v744_v36 }
 0x18d   : > { %5895 = vmatmul.lmr.bf16.gmra.8.mxu0  ;;  %3222 = vxpose.xlu1.b32.cont [7/16] (narrow) %v3182_v51, 56  ;;  %v2281_v51 = vpop.f32.mrf.mxu0  ;;  %v1115_v29 = vmul.f32 %v7155_v12, %v735_v61 }
 0x18e   : > { %2502 = vmatpush.bf16.xpose.msra.mxu0 %v1344_v16  ;;  %v7853_v47 = vpop.f32.mrf.mxu1  ;;  %v787_v16 = vunpack.c.l.bf16 %v468_v49  ;;  %6032 = vmatmul.lmr.bf16.vlgmr.msra.gmra.8.mxu3  ;;  %v2282_v27 = vadd.f32 %v2281_v51, %v2254_v48  ;;  %v7921_v4 = vpack.c.bf16 %v1133_v58, %v1124_v18  ;;  %v443_v48 = vld [vmem:[%s9800_s2 + $0x378] sm:$0xff] }
 0x18f   : > { %2580 = vmatpush.bf16.xpose.msra.mxu3 %v1401_v50  ;;  %v2200_v50 = vadd.f32 %v7543_v22, %v7572_v3  ;;  %v434_v3 = vld [vmem:[%s9800_s2 + $0x338] sm:$0xf]  ;;  %v742_v18 = vunpack.c.l.bf16 %v443_v48 }
 0x190   : > { %2637 = vmatpush.bf16.xpose.msra.mxu1 %v7855_v33  ;;  %v1167_v0 = vmul.f32 %v6756_v20, %v787_v16  ;;  %v2310_v22 = vadd.f32 %v7826_v54, %v2282_v27  ;;  %v1140_v54 = vmul.f32 %v6756_v20, %v760_v40  ;;  %v726_v36 = vunpack.c.l.bf16 %v434_v3 }
 0x191   : > { %v2228_v46 = vadd.f32 %v7586_v7, %v2200_v50  ;;  %v448_v7 = vld [vmem:[%s9800_s2 + $0x39c] sm:$0xff]  ;;  %v761_v27 = vunpack.c.h.bf16 %v7886_v43  ;;  %v424_v43 = vld [vmem:[%s9800_s2 + $0x2f0] sm:$0xf] }
 0x192   : > { %v1392_v16 = vpack.c.bf16 %v1167_v0, %v1158_v37  ;;  %v2255_v0 = vpop.f32.mrf.mxu3  ;;  %v1383_v9 = vpack.c.bf16 %v1149_v15, %v1140_v54  ;;  %v751_v58 = vunpack.c.l.bf16 %v448_v7  ;;  %v1106_v3 = vmul.f32 %v7155_v12, %v726_v36 }
 0x193   : > { %5999 = vmatmul.lmr.bf16.gmra.8.mxu2  ;;  %v2256_v51 = vadd.f32 %v2255_v0, %v2228_v46  ;;  %v1122_v46 = vmul.f32 %v6756_v20, %v742_v18  ;;  %v708_v36 = vunpack.c.l.bf16 %v424_v43  ;;  %v743_v18 = vunpack.c.h.bf16 %v443_v48 }
 0x194   : > { %2559 = vmatpush.bf16.xpose.msra.mxu2 %v1337_v53  ;;  %v3183_v53 = vld [vmem:[%s9803_s5 + $0x38] sm:$0xff]  ;;  %v1131_v54 = vmul.f32 %v6756_v20, %v751_v58  ;;  %v7952_v0 = vpack.c.bf16 %v1115_v29, %v1106_v3  ;;  %v752_v58 = vunpack.c.h.bf16 %v448_v7  ;;  %v414_v7 = vld [vmem:[%s9800_s2 + $0x2a8] sm:$0xf] }
 0x195   : > { %5896 = vmatmul.lmr.bf16.gmra.8.mxu0  ;;  %3223 = vxpose.xlu1.b32.cont [8/16] (narrow) %v3183_v53, 56  ;;  %v2337_v53 = vpop.f32.mrf.mxu2  ;;  %v2283_v50 = vpop.f32.mrf.mxu0 }
 0x196   : > { %2503 = vmatpush.bf16.xpose.msra.mxu0 %v1335_v6  ;;  %v7879_v28 = vpop.f32.mrf.mxu1  ;;  %v788_v6 = vunpack.c.h.bf16 %v468_v49  ;;  %6033 = vmatmul.lmr.bf16.gmra.8.mxu3  ;;  %v1159_v49 = vmul.f32 %v6972_v44, %v779_v19  ;;  %v7932_v19 = vadd.f32 %v2337_v53, %v2310_v22  ;;  %v2284_v40 = vadd.f32 %v2283_v50, %v2256_v51  ;;  %v7957_v51 = vld [vmem:[%s9800_s2 + $0x330] sm:$0xff] }
 0x197   : > { %2537 = vmatmul.bf16.gmra.mxu1 %v7327_v39  ;;  %2581 = vmatpush.bf16.xpose.msra.mxu3 %v1392_v16  ;;  %v770_v16 = vunpack.c.h.bf16 %v7891_v56  ;;  %v429_v56 = vld [vmem:[%s9800_s2 + $0x314] sm:$0xf]  ;;  %v2205_v50 = vadd.f32 %v7623_v24, %v7655_v21  ;;  %v1374_v29 = vpack.c.bf16 %v1131_v54, %v1122_v46  ;;  %v724_v24 = vunpack.c.l.bf16 %v7957_v51 }
 0x198   : > { %2638 = vmatpush.bf16.xpose.msra.mxu1 %v7881_v17  ;;  %v1168_v5 = vmul.f32 %v6972_v44, %v788_v6  ;;  %v2312_v22 = vadd.f32 %v7853_v47, %v2284_v40  ;;  %v717_v61 = vunpack.c.l.bf16 %v429_v56  ;;  %v7962_v53 = vld [vmem:[%s9800_s2 + $0x354] sm:$0xff]  ;;  %v1088_v21 = vmul.f32 %v7155_v12, %v708_v36 }
 0x199   : > { %v1123_v56 = vmul.f32 %v6972_v44, %v743_v18 }
 0x19a   : > { %6008 = vllmr.8.mxu2  ;;  %v1393_v6 = vpack.c.bf16 %v1168_v5, %v1159_v49  ;;  %v1141_v49 = vmul.f32 %v6972_v44, %v761_v27  ;;  %v1150_v5 = vmul.f32 %v6972_v44, %v770_v16  ;;  %v2258_v15 = vpop.f32.mrf.mxu3  ;;  %v3185_v16 = vld [vmem:[%s9803_s5 + $0x48] sm:$0xff]  ;;  %v1097_v43 = vmul.f32 %v7155_v12, %v717_v61 }
 0x19b   : > { %2560 = vmatmul.bf16.vlgmr.msra.gmra.mxu2 %v7096_v25  ;;  %v690_v61 = vunpack.c.l.bf16 %v414_v7 }
 0x19c   : > { %5905 = vllmr.8.mxu0  ;;  %5829 = vmatpush.bf16.xpose.msra.mxu2 %v1402_v13  ;;  %v7994_v36 = vpack.c.bf16 %v1097_v43, %v1088_v21 }
 0x19d   : > { %2504 = vmatmul.bf16.vlgmr.msra.gmra.mxu0 %v7173_v10  ;;  %v2286_v27 = vpop.f32.mrf.mxu0  ;;  %v1070_v7 = vmul.f32 %v7155_v12, %v690_v61 }
 0x19e   : > { %2608 = vmatpush.bf16.xpose.msra.mxu0 %v1402_v13  ;;  %v7919_v37 = vpop.f32.mrf.mxu1  ;;  %v3184_v13 = vld [vmem:[%s9803_s5 + $0x40] sm:$0xff]  ;;  %6034 = vmatmul.lmr.bf16.gmra.8.mxu3 }
 0x19f   : > { %3224 = vxpose.xlu1.b32.cont [9/16] (narrow) %v3184_v13, 56  ;;  %2582 = vmatpush.bf16.xpose.msra.mxu3 %v1383_v9  ;;  %v2259_v13 = vadd.f32 %v2258_v15, %v7632_v26  ;;  %v1384_v9 = vpack.c.bf16 %v1150_v5, %v1141_v49  ;;  %v733_v26 = vunpack.c.l.bf16 %v7962_v53  ;;  %v1132_v49 = vmul.f32 %v6972_v44, %v752_v58 }
 0x1a0   : > { %2639 = vmatpush.bf16.xpose.msra.mxu1 %v7921_v4  ;;  %v2233_v5 = vadd.f32 %v7671_v63, %v2205_v50  ;;  %v428_v63 = vld [vmem:[%s9800_s2 + $0x30c] sm:$0xff] }
 0x1a1   : > { %v2287_v3 = vadd.f32 %v2286_v27, %v2259_v13  ;;  %v1113_v46 = vmul.f32 %v6756_v20, %v733_v26  ;;  %v1375_v58 = vpack.c.bf16 %v1132_v49, %v1123_v56  ;;  %v715_v43 = vunpack.c.l.bf16 %v428_v63 }
 0x1a2   : > { %v2260_v15 = vpop.f32.mrf.mxu3 }
 0x1a3   : > { %v2315_v48 = vadd.f32 %v7879_v28, %v2287_v3  ;;  %v1104_v28 = vmul.f32 %v6756_v20, %v724_v24  ;;  %v2261_v50 = vadd.f32 %v2260_v15, %v2233_v5  ;;  %v725_v3 = vunpack.c.h.bf16 %v7957_v51  ;;  %v404_v51 = vld [vmem:[%s9800_s2 + $0x260] sm:$0xf] }
 0x1a4   : > { %5830 = vmatpush.bf16.xpose.msra.mxu2 %v1393_v6  ;;  %v672_v61 = vunpack.c.l.bf16 %v404_v51 }
 0x1a5   : > { %v1365_v26 = vpack.c.bf16 %v1113_v46, %v1104_v28  ;;  %v1105_v56 = vmul.f32 %v6972_v44, %v725_v3  ;;  %v1095_v28 = vmul.f32 %v6756_v20, %v715_v43  ;;  %v716_v43 = vunpack.c.h.bf16 %v428_v63  ;;  %v8056_v63 = vld [vmem:[%s9800_s2 + $0x560] sm:$0xff] }
 0x1a6   : > { %2609 = vmatpush.bf16.xpose.msra.mxu0 %v1393_v6  ;;  %v7950_v47 = vpop.f32.mrf.mxu1  ;;  %v2339_v6 = vpop.f32.mrf.mxu2  ;;  %6035 = vmatmul.lmr.bf16.gmra.8.mxu3 }
 0x1a7   : > { %v7970_v40 = vadd.f32 %v2339_v6, %v2312_v22  ;;  %3225 = vxpose.xlu1.b32.cont [10/16] (narrow) %v3185_v16, 56  ;;  %2542 = vmatmul.bf16.gmra.mxu1 %v7420_v1  ;;  %v419_v22 = vld [vmem:[%s9800_s2 + $0x2cc] sm:$0xf]  ;;  %v2288_v16 = vpop.f32.mrf.mxu0 }
 0x1a8   : > { %2640 = vmatpush.bf16.xpose.msra.mxu1 %v7952_v0  ;;  %2583 = vmatpush.bf16.xpose.msra.mxu3 %v1374_v29  ;;  %v699_v13 = vunpack.c.l.bf16 %v419_v22  ;;  %v423_v6 = vld [vmem:[%s9800_s2 + $0x2e8] sm:$0xff]  ;;  %v734_v29 = vunpack.c.h.bf16 %v7962_v53  ;;  %v2289_v24 = vadd.f32 %v2288_v16, %v2261_v50  ;;  %v409_v53 = vld [vmem:[%s9800_s2 + $0x284] sm:$0xf]  ;;  %v2210_v16 = vadd.f32 %v7711_v62, %v7743_v14 }
 0x1a9   : > { %v706_v21 = vunpack.c.l.bf16 %v423_v6  ;;  %v8030_v50 = vld [vmem:[%s9800_s2 + $0x2a0] sm:$0xff]  ;;  %v1052_v14 = vmul.f32 %v7155_v12, %v672_v61 }
 0x1aa   : > { %v1079_v22 = vmul.f32 %v7155_v12, %v699_v13  ;;  %v1114_v49 = vmul.f32 %v6972_v44, %v734_v29  ;;  %v2263_v46 = vpop.f32.mrf.mxu3  ;;  %v681_v13 = vunpack.c.l.bf16 %v409_v53  ;;  %v3187_v29 = vld [vmem:[%s9803_s5 + $0x58] sm:$0xff]  ;;  %v688_v62 = vunpack.c.l.bf16 %v8030_v50 }
 0x1ab   : > { %2565 = vmatmul.bf16.gmra.mxu2 %v7206_v45  ;;  %v1086_v5 = vmul.f32 %v6756_v20, %v706_v21  ;;  %v707_v21 = vunpack.c.h.bf16 %v423_v6 }
 0x1ac   : > { %5831 = vmatpush.bf16.xpose.msra.mxu2 %v1384_v9  ;;  %v8025_v15 = vpack.c.bf16 %v1079_v22, %v1070_v7  ;;  %v1061_v51 = vmul.f32 %v7155_v12, %v681_v13  ;;  %v865_v13 = vunpack.c.h.bf16 %v8056_v63 }
 0x1ad   : > { %2509 = vmatmul.bf16.gmra.mxu0 %v7280_v41  ;;  %v1356_v22 = vpack.c.bf16 %v1095_v28, %v1086_v5  ;;  %v1087_v53 = vmul.f32 %v6972_v44, %v707_v21 }
 0x1ae   : > { %2610 = vmatpush.bf16.xpose.msra.mxu0 %v1384_v9  ;;  %v7992_v54 = vpop.f32.mrf.mxu1  ;;  %v2342_v27 = vpop.f32.mrf.mxu2  ;;  %v3186_v9 = vld [vmem:[%s9803_s5 + $0x50] sm:$0xff]  ;;  %6036 = vmatmul.lmr.bf16.gmra.8.mxu3  ;;  %v8069_v61 = vpack.c.bf16 %v1061_v51, %v1052_v14 }
 0x1af   : > { %v8005_v18 = vadd.f32 %v2342_v27, %v2315_v48  ;;  %3226 = vxpose.xlu1.b32.cont [11/16] (narrow) %v3186_v9, 56  ;;  %v2317_v48 = vadd.f32 %v7919_v37, %v2289_v24  ;;  %v8035_v27 = vld [vmem:[%s9800_s2 + $0x2c4] sm:$0xff]  ;;  %v2264_v9 = vadd.f32 %v2263_v46, %v7720_v60  ;;  %v2291_v3 = vpop.f32.mrf.mxu0 }
 0x1b0   : > { %2641 = vmatpush.bf16.xpose.msra.mxu1 %v7994_v36  ;;  %2584 = vmatpush.bf16.xpose.msra.mxu3 %v1365_v26  ;;  %v1366_v26 = vpack.c.bf16 %v1114_v49, %v1105_v56  ;;  %v697_v60 = vunpack.c.l.bf16 %v8035_v27  ;;  %v1096_v56 = vmul.f32 %v6972_v44, %v716_v43  ;;  %v2238_v49 = vadd.f32 %v7759_v11, %v2210_v16  ;;  %v408_v11 = vld [vmem:[%s9800_s2 + $0x27c] sm:$0xff] }
 0x1b1   : > { %v2292_v7 = vadd.f32 %v2291_v3, %v2264_v9  ;;  %v679_v51 = vunpack.c.l.bf16 %v408_v11 }
 0x1b2   : > { %v1077_v5 = vmul.f32 %v6756_v20, %v697_v60  ;;  %v2265_v46 = vpop.f32.mrf.mxu3  ;;  %v1357_v43 = vpack.c.bf16 %v1096_v56, %v1087_v53 }
 0x1b3   : > { %v2320_v6 = vadd.f32 %v7950_v47, %v2292_v7  ;;  %v1068_v47 = vmul.f32 %v6756_v20, %v688_v62  ;;  %v2266_v16 = vadd.f32 %v2265_v46, %v2238_v49  ;;  %v689_v7 = vunpack.c.h.bf16 %v8030_v50  ;;  %v8093_v50 = vld [vmem:[%s9800_s2 + $0x518] sm:$0xff] }
 0x1b4   : > { %5832 = vmatpush.bf16.xpose.msra.mxu2 %v1375_v58  ;;  %v1245_v49 = vmul.f32 %v6673_v55, %v865_v13 }
 0x1b5   : > { %v1347_v60 = vpack.c.bf16 %v1077_v5, %v1068_v47  ;;  %v1069_v53 = vmul.f32 %v6972_v44, %v689_v7  ;;  %v8102_v47 = vpop.trf.xlu0  ;;  %v1059_v5 = vmul.f32 %v6756_v20, %v679_v51 }
 0x1b6   : > { %2611 = vmatpush.bf16.xpose.msra.mxu0 %v1375_v58  ;;  %v8023_v37 = vpop.f32.mrf.mxu1  ;;  %v2344_v58 = vpop.f32.mrf.mxu2  ;;  %6037 = vmatmul.lmr.bf16.gmra.8.mxu3  ;;  %9854 = vst [vmem:[#allocation18_spill] sm:$0xff] %v8102_v47 }
 0x1b7   : > { %v8043_v24 = vadd.f32 %v2344_v58, %v2317_v48  ;;  %3227 = vxpose.xlu1.b32.cont [12/16] (narrow) %v3187_v29, 56  ;;  %2547 = vmatmul.bf16.gmra.mxu1 %v7505_v35  ;;  %v8061_v48 = vld [vmem:[%s9800_s2 + $0x584] sm:$0xff]  ;;  %v403_v58 = vld [vmem:[%s9800_s2 + $0x258] sm:$0xff]  ;;  %v2293_v29 = vpop.f32.mrf.mxu0 }
 0x1b8   : > { %2642 = vmatpush.bf16.xpose.msra.mxu1 %v8025_v15  ;;  %2585 = vmatpush.bf16.xpose.msra.mxu3 %v1356_v22  ;;  %v874_v9 = vunpack.c.h.bf16 %v8061_v48  ;;  %v698_v22 = vunpack.c.h.bf16 %v8035_v27  ;;  %v2294_v62 = vadd.f32 %v2293_v29, %v2266_v16  ;;  %v670_v14 = vunpack.c.l.bf16 %v403_v58  ;;  %v8098_v27 = vld [vmem:[%s9800_s2 + $0x53c] sm:$0xff] }
 0x1b9   : > { %v847_v16 = vunpack.c.h.bf16 %v8093_v50 }
 0x1ba   : > { %v1078_v56 = vmul.f32 %v6972_v44, %v698_v22  ;;  %v2268_v13 = vpop.f32.mrf.mxu3 }
 0x1bb   : > { %2570 = vmatmul.bf16.gmra.mxu2 %v7315_v8  ;;  %v2269_v29 = vadd.f32 %v2268_v13, %v7796_v42 }
 0x1bc   : > { %5833 = vmatpush.bf16.xpose.msra.mxu2 %v1366_v26 }
 0x1bd   : > { %2514 = vmatmul.bf16.gmra.mxu0 %v7382_v38 }
 0x1be   : > { %2612 = vmatpush.bf16.xpose.msra.mxu0 %v1366_v26  ;;  %v2326_v28 = vpop.f32.mrf.mxu1  ;;  %v2347_v3 = vpop.f32.mrf.mxu2  ;;  %v3188_v26 = vld [vmem:[%s9803_s5 + $0x60] sm:$0xff]  ;;  %6038 = vmatmul.lmr.bf16.gmra.8.mxu3 }
 0x1bf   : > { %v8082_v21 = vadd.f32 %v2347_v3, %v2320_v6  ;;  %3228 = vxpose.xlu1.b32.cont [13/16] (narrow) %v3188_v26, 56  ;;  %v1254_v28 = vmul.f32 %v6673_v55, %v874_v9  ;;  %v2322_v6 = vadd.f32 %v7992_v54, %v2294_v62  ;;  %v1050_v54 = vmul.f32 %v6756_v20, %v670_v14  ;;  %v2296_v7 = vpop.f32.mrf.mxu0 }
 0x1c0   : > { %2643 = vmatpush.bf16.xpose.msra.mxu1 %v8069_v61  ;;  %2586 = vmatpush.bf16.xpose.msra.mxu3 %v1347_v60  ;;  %v856_v3 = vunpack.c.h.bf16 %v8098_v27  ;;  %v1348_v62 = vpack.c.bf16 %v1078_v56, %v1069_v53  ;;  %v671_v60 = vunpack.c.h.bf16 %v403_v58  ;;  %v680_v14 = vunpack.c.h.bf16 %v408_v11  ;;  %v8124_v58 = vld [vmem:[%s9800_s2 + $0x4d0] sm:$0xff]  ;;  %v8142_v56 = vld [vmem:[%s9800_s2 + $0x57c] sm:$0xff] }
 0x1c1   : > { %v1434_v9 = vpack.c.bf16 %v1254_v28, %v1245_v49  ;;  %v2297_v51 = vadd.f32 %v2296_v7, %v2269_v29  ;;  %v1338_v49 = vpack.c.bf16 %v1059_v5, %v1050_v54  ;;  %v1227_v28 = vmul.f32 %v6673_v55, %v847_v16  ;;  %v8129_v11 = vld [vmem:[%s9800_s2 + $0x4f4] sm:$0xff] }
 0x1c2   : > { %v1236_v42 = vmul.f32 %v6673_v55, %v856_v3  ;;  %v1060_v53 = vmul.f32 %v6972_v44, %v680_v14  ;;  %v2270_v5 = vpop.f32.mrf.mxu3  ;;  %v829_v16 = vunpack.c.h.bf16 %v8124_v58  ;;  %v838_v3 = vunpack.c.h.bf16 %v8129_v11  ;;  %v3190_v7 = vld [vmem:[%s9803_s5 + $0x70] sm:$0xff] }
 0x1c3   : > { %v2325_v13 = vadd.f32 %v8023_v37, %v2297_v51  ;;  %v8137_v37 = vld [vmem:[%s9800_s2 + $0x558] sm:$0xff]  ;;  %v871_v14 = vunpack.c.l.bf16 %v8142_v56  ;;  %v864_v51 = vunpack.c.l.bf16 %v8056_v63 }
 0x1c4   : > { %5834 = vmatpush.bf16.xpose.msra.mxu2 %v1357_v43  ;;  %v8180_v5 = vld [vmem:[%s9800_s2 + $0x534] sm:$0xff] }
 0x1c5   : > { %v853_v45 = vunpack.c.l.bf16 %v8180_v5 }
 0x1c6   : > { %2613 = vmatpush.bf16.xpose.msra.mxu0 %v1357_v43  ;;  %v8106_v46 = vpop.f32.mrf.mxu1  ;;  %v2349_v26 = vpop.f32.mrf.mxu2  ;;  %v3189_v43 = vld [vmem:[%s9803_s5 + $0x68] sm:$0xff]  ;;  %6039 = vmatmul.lmr.bf16.gmra.8.mxu3 }
 0x1c7   : > { %v8114_v22 = vadd.f32 %v2349_v26, %v2322_v6  ;;  %3229 = vxpose.xlu1.b32.cont [14/16] (narrow) %v3189_v43, 56  ;;  %2644 = vmatmul.bf16.vlgmr.msra.gmra.mxu1 %v8102_v47  ;;  %v1051_v6 = vmul.f32 %v6972_v44, %v671_v60  ;;  %v2298_v26 = vpop.f32.mrf.mxu0  ;;  %v862_v60 = vunpack.c.l.bf16 %v8137_v37  ;;  %v846_v47 = vunpack.c.l.bf16 %v8093_v50 }
 0x1c8   : > { %2752 = vmatpush.bf16.xpose.msra.mxu1 %v1434_v9  ;;  %2587 = vmatpush.bf16.xpose.msra.mxu3 %v1338_v49  ;;  %v1425_v9 = vpack.c.bf16 %v1236_v42, %v1227_v28  ;;  %v873_v49 = vunpack.c.l.bf16 %v8061_v48  ;;  %v1209_v28 = vmul.f32 %v6673_v55, %v829_v16  ;;  %v1218_v42 = vmul.f32 %v6673_v55, %v838_v3 }
 0x1c9   : > { %v1242_v63 = vmul.f32 %v6423_v59, %v862_v60  ;;  %v1251_v48 = vmul.f32 %v6423_v59, %v871_v14  ;;  %v1244_v16 = vmul.f32 %v6420_v57, %v864_v51  ;;  %v3191_v51 = vld [vmem:[%s9803_s5 + $0x78] sm:$0xff]  ;;  %v1233_v35 = vmul.f32 %v6423_v59, %v853_v45 }
 0x1ca   : > { %v1253_v3 = vmul.f32 %v6420_v57, %v873_v49  ;;  %v2365_v26 = vpop.f32.mrf.mxu3  ;;  %v1226_v50 = vmul.f32 %v6420_v57, %v846_v47 }
 0x1cb   : > { %2575 = vmatmul.bf16.gmra.mxu2 %v7413_v30  ;;  %v2366_v8 = vadd.f32 %v2365_v26, %v7932_v19  ;;  %v1431_v49 = vpack.c.bf16 %v1251_v48, %v1242_v63  ;;  %v9856_v26 = vld [vmem:[#allocation12_spill] sm:$0xff]  ;;  %v9857_v63 = vld [vmem:[#allocation6_spill] sm:$0xff] }
 0x1cc   : > { %5835 = vmatpush.bf16.xpose.msra.mxu2 %v1348_v62  ;;  %v8217_v48 = vld [vmem:[%s9800_s2 + $0x4ec] sm:$0xff] }
 0x1cd   : > { %2519 = vmatmul.bf16.gmra.mxu0 %v7464_v31  ;;  %6048 = vllmr.8.mxu3 }
 0x1ce   : > { %2614 = vmatpush.bf16.xpose.msra.mxu0 %v1348_v62  ;;  %v8144_v54 = vpop.f32.mrf.mxu1  ;;  %v2352_v29 = vpop.f32.mrf.mxu2  ;;  %v1339_v62 = vpack.c.bf16 %v1060_v53, %v1051_v6  ;;  %v8167_v6 = vld [vmem:[%s9800_s2 + $0x4ac] sm:$0xff] }
 0x1cf   : > { %v8151_v43 = vadd.f32 %v2352_v29, %v2325_v13  ;;  %3230 = vxpose.xlu1.b32.cont [15/16] (narrow) %v3190_v7, 56  ;;  %v8162_v13 = vld [vmem:[%s9800_s2 + $0x488] sm:$0xff]  ;;  %2588 = vmatmul.bf16.vlgmr.msra.gmra.mxu3 %v7224_v2  ;;  %v8175_v53 = vld [vmem:[%s9800_s2 + $0x510] sm:$0xff]  ;;  %v1416_v7 = vpack.c.bf16 %v1218_v42, %v1209_v28  ;;  %v820_v14 = vunpack.c.h.bf16 %v8167_v6  ;;  %v855_v28 = vunpack.c.l.bf16 %v8098_v27 }
 0x1d0   : > { %2753 = vmatpush.bf16.xpose.msra.mxu1 %v1425_v9  ;;  %5837 = vmatpush.bf16.xpose.msra.mxu3 %v7828_v34  ;;  %v8183_v9 = vpop.trf.xlu0  ;;  %v811_v60 = vunpack.c.h.bf16 %v8162_v13  ;;  %v844_v34 = vunpack.c.l.bf16 %v8175_v53 }
 0x1d1   : > { %9855 = vst [vmem:[#allocation19_spill] sm:$0xff] %v8183_v9  ;;  %v1200_v42 = vmul.f32 %v6673_v55, %v820_v14  ;;  %v1235_v27 = vmul.f32 %v6420_v57, %v855_v28 }
 0x1d2   : > { %v1191_v19 = vmul.f32 %v6673_v55, %v811_v60  ;;  %v1224_v25 = vmul.f32 %v6423_v59, %v844_v34  ;;  %v8212_v55 = vld [vmem:[%s9800_s2 + $0x4c8] sm:$0xff] }
 0x1d3   : > { %v1424_v34 = vpack.c.bf16 %v1235_v27, %v1226_v50 }
 0x1d4   : > { %5836 = vmatpush.bf16.xpose.msra.mxu2 %v1339_v62 }
 0x1d6   : > { %2615 = vmatpush.bf16.xpose.msra.mxu0 %v1339_v62  ;;  %v8187_v29 = vpop.f32.mrf.mxu1  ;;  %v2354_v30 = vpop.f32.mrf.mxu2 }
 0x1d7   : > { %3231 = vxpose.xlu1.b32.end [16/16] (narrow) %v3191_v51, 56  ;;  %2649 = vmatmul.bf16.gmra.mxu1 %v8183_v9  ;;  %v1433_v30 = vpack.c.bf16 %v1253_v3, %v1244_v16  ;;  %v2367_v16 = vpop.f32.mrf.mxu3  ;;  %v1407_v3 = vpack.c.bf16 %v1200_v42, %v1191_v19  ;;  %v826_v51 = vunpack.c.l.bf16 %v8212_v55  ;;  %v828_v9 = vunpack.c.l.bf16 %v8124_v58 }
 0x1d8   : > { %2754 = vmatpush.bf16.xpose.msra.mxu1 %v1416_v7  ;;  %5838 = vmatpush.bf16.xpose.msra.mxu3 %v7855_v33  ;;  %v2368_v47 = vadd.f32 %v2367_v16, %v7970_v40  ;;  %v1422_v33 = vpack.c.bf16 %v1233_v35, %v1224_v25  ;;  %v837_v19 = vunpack.c.l.bf16 %v8129_v11  ;;  %v8238_v35 = vld [vmem:[%s9800_s2 + $0x570] sm:$0xff]  ;;  %v8251_v11 = vld [vmem:[%s9800_s2 + $0x480] sm:$0xff] }
 0x1d9   : > { %v9858_v40 = vld [vmem:[#allocation11_spill] sm:$0xff]  ;;  %v869_v42 = vunpack.c.h.bf16 %v8238_v35  ;;  %v1208_v27 = vmul.f32 %v6420_v57, %v828_v9  ;;  %v808_v1 = vunpack.c.l.bf16 %v8251_v11 }
 0x1da   : > { %v2393_v62 = vpop.f32.mrf.mxu0  ;;  %v1217_v16 = vmul.f32 %v6420_v57, %v837_v19 }
 0x1db   : > { %2626 = vmatmul.bf16.vlgmr.msra.gmra.mxu2 %v9856_v26  ;;  %v8227_v28 = vadd.f32 %v2393_v62, %v2366_v8  ;;  %v8243_v8 = vld [vmem:[%s9800_s2 + $0x594] sm:$0xff]  ;;  %v8256_v62 = vld [vmem:[%s9800_s2 + $0x4a4] sm:$0xff]  ;;  %v1188_v39 = vmul.f32 %v6423_v59, %v808_v1 }
 0x1dc   : > { %2668 = vmatpush.bf16.xpose.msra.mxu2 %v1431_v49  ;;  %v835_v49 = vunpack.c.l.bf16 %v8217_v48  ;;  %v878_v50 = vunpack.c.h.bf16 %v8243_v8 }
 0x1dd   : > { %2616 = vmatmul.bf16.vlgmr.msra.gmra.mxu0 %v9857_v63 }
 0x1de   : > { %2724 = vmatpush.bf16.xpose.msra.mxu0 %v1433_v30  ;;  %v8219_v45 = vpop.f32.mrf.mxu1  ;;  %v2449_v7 = vpop.f32.mrf.mxu2  ;;  %v1215_v58 = vmul.f32 %v6423_v59, %v835_v49 }
 0x1df   : > { %v8223_v14 = vadd.f32 %v2449_v7, %v8106_v46  ;;  %2593 = vmatmul.bf16.gmra.mxu3 %v9858_v40  ;;  %v1206_v46 = vmul.f32 %v6423_v59, %v826_v51  ;;  %v1249_v7 = vmul.f32 %v6972_v44, %v869_v42  ;;  %v1415_v42 = vpack.c.bf16 %v1217_v16, %v1208_v27  ;;  %v8306_v27 = vld [vmem:[%s9800_s2 + $0x58c] sm:$0xff] }
 0x1e0   : > { %2755 = vmatpush.bf16.xpose.msra.mxu1 %v1407_v3  ;;  %5839 = vmatpush.bf16.xpose.msra.mxu3 %v7881_v17  ;;  %v817_v17 = vunpack.c.l.bf16 %v8256_v62 }
 0x1e1   : > { %v1413_v9 = vpack.c.bf16 %v1215_v58, %v1206_v46  ;;  %v8285_v46 = vld [vmem:[%s9800_s2 + $0x528] sm:$0xff] }
 0x1e2   : > { %v2395_v60 = vpop.f32.mrf.mxu0  ;;  %v8301_v58 = vld [vmem:[%s9800_s2 + $0x568] sm:$0xff] }
 0x1e3   : > { %v8229_v30 = vadd.f32 %v2395_v60, %v2368_v47  ;;  %v2370_v47 = vpop.f32.mrf.mxu3  ;;  %v1258_v60 = vmul.f32 %v6972_v44, %v878_v50  ;;  %v810_v50 = vunpack.c.l.bf16 %v8162_v13  ;;  %v9859_v13 = vld [vmem:[#allocation8_spill] sm:$0xff] }
 0x1e4   : > { %2669 = vmatpush.bf16.xpose.msra.mxu2 %v1422_v33  ;;  %v2371_v33 = vadd.f32 %v2370_v47, %v8005_v18  ;;  %v819_v18 = vunpack.c.l.bf16 %v8167_v6  ;;  %v851_v6 = vunpack.c.h.bf16 %v8285_v46 }
 0x1e5   : > { %v2916_v25 = vadd.f32 %v8229_v30, %v8227_v28  ;;  %v1438_v19 = vpack.c.bf16 %v1258_v60, %v1249_v7 }
 0x1e6   : > { %2725 = vmatpush.bf16.xpose.msra.mxu0 %v1424_v34  ;;  %v8263_v3 = vpop.f32.mrf.mxu1  ;;  %v2451_v51 = vpop.f32.mrf.mxu2  ;;  %v1199_v1 = vmul.f32 %v6420_v57, %v819_v18 }
 0x1e7   : > { %v8271_v34 = vadd.f32 %v2451_v51, %v8144_v54  ;;  %2756 = vmatmul.bf16.vlgmr.msra.gmra.mxu1 %v7173_v10  ;;  %v1197_v54 = vmul.f32 %v6423_v59, %v817_v17  ;;  %v8290_v10 = vld [vmem:[%s9800_s2 + $0x54c] sm:$0xff]  ;;  %v1190_v59 = vmul.f32 %v6420_v57, %v810_v50 }
 0x1e8   : > { %2864 = vmatpush.bf16.xpose.msra.mxu1 %v1438_v19  ;;  %5840 = vmatpush.bf16.xpose.msra.mxu3 %v7921_v4  ;;  %v1231_v4 = vmul.f32 %v6972_v44, %v851_v6  ;;  %v875_v19 = vunpack.c.l.bf16 %v8306_v27 }
 0x1e9   : > { %v1406_v18 = vpack.c.bf16 %v1199_v1, %v1190_v59 }
 0x1ea   : > { %v2398_v49 = vpop.f32.mrf.mxu0 }
 0x1eb   : > { %v8273_v40 = vadd.f32 %v2398_v49, %v2371_v33  ;;  %2631 = vmatmul.bf16.gmra.mxu2 %v7459_v52  ;;  %v2372_v7 = vpop.f32.mrf.mxu3  ;;  %v1404_v49 = vpack.c.bf16 %v1197_v54, %v1188_v39  ;;  %v8329_v39 = vld [vmem:[%s9800_s2 + $0x504] sm:$0xff]  ;;  %v9861_v54 = vld [vmem:[#allocation4_spill] sm:$0xff] }
 0x1ec   : > { %2670 = vmatpush.bf16.xpose.msra.mxu2 %v1413_v9  ;;  %v2373_v33 = vadd.f32 %v2372_v7, %v8043_v24  ;;  %v866_v9 = vunpack.c.l.bf16 %v8301_v58  ;;  %v8324_v24 = vld [vmem:[%s9800_s2 + $0x4e0] sm:$0xff]  ;;  %v1255_v59 = vmul.f32 %v9861_v54, %v875_v19 }
 0x1ed   : > { %v2917_v47 = vadd.f32 %v2916_v25, %v8273_v40  ;;  %2621 = vmatmul.bf16.gmra.mxu0 %v9859_v13  ;;  %v860_v25 = vunpack.c.h.bf16 %v8290_v10  ;;  %v833_v1 = vunpack.c.h.bf16 %v8324_v24 }
 0x1ee   : > { %2726 = vmatpush.bf16.xpose.msra.mxu0 %v1415_v42  ;;  %v8308_v16 = vpop.f32.mrf.mxu1  ;;  %v2454_v57 = vpop.f32.mrf.mxu2 }
 0x1ef   : > { %v1240_v60 = vmul.f32 %v6972_v44, %v860_v25  ;;  %v8314_v17 = vadd.f32 %v2454_v57, %v8187_v29  ;;  %v9860_v29 = vld [vmem:[#allocation15_spill] sm:$0xff]  ;;  %v1246_v25 = vmul.f32 %v9861_v54, %v866_v9  ;;  %v868_v9 = vunpack.c.l.bf16 %v8238_v35 }
 0x1f0   : > { %2598 = vmatmul.bf16.gmra.mxu3 %v9860_v29 }
 0x1f1   : > { %v1429_v42 = vpack.c.bf16 %v1240_v60, %v1231_v4  ;;  %5841 = vmatpush.bf16.xpose.msra.mxu3 %v7952_v0  ;;  %v1213_v60 = vmul.f32 %v6972_v44, %v833_v1  ;;  %v1248_v1 = vmul.f32 %v6756_v20, %v868_v9 }
 0x1f2   : > { %v2400_v51 = vpop.f32.mrf.mxu0 }
 0x1f3   : > { %v8318_v50 = vadd.f32 %v2400_v51, %v2373_v33  ;;  %2865 = vmatpush.bf16.xpose.msra.mxu1 %v1429_v42  ;;  %v2375_v4 = vpop.f32.mrf.mxu3  ;;  %v1435_v42 = vpack.c.bf16 %v1255_v59, %v1246_v25  ;;  %v6175_v59 = vmov 49.0  }
 0x1f4   : > { %2671 = vmatpush.bf16.xpose.msra.mxu2 %v1404_v49  ;;  %v2376_v57 = vadd.f32 %v2375_v4, %v8082_v21  ;;  %6125 = vrcp.f32 %v6175_v59  ;;  %v8369_v4 = vld [vmem:[%s9800_s2 + $0x520] sm:$0xff]  ;;  %v859_v59 = vunpack.c.l.bf16 %v8290_v10  ;;  %v863_v10 = vunpack.c.h.bf16 %v8137_v37 }
 0x1f5   : > { %v2918_v6 = vadd.f32 %v2917_v47, %v8318_v50  ;;  %v842_v47 = vunpack.c.h.bf16 %v8329_v39 }
 0x1f6   : > { %2727 = vmatpush.bf16.xpose.msra.mxu0 %v1406_v18  ;;  %v8337_v7 = vpop.f32.mrf.mxu1  ;;  %v2456_v51 = vpop.f32.mrf.mxu2  ;;  %v877_v18 = vunpack.c.l.bf16 %v8243_v8 }
 0x1f7   : > { %v1222_v33 = vmul.f32 %v6972_v44, %v842_v47  ;;  %v8344_v19 = vadd.f32 %v2456_v51, %v8219_v45  ;;  %2761 = vmatmul.bf16.gmra.mxu1 %v7280_v41  ;;  %v8356_v45 = vld [vmem:[%s9800_s2 + $0x498] sm:$0xff]  ;;  %v848_v51 = vunpack.c.l.bf16 %v8369_v4 }
 0x1f8   : > { %v1257_v47 = vmul.f32 %v6756_v20, %v877_v18  ;;  %v8361_v41 = vld [vmem:[%s9800_s2 + $0x4bc] sm:$0xff]  ;;  %v815_v8 = vunpack.c.h.bf16 %v8356_v45 }
 0x1f9   : > { %v1420_v29 = vpack.c.bf16 %v1222_v33, %v1213_v60  ;;  %5842 = vmatpush.bf16.xpose.msra.mxu3 %v7994_v36  ;;  %v8374_v60 = vld [vmem:[%s9800_s2 + $0x544] sm:$0xff] }
 0x1fa   : > { %v2403_v49 = vpop.f32.mrf.mxu0  ;;  %v1437_v35 = vpack.c.bf16 %v1257_v47, %v1248_v1  ;;  %v1195_v9 = vmul.f32 %v6972_v44, %v815_v8  ;;  %v1228_v47 = vmul.f32 %v9861_v54, %v848_v51  ;;  %v8409_v51 = vld [vmem:[%s9800_s2 + $0x4fc] sm:$0xff] }
 0x1fb   : > { %v8346_v0 = vadd.f32 %v2403_v49, %v2376_v57  ;;  %2866 = vmatpush.bf16.xpose.msra.mxu1 %v1420_v29  ;;  %6009 = vmatmul.lmr.bf16.vlgmr.msra.gmra.8.mxu2  ;;  %v2377_v25 = vpop.f32.mrf.mxu3  ;;  %v857_v49 = vunpack.c.l.bf16 %v8374_v60 }
 0x1fc   : > { %2780 = vmatpush.bf16.xpose.msra.mxu2 %v1435_v42  ;;  %v2378_v36 = vadd.f32 %v2377_v25, %v8114_v22 }
 0x1fd   : > { %v2919_v21 = vadd.f32 %v2918_v6, %v8346_v0  ;;  %5906 = vmatmul.lmr.bf16.vlgmr.msra.gmra.8.mxu0  ;;  %v824_v6 = vunpack.c.h.bf16 %v8361_v41  ;;  %v1237_v22 = vmul.f32 %v9861_v54, %v857_v49 }
 0x1fe   : > { %v2438_v29 = vpop.f32.mrf.mxu1  ;;  %v2459_v33 = vpop.f32.mrf.mxu2  ;;  %2836 = vmatpush.bf16.xpose.msra.mxu0 %v1437_v35 }
 0x1ff   : > { %v8381_v42 = vadd.f32 %v2459_v33, %v8263_v3  ;;  %v1204_v18 = vmul.f32 %v6972_v44, %v824_v6  ;;  %v850_v29 = vunpack.c.l.bf16 %v8285_v46  ;;  %v1426_v8 = vpack.c.bf16 %v1237_v22, %v1228_v47  ;;  %v8392_v33 = vpop.eup %6125  ;;  %v9862_v44 = vld [vmem:[#allocation17_spill] sm:$0xff] }
 0x200   : > { %2603 = vmatmul.bf16.gmra.mxu3 %v9862_v44  ;;  %v1239_v6 = vmul.f32 %v6756_v20, %v859_v59  ;;  %v2965_v37 = vmul.f32 49.0, %v8392_v33  ;;  %v839_v47 = vunpack.c.l.bf16 %v8409_v51  ;;  %vm2969_vm9 = vweird.f32 %v8392_v33 }
 0x201   : > { %v1411_v25 = vpack.c.bf16 %v1204_v18, %v1195_v9  ;;  %v1230_v3 = vmul.f32 %v6756_v20, %v850_v29  ;;  %5843 = vmatpush.bf16.xpose.msra.mxu3 %v8025_v15  ;;  %v832_v29 = vunpack.c.l.bf16 %v8324_v24 }
 0x202   : > { %v2405_v57 = vpop.f32.mrf.mxu0 }
 0x203   : > { %v8384_v1 = vadd.f32 %v2405_v57, %v2378_v36  ;;  %6010 = vmatmul.lmr.bf16.gmra.8.mxu2  ;;  %v2380_v36 = vpop.f32.mrf.mxu3  ;;  %v8404_v57 = vld [vmem:[%s9800_s2 + $0x4d8] sm:$0xff]  ;;  %2867 = vmatpush.bf16.xpose.msra.mxu1 %v1411_v25  ;;  %v1428_v15 = vpack.c.bf16 %v1239_v6, %v1230_v3  ;;  %v1219_v25 = vmul.f32 %v9861_v54, %v839_v47  ;;  %v841_v3 = vunpack.c.l.bf16 %v8329_v39 }
 0x204   : > { %2781 = vmatpush.bf16.xpose.msra.mxu2 %v1426_v8  ;;  %v2381_v49 = vadd.f32 %v2380_v36, %v8151_v43  ;;  %v3192_v8 = vld [vmem:[%s9803_s5 + $0x80] sm:$0xff]  ;;  %v1212_v24 = vmul.f32 %v6756_v20, %v832_v29 }
 0x205   : > { %v2920_v35 = vadd.f32 %v2919_v21, %v8384_v1  ;;  %5907 = vmatmul.lmr.bf16.gmra.8.mxu0  ;;  %v872_v21 = vunpack.c.h.bf16 %v8142_v56  ;;  %v830_v56 = vunpack.c.l.bf16 %v8404_v57  ;;  %3248 = vxpose.xlu2.b32.start [1/16] (narrow) %v3192_v8, 56 }
 0x206   : > { %v8397_v46 = vpop.f32.mrf.mxu1  ;;  %v2461_v9 = vpop.f32.mrf.mxu2  ;;  %2837 = vmatpush.bf16.xpose.msra.mxu0 %v1428_v15  ;;  %v2966_v15 = vsub.f32 1.0, %v2965_v37  ;;  %v8441_v37 = vld [vmem:[%s9800_s2 + $0x490] sm:$0xff] }
 0x207   : > { %v8416_v22 = vadd.f32 %v2461_v9, %v8308_v16  ;;  %2766 = vmatmul.bf16.gmra.mxu1 %v7382_v38  ;;  %v1210_v43 = vmul.f32 %v9861_v54, %v830_v56  ;;  %v9863_v16 = vld [vmem:[#allocation3_spill] sm:$0xff]  ;;  %v1221_v9 = vmul.f32 %v6756_v20, %v841_v3 }
 0x208   : > { %v1243_v6 = vmul.f32 %v9863_v16, %v863_v10  ;;  %v1252_v36 = vmul.f32 %v9863_v16, %v872_v21  ;;  %v2967_v47 = vmul.f32 %v8392_v33, %v2966_v15  ;;  %v814_v15 = vunpack.c.l.bf16 %v8356_v45 }
 0x209   : > { %5844 = vmatpush.bf16.xpose.msra.mxu3 %v8069_v61  ;;  %v1419_v39 = vpack.c.bf16 %v1221_v9, %v1212_v24  ;;  %v8446_v61 = vld [vmem:[%s9800_s2 + $0x4b4] sm:$0xff]  ;;  %v854_v24 = vunpack.c.h.bf16 %v8180_v5 }
 0x20a   : > { %v2408_v18 = vpop.f32.mrf.mxu0  ;;  %v1432_v44 = vpack.c.bf16 %v1252_v36, %v1243_v6  ;;  %v821_v3 = vunpack.c.l.bf16 %v8446_v61  ;;  %v8453_v6 = vpop.trf.xlu0  ;;  %v845_v36 = vunpack.c.h.bf16 %v8175_v53  ;;  %v1194_v53 = vmul.f32 %v6756_v20, %v814_v15  ;;  %v3194_v15 = vld [vmem:[%s9803_s5 + $0x90] sm:$0xff] }
 0x20b   : > { %v8419_v59 = vadd.f32 %v2408_v18, %v2381_v49  ;;  %6011 = vmatmul.lmr.bf16.gmra.8.mxu2  ;;  %v1417_v49 = vpack.c.bf16 %v1219_v25, %v1210_v43  ;;  %v2382_v21 = vpop.f32.mrf.mxu3  ;;  %v812_v25 = vunpack.c.l.bf16 %v8441_v37 }
 0x20d   : > { %v2922_v38 = vsel %vm2921_vm8, %v8419_v59, 0.0  ;;  %5908 = vmatmul.lmr.bf16.gmra.8.mxu0  ;;  %2782 = vmatpush.bf16.xpose.msra.mxu2 %v1417_v49  ;;  %v1192_v9 = vmul.f32 %v9861_v54, %v812_v25 }
 0x20e   : > { %v2923_v18 = vadd.f32 %v2922_v38, %v2920_v35  ;;  %v8435_v56 = vpop.f32.mrf.mxu1  ;;  %v2464_v29 = vpop.f32.mrf.mxu2  ;;  %2838 = vmatpush.bf16.xpose.msra.mxu0 %v1419_v39  ;;  %v3193_v38 = vld [vmem:[%s9803_s5 + $0x88] sm:$0xff]  ;;  %v2968_v39 = vadd.f32 %v8392_v33, %v2967_v47 }
 0x20f   : > { %v8449_v43 = vadd.f32 %v2464_v29, %v8337_v7  ;;  %v823_v7 = vunpack.c.l.bf16 %v8361_v41  ;;  %3249 = vxpose.xlu2.b32.cont [2/16] (narrow) %v3193_v38, 56  ;;  %v1225_v41 = vmul.f32 %v9863_v16, %v845_v36 }
 0x210   : > { %v2924_v10 = vrot.slane %v2923_v18, 4  ;;  %2654 = vmatmul.bf16.vlgmr.msra.gmra.mxu3 %v8453_v6 }
 0x211   : > { %v1203_v5 = vmul.f32 %v6756_v20, %v823_v7  ;;  %2696 = vmatpush.bf16.xpose.msra.mxu3 %v1432_v44  ;;  %v8474_v20 = vsel %vm2969_vm9, %v8392_v33, %v2968_v39  ;;  %v836_v44 = vunpack.c.h.bf16 %v8217_v48 }
 0x212   : > { %v2410_v8 = vpop.f32.mrf.mxu0  ;;  %v2925_v35 = vadd.f32 %v2924_v10, %v2923_v18  ;;  %v1201_v18 = vmul.f32 %v9861_v54, %v821_v3  ;;  %v1234_v54 = vmul.f32 %v9863_v16, %v854_v24  ;;  %v827_v3 = vunpack.c.h.bf16 %v8212_v55 }
 0x213   : > { %6012 = vmatmul.lmr.bf16.gmra.8.mxu2  ;;  %v1410_v21 = vpack.c.bf16 %v1203_v5, %v1194_v53  ;;  %v2477_v8 = vpop.f32.mrf.mxu3  ;;  %v1216_v55 = vmul.f32 %v9863_v16, %v836_v44 }
 0x214   : > { %v2926_v49 = vrot.slane %v2925_v35, 2  ;;  %v1408_v45 = vpack.c.bf16 %v1201_v18, %v1192_v9  ;;  %v2478_v25 = vadd.f32 %v2477_v8, %v8223_v14  ;;  %v1423_v24 = vpack.c.bf16 %v1234_v54, %v1225_v41  ;;  %v8519_v41 = vpop.trf.xlu0  ;;  %v8521_v54 = vpop.trf.xlu1 }
 0x215   : > { %5909 = vmatmul.lmr.bf16.gmra.8.mxu0  ;;  %v1207_v14 = vmul.f32 %v9863_v16, %v827_v3  ;;  %v818_v8 = vunpack.c.h.bf16 %v8256_v62 }
 0x216   : > { %v2927_v10 = vadd.f32 %v2926_v49, %v2925_v35  ;;  %v8471_v47 = vpop.f32.mrf.mxu1  ;;  %2783 = vmatpush.bf16.xpose.msra.mxu2 %v1408_v45  ;;  %v2466_v35 = vpop.f32.mrf.mxu2  ;;  %2839 = vmatpush.bf16.xpose.msra.mxu0 %v1410_v21 }
 0x217   : > { %2771 = vmatmul.bf16.gmra.mxu1 %v7464_v31  ;;  %3250 = vxpose.xlu2.b32.cont [3/16] (narrow) %v3194_v15, 56  ;;  %v1414_v21 = vpack.c.bf16 %v1216_v55, %v1207_v14 }
 0x218   : > { %v2928_v29 = vrot.slane %v2927_v10, 1 }
 0x219   : > { %2697 = vmatpush.bf16.xpose.msra.mxu3 %v1423_v24  ;;  %v1198_v24 = vmul.f32 %v9863_v16, %v818_v8 }
 0x21a   : > { %v2929_v38 = vadd.f32 %v2928_v29, %v2927_v10  ;;  %v2505_v36 = vpop.f32.mrf.mxu0  ;;  %v809_v29 = vunpack.c.h.bf16 %v8251_v11 }
 0x21b   : > { %v2506_v7 = vadd.f32 %v2505_v36, %v2478_v25  ;;  %6013 = vmatmul.lmr.bf16.gmra.8.mxu2  ;;  %v2479_v5 = vpop.f32.mrf.mxu3 }
 0x21c   : > { %v2971_v33 = vmul.f32 %v8474_v20, %v2929_v38  ;;  %v1189_v36 = vmul.f32 %v9863_v16, %v809_v29  ;;  %v3196_v16 = vld [vmem:[%s9803_s5 + $0xa0] sm:$0xff] }
 0x21d   : > { %5910 = vmatmul.lmr.bf16.gmra.8.mxu0 }
 0x21e   : > { %v8487_v48 = vsub.f32 %v8227_v28, %v2971_v33  ;;  %v8490_v49 = vsub.f32 %v8229_v30, %v2971_v33  ;;  %v8493_v31 = vsub.f32 %v8273_v40, %v2971_v33  ;;  %v8496_v9 = vsub.f32 %v8318_v50, %v2971_v33  ;;  %v8512_v50 = vpop.f32.mrf.mxu1  ;;  %v2561_v10 = vpop.f32.mrf.mxu2 }
 0x21f   : > { %v8499_v18 = vsub.f32 %v8346_v0, %v2971_v33  ;;  %v8502_v39 = vsub.f32 %v8384_v1, %v2971_v33  ;;  %v8505_v53 = vsub.f32 %v8419_v59, %v2971_v33  ;;  %v2534_v28 = vadd.f32 %v8397_v46, %v2506_v7 }
 0x220   : > { %v2995_v30 = vmul.f32 %v8487_v48, %v8487_v48  ;;  %v2998_v40 = vmul.f32 %v8490_v49, %v8490_v49  ;;  %v2480_v0 = vadd.f32 %v2479_v5, %v8271_v34  ;;  %v3001_v1 = vmul.f32 %v8493_v31, %v8493_v31  ;;  %v3195_v34 = vld [vmem:[%s9803_s5 + $0x98] sm:$0xff]  ;;  %2659 = vmatmul.bf16.gmra.mxu3 %v8519_v41 }
 0x221   : > { %v8517_v45 = vadd.f32 %v2561_v10, %v2534_v28  ;;  %v3004_v35 = vmul.f32 %v8496_v9, %v8496_v9  ;;  %3251 = vxpose.xlu2.b32.cont [4/16] (narrow) %v3195_v34, 56  ;;  %v3007_v44 = vmul.f32 %v8499_v18, %v8499_v18  ;;  %v3013_v62 = vmul.f32 %v8505_v53, %v8505_v53 }
 0x222   : > { %v3016_v59 = vadd.f32 %v2998_v40, %v2995_v30  ;;  %v2507_v46 = vpop.f32.mrf.mxu0  ;;  %2698 = vmatpush.bf16.xpose.msra.mxu3 %v1414_v21  ;;  %v3010_v15 = vmul.f32 %v8502_v39, %v8502_v39 }
 0x223   : > { %v2508_v3 = vadd.f32 %v2507_v46, %v2480_v0  ;;  %6014 = vmatmul.lmr.bf16.gmra.8.mxu2  ;;  %v2482_v14 = vpop.f32.mrf.mxu3  ;;  %v3021_v40 = vsel %vm2921_vm8, %v3013_v62, 0.0  ;;  %v1405_v0 = vpack.c.bf16 %v1198_v24, %v1189_v36 }
 0x224   : > { %v3017_v25 = vadd.f32 %v3016_v59, %v3001_v1  ;;  %v2483_v55 = vadd.f32 %v2482_v14, %v8314_v17  ;;  %v8550_v59 = vpop.trf.xlu1 }
 0x225   : > { %5911 = vmatmul.lmr.bf16.gmra.8.mxu0  ;;  %v2536_v11 = vadd.f32 %v8435_v56, %v2508_v3  ;;  %v867_v3 = vunpack.c.h.bf16 %v8301_v58 }
 0x226   : > { %v3018_v38 = vadd.f32 %v3017_v25, %v3004_v35  ;;  %v8540_v7 = vpop.f32.mrf.mxu1  ;;  %v2563_v28 = vpop.f32.mrf.mxu2 }
 0x227   : > { %v8543_v56 = vadd.f32 %v2563_v28, %v2536_v11  ;;  %2868 = vmatmul.bf16.vlgmr.msra.gmra.mxu1 %v9857_v63  ;;  %v1247_v36 = vmul.f32 %v6744_v23, %v867_v3 }
 0x228   : > { %v3019_v33 = vadd.f32 %v3018_v38, %v3007_v44  ;;  %v876_v44 = vunpack.c.h.bf16 %v8306_v27 }
 0x229   : > { %3252 = vxpose.xlu2.b32.cont [5/16] (narrow) %v3196_v16, 56  ;;  %v504_v16 = vld [vmem:[%s9800_s2 + $0x530] sm:$0xf] }
 0x22a   : > { %v3020_v30 = vadd.f32 %v3019_v33, %v3010_v15  ;;  %v2510_v5 = vpop.f32.mrf.mxu0  ;;  %2699 = vmatpush.bf16.xpose.msra.mxu3 %v1405_v0  ;;  %v1256_v24 = vmul.f32 %v6744_v23, %v876_v44  ;;  %v858_v0 = vunpack.c.h.bf16 %v8374_v60 }
 0x22b   : > { %v2511_v1 = vadd.f32 %v2510_v5, %v2483_v55  ;;  %6015 = vmatmul.lmr.bf16.gmra.8.mxu2  ;;  %v2484_v63 = vpop.f32.mrf.mxu3  ;;  %v519_v5 = vld [vmem:[%s9800_s2 + $0x59c] sm:$0xf] }
 0x22c   : > { %v3022_v10 = vadd.f32 %v3021_v40, %v3020_v30  ;;  %v2485_v8 = vadd.f32 %v2484_v63, %v8344_v19  ;;  %v1436_v15 = vpack.c.bf16 %v1256_v24, %v1247_v36  ;;  %v8566_v27 = vpop.trf.xlu1  ;;  %v514_v40 = vld [vmem:[%s9800_s2 + $0x578] sm:$0xf] }
 0x22d   : > { %5912 = vmatmul.lmr.bf16.gmra.8.mxu0  ;;  %v2539_v46 = vadd.f32 %v8471_v47, %v2511_v1  ;;  %v3197_v47 = vld [vmem:[%s9803_s5 + $0xa8] sm:$0xff] }
 0x22e   : > { %v3023_v17 = vrot.slane %v3022_v10, 4  ;;  %v8553_v29 = vpop.f32.mrf.mxu1  ;;  %v2566_v34 = vpop.f32.mrf.mxu2 }
 0x22f   : > { %v8556_v25 = vadd.f32 %v2566_v34, %v2539_v46  ;;  %v879_v46 = vunpack.c.l.bf16 %v519_v5 }
 0x230   : > { %v3024_v21 = vadd.f32 %v3023_v17, %v3022_v10  ;;  %v831_v10 = vunpack.c.h.bf16 %v8404_v57  ;;  %v870_v17 = vunpack.c.l.bf16 %v514_v40  ;;  %v1238_v57 = vmul.f32 %v6744_v23, %v858_v0 }
 0x231   : > { %3253 = vxpose.xlu2.b32.cont [6/16] (narrow) %v3197_v47, 56  ;;  %6049 = vmatmul.lmr.bf16.vlgmr.msra.gmra.8.mxu3 }
 0x232   : > { %v3025_v35 = vrot.slane %v3024_v21, 2  ;;  %v2512_v38 = vpop.f32.mrf.mxu0  ;;  %2808 = vmatpush.bf16.xpose.msra.mxu3 %v1436_v15  ;;  %v1250_v44 = vmul.f32 %v7155_v12, %v870_v17 }
 0x233   : > { %v2513_v62 = vadd.f32 %v2512_v38, %v2485_v8  ;;  %6016 = vmatmul.lmr.bf16.gmra.8.mxu2  ;;  %v2487_v55 = vpop.f32.mrf.mxu3  ;;  %v852_v8 = vunpack.c.l.bf16 %v504_v16  ;;  %v1259_v38 = vmul.f32 %v7155_v12, %v879_v46 }
 0x234   : > { %v3026_v11 = vadd.f32 %v3025_v35, %v3024_v21  ;;  %v2488_v28 = vadd.f32 %v2487_v55, %v8381_v42  ;;  %v509_v21 = vld [vmem:[%s9800_s2 + $0x554] sm:$0xf]  ;;  %v8615_v55 = vpop.trf.xlu1 }
 0x235   : > { %5913 = vmatmul.lmr.bf16.gmra.8.mxu0  ;;  %v2541_v58 = vadd.f32 %v8512_v50, %v2513_v62  ;;  %v849_v50 = vunpack.c.h.bf16 %v8369_v4  ;;  %v3198_v4 = vld [vmem:[%s9803_s5 + $0xb0] sm:$0xff]  ;;  %v861_v34 = vunpack.c.l.bf16 %v509_v21  ;;  %v1232_v36 = vmul.f32 %v7155_v12, %v852_v8 }
 0x236   : > { %v3027_v19 = vrot.slane %v3026_v11, 1  ;;  %v8568_v14 = vpop.f32.mrf.mxu1  ;;  %v2568_v30 = vpop.f32.mrf.mxu2  ;;  %v822_v8 = vunpack.c.h.bf16 %v8446_v61 }
 0x237   : > { %v8584_v1 = vadd.f32 %v2568_v30, %v2541_v58  ;;  %2873 = vmatmul.bf16.gmra.mxu1 %v9859_v13  ;;  %v1229_v63 = vmul.f32 %v6744_v23, %v849_v50  ;;  %v1439_v13 = vpack.c.bf16 %v1259_v38, %v1250_v44  ;;  %v1241_v15 = vmul.f32 %v7155_v12, %v861_v34  ;;  %v494_v58 = vld [vmem:[%s9800_s2 + $0x4e8] sm:$0xf]  ;;  %v3199_v30 = vld [vmem:[%s9803_s5 + $0xb8] sm:$0xff] }
 0x238   : > { %v3028_v33 = vadd.f32 %v3027_v19, %v3026_v11  ;;  %v840_v11 = vunpack.c.h.bf16 %v8409_v51  ;;  %v834_v5 = vunpack.c.l.bf16 %v494_v58 }
 0x239   : > { %3254 = vxpose.xlu2.b32.cont [7/16] (narrow) %v3198_v4, 56  ;;  %v1427_v47 = vpack.c.bf16 %v1238_v57, %v1229_v63  ;;  %6050 = vmatmul.lmr.bf16.gmra.8.mxu3  ;;  %v1430_v16 = vpack.c.bf16 %v1241_v15, %v1232_v36  ;;  %v813_v57 = vunpack.c.h.bf16 %v8441_v37  ;;  %v8641_v37 = vld [vmem:[%s9801_s3] sm:$0x7] }
 0x23a   : > { %v3061_v42 = vmul.f32 %v3028_v33, %v8474_v20  ;;  %v2515_v60 = vpop.f32.mrf.mxu0  ;;  %v1220_v51 = vmul.f32 %v6744_v23, %v840_v11  ;;  %v1214_v46 = vmul.f32 %v7155_v12, %v834_v5  ;;  %v1202_v11 = vmul.f32 %v6744_v23, %v822_v8 }
 0x23b   : > { %v2516_v3 = vadd.f32 %v2515_v60, %v2488_v28  ;;  %2784 = vmatmul.bf16.vlgmr.msra.gmra.mxu2 %v7218_v32  ;;  %v2489_v19 = vpop.f32.mrf.mxu3  ;;  %2809 = vmatpush.bf16.xpose.msra.mxu3 %v1427_v47  ;;  %v1211_v32 = vmul.f32 %v6744_v23, %v831_v10  ;;  %v1193_v47 = vmul.f32 %v6744_v23, %v813_v57 }
 0x23c   : > { %v8595_v35 = vadd.f32 1e-05, %v3061_v42  ;;  %2892 = vmatpush.bf16.xpose.msra.mxu2 %v1439_v13  ;;  %v3236_v23 = vpop.trf.xlu1 }
 0x23d   : > { %2840 = vmatmul.bf16.vlgmr.msra.gmra.mxu0 %v7224_v2  ;;  %v2544_v62 = vadd.f32 %v8540_v7, %v2516_v3  ;;  %v2490_v2 = vadd.f32 %v2489_v19, %v8416_v22  ;;  %v499_v7 = vld [vmem:[%s9800_s2 + $0x50c] sm:$0xf]  ;;  %v1418_v10 = vpack.c.bf16 %v1220_v51, %v1211_v32  ;;  %v1409_v15 = vpack.c.bf16 %v1202_v11, %v1193_v47 }
 0x23e   : > { %6127 = vrsqrt.f32 %v8595_v35  ;;  %v2550_v24 = vpop.f32.mrf.mxu1  ;;  %v2571_v33 = vpop.f32.mrf.mxu2  ;;  %v843_v22 = vunpack.c.l.bf16 %v499_v7  ;;  %vm3073_vm11 = vweird.f32 %v8595_v35  ;;  %v9864_v19 = vld [vmem:[#allocation10_spill] sm:$0xff]  ;;  %v8652_v32 = vperm.slane %v8641_v37, 0 }
 0x23f   : > { %v8617_v28 = vadd.f32 %v2571_v33, %v2544_v62 }
 0x240   : > { %v1223_v63 = vmul.f32 %v7155_v12, %v843_v22 }
 0x241   : > { %3255 = vxpose.xlu2.b32.cont [8/16] (narrow) %v3199_v30, 56  ;;  %6051 = vmatmul.lmr.bf16.gmra.8.mxu3 }
 0x242   : > { %v2517_v40 = vpop.f32.mrf.mxu0  ;;  %v1421_v36 = vpack.c.bf16 %v1223_v63, %v1214_v46 }
 0x243   : > { %v2518_v0 = vadd.f32 %v2517_v40, %v2490_v2  ;;  %v2492_v4 = vpop.f32.mrf.mxu3  ;;  %2810 = vmatpush.bf16.xpose.msra.mxu3 %v1418_v10 }
 0x244   : > { %v6128_v50 = vpop.eup %6127  ;;  %2893 = vmatpush.bf16.xpose.msra.mxu2 %v1430_v16  ;;  %v2493_v3 = vadd.f32 %v2492_v4, %v8449_v43  ;;  %v8647_v43 = vld [vmem:[%s9802_s4] sm:$0x7] }
 0x245   : > { %v3068_v42 = vmul.f32 %v6128_v50, %v8595_v35  ;;  %v2546_v60 = vadd.f32 %v8553_v29, %v2518_v0  ;;  %v3200_v29 = vld [vmem:[%s9803_s5 + $0xc0] sm:$0xff]  ;;  %vm3074_vm10 = vweird.f32 %v6128_v50  ;;  %v8657_v2 = vperm.slane %v8647_v43, 0 }
 0x246   : > { %v8624_v21 = vpop.f32.mrf.mxu1  ;;  %v2573_v44 = vpop.f32.mrf.mxu2  ;;  %vm3075_vm12 = vmor %vm3073_vm11, %vm3074_vm10 }
 0x247   : > { %v3069_v17 = vmul.f32 %v6128_v50, %v3068_v42  ;;  %v8631_v38 = vadd.f32 %v2573_v44, %v2546_v60  ;;  %2878 = vmatmul.bf16.gmra.mxu1 %v9856_v26  ;;  %v9865_v26 = vld [vmem:[#allocation11_spill] sm:$0xff] }
 0x249   : > { %v3070_v34 = vmul.f32 0.5, %v3069_v17  ;;  %3256 = vxpose.xlu2.b32.cont [9/16] (narrow) %v3200_v29, 56  ;;  %6052 = vmatmul.lmr.bf16.gmra.8.mxu3  ;;  %v3237_v29 = vpop.trf.xlu1 }
 0x24a   : > { %v2520_v61 = vpop.f32.mrf.mxu0 }
 0x24b   : > { %v3071_v13 = vsub.f32 1.5, %v3070_v34  ;;  %v2521_v62 = vadd.f32 %v2520_v61, %v2493_v3  ;;  %2789 = vmatmul.bf16.gmra.mxu2 %v9864_v19  ;;  %v2494_v5 = vpop.f32.mrf.mxu3  ;;  %2811 = vmatpush.bf16.xpose.msra.mxu3 %v1409_v15 }
 0x24c   : > { %2894 = vmatpush.bf16.xpose.msra.mxu2 %v1421_v36 }
 0x24d   : > { %v3072_v24 = vmul.f32 %v6128_v50, %v3071_v13  ;;  %2845 = vmatmul.bf16.gmra.mxu0 %v9865_v26  ;;  %v2549_v51 = vadd.f32 %v8568_v14, %v2521_v62  ;;  %v484_v14 = vld [vmem:[%s9800_s2 + $0x4a0] sm:$0xf] }
 0x24e   : > { %v8665_v40 = vpop.f32.mrf.mxu1  ;;  %v2576_v16 = vpop.f32.mrf.mxu2 }
 0x24f   : > { %v3076_v58 = vsel %vm3075_vm12, %v6128_v50, %v3072_v24  ;;  %v8679_v42 = vadd.f32 %v2576_v16, %v2549_v51 }
 0x250   : > { %v8660_v33 = vmul.f32 %v3076_v58, %v8505_v53  ;;  %v3097_v35 = vmul.f32 %v3076_v58, %v8487_v48  ;;  %v3100_v7 = vmul.f32 %v3076_v58, %v8490_v49  ;;  %v3103_v30 = vmul.f32 %v3076_v58, %v8493_v31  ;;  %v489_v48 = vld [vmem:[%s9800_s2 + $0x4c4] sm:$0xf] }
 0x251   : > { %v3106_v50 = vmul.f32 %v3076_v58, %v8496_v9  ;;  %v3109_v0 = vmul.f32 %v3076_v58, %v8499_v18  ;;  %v3112_v53 = vmul.f32 %v3076_v58, %v8502_v39  ;;  %v816_v49 = vunpack.c.l.bf16 %v484_v14  ;;  %v3201_v9 = vld [vmem:[%s9803_s5 + $0xc8] sm:$0xff]  ;;  %6053 = vmatmul.lmr.bf16.gmra.8.mxu3 }
 0x252   : > { %v3126_v31 = vmul.f32 %v8652_v32, %v3097_v35  ;;  %v3129_v10 = vmul.f32 %v8652_v32, %v3100_v7  ;;  %v3132_v22 = vmul.f32 %v8652_v32, %v3103_v30  ;;  %v2522_v46 = vpop.f32.mrf.mxu0  ;;  %v825_v57 = vunpack.c.l.bf16 %v489_v48  ;;  %3257 = vxpose.xlu2.b32.cont [10/16] (narrow) %v3201_v9, 56  ;;  %v9867_v30 = vld [vmem:[#allocation15_spill] sm:$0xff] }
 0x253   : > { %v3135_v18 = vmul.f32 %v8652_v32, %v3106_v50  ;;  %v3138_v39 = vmul.f32 %v8652_v32, %v3109_v0  ;;  %v3141_v17 = vmul.f32 %v8652_v32, %v3112_v53  ;;  %v1196_v13 = vmul.f32 %v7155_v12, %v816_v49  ;;  %v5219_v46 = vld [vmem:[%s8737_s10 + $0xa8] sm:$0xf] }
 0x254   : > { %v3155_v4 = vadd.f32 %v8657_v2, %v3126_v31  ;;  %v3158_v60 = vadd.f32 %v8657_v2, %v3129_v10  ;;  %v3161_v63 = vadd.f32 %v8657_v2, %v3132_v22  ;;  %v1205_v15 = vmul.f32 %v7155_v12, %v825_v57  ;;  %v9866_v12 = vld [vmem:[#allocation14_spill] sm:$0xff]  ;;  %v3204_v10 = vld [vmem:[%s9803_s5 + $0xe0] sm:$0xff] }
 0x255   : > { %v3164_v8 = vadd.f32 %v8657_v2, %v3135_v18  ;;  %v3167_v34 = vadd.f32 %v8657_v2, %v3138_v39  ;;  %v3170_v3 = vadd.f32 %v8657_v2, %v3141_v17  ;;  %v3205_v57 = vld [vmem:[%s9803_s5 + $0xe8] sm:$0xff] }
 0x256   : > { %v3312_v44 = vadd.f32 %v8521_v54, %v3155_v4  ;;  %v3315_v47 = vadd.f32 %v8550_v59, %v3158_v60  ;;  %v3318_v11 = vadd.f32 %v8566_v27, %v3161_v63  ;;  %v2650_v19 = vpop.f32.mrf.mxu1  ;;  %v2578_v59 = vpop.f32.mrf.mxu2  ;;  %v1412_v58 = vpack.c.bf16 %v1205_v15, %v1196_v13  ;;  %v5730_v4 = vld [vmem:[%s8737_s10 + $0xb0] sm:$0xf0] }
 0x257   : > { %v3321_v61 = vadd.f32 %v8615_v55, %v3164_v8  ;;  %v3324_v62 = vadd.f32 %v3236_v23, %v3167_v34  ;;  %v3327_v36 = vadd.f32 %v3237_v29, %v3170_v3  ;;  %v2589_v27 = vpop.f32.mrf.mxu3  ;;  %v3202_v55 = vld [vmem:[%s9803_s5 + $0xd0] sm:$0xff]  ;;  %2883 = vmatmul.bf16.gmra.mxu1 %v7459_v52  ;;  %v3203_v52 = vld [vmem:[%s9803_s5 + $0xd8] sm:$0xff]  ;;  %v5220_v3 = vor.u32 %v5730_v4, %v5219_v46  ;;  %v5315_v29 = vld [vmem:[%s8737_s10 + $0x168] sm:$0xf] }
 0x258   : > { %v8698_v24 = vpack.c.bf16 %v3315_v47, %v3312_v44  ;;  %v2590_v51 = vadd.f32 %v2589_v27, %v8517_v45  ;;  %2895 = vmatpush.bf16.xpose.msra.mxu2 %v1412_v58  ;;  %v5754_v13 = vld [vmem:[%s8737_s10 + $0x170] sm:$0xf0] }
 0x259   : > { %v8701_v26 = vpack.c.bf16 %v3321_v61, %v3318_v11  ;;  %v8703_v54 = vpack.c.bf16 %v3327_v36, %v3324_v62  ;;  %6054 = vmatmul.lmr.bf16.gmra.8.mxu3  ;;  %v9870_v11 = vld [vmem:[#allocation5_spill] sm:$0xff]  ;;  %v5207_v62 = vld [vmem:[%s8737_s10 + $0x90] sm:$0xf]  ;;  %v5727_v36 = vld [vmem:[%s8737_s10 + $0x98] sm:$0xf0]  ;;  %v5316_v27 = vor.u32 %v5754_v13, %v5315_v29 }
 0x25a   : > { %v2617_v23 = vpop.f32.mrf.mxu0  ;;  %3258 = vxpose.xlu2.b32.cont [11/16] (narrow) %v3202_v55, 56  ;;  %v5208_v58 = vor.u32 %v5727_v36, %v5207_v62  ;;  %v3206_v55 = vld [vmem:[%s9803_s5 + $0xf0] sm:$0xff]  ;;  %v3209_v36 = vld [vmem:[%s9803_s5 + $0x108] sm:$0xff] }
 0x25b   : > { %v2618_v35 = vadd.f32 %v2617_v23, %v2590_v51  ;;  %2794 = vmatmul.bf16.gmra.mxu2 %v9866_v12  ;;  %v5303_v12 = vld [vmem:[%s8737_s10 + $0x150] sm:$0xf]  ;;  %v5718_v29 = vld [vmem:[%s8737_s10 + $0x50] sm:$0xf0] }
 0x25d   : > { %v8713_v7 = vadd.f32 %v8624_v21, %v2618_v35  ;;  %2850 = vmatmul.bf16.gmra.mxu0 %v9867_v30  ;;  %v9871_v35 = vld [vmem:[#allocation18_spill] sm:$0xff]  ;;  %v5751_v30 = vld [vmem:[%s8737_s10 + $0x158] sm:$0xf0] }
 0x25e   : > { %v2652_v45 = vpop.f32.mrf.mxu1  ;;  %v2627_v14 = vpop.f32.mrf.mxu2 }
 0x25f   : > { %v2591_v5 = vpop.f32.mrf.mxu3 }
 0x260   : > { %v2592_v50 = vadd.f32 %v2591_v5, %v8543_v56  ;;  %v5724_v5 = vld [vmem:[%s8737_s10 + $0x80] sm:$0xf0] }
 0x261   : > { %6055 = vmatmul.lmr.bf16.gmra.8.mxu3 }
 0x262   : > { %v2619_v0 = vpop.f32.mrf.mxu0  ;;  %3259 = vxpose.xlu2.b32.cont [12/16] (narrow) %v3203_v52, 56 }
 0x263   : > { %v2620_v53 = vadd.f32 %v2619_v0, %v2592_v50  ;;  %v5304_v0 = vor.u32 %v5751_v30, %v5303_v12  ;;  %v5715_v30 = vld [vmem:[%s8737_s10 + $0x38] sm:$0xf0] }
 0x265   : > { %v8721_v21 = vadd.f32 %v8665_v40, %v2620_v53  ;;  %v9868_v40 = vld [vmem:[#allocation16_spill] sm:$0xff] }
 0x266   : > { %v8725_v48 = vpop.f32.mrf.mxu1  ;;  %v8727_v31 = vpop.f32.mrf.mxu2 }
 0x267   : > { %v2930_v16 = vadd.f32 %v8721_v21, %v8713_v7  ;;  %v2594_v49 = vpop.f32.mrf.mxu3 }
 0x268   : > { %v2595_v56 = vadd.f32 %v2594_v49, %v8556_v25  ;;  %v9869_v25 = vld [vmem:[#allocation17_spill] sm:$0xff]  ;;  %v9872_v49 = vld [vmem:[#allocation7_spill] sm:$0xff] }
 0x269   : > { %6056 = vmatmul.lmr.bf16.gmra.8.mxu3 }
 0x26a   : > { %v2622_v22 = vpop.f32.mrf.mxu0  ;;  %3260 = vxpose.xlu2.b32.cont [13/16] (narrow) %v3204_v10, 56  ;;  %v5748_v10 = vld [vmem:[%s8737_s10 + $0x140] sm:$0xf0] }
 0x26b   : > { %v2623_v9 = vadd.f32 %v2622_v22, %v2595_v56  ;;  %2799 = vmatmul.bf16.gmra.mxu2 %v9868_v40  ;;  %v5291_v56 = vld [vmem:[%s8737_s10 + $0x138] sm:$0xf]  ;;  %v5721_v40 = vld [vmem:[%s8737_s10 + $0x68] sm:$0xf0] }
 0x26c   : > { %v5292_v4 = vor.u32 %v5748_v10, %v5291_v56 }
 0x26d   : > { %v8739_v18 = vadd.f32 %v2650_v19, %v2623_v9  ;;  %2855 = vmatmul.bf16.gmra.mxu0 %v9869_v25  ;;  %v5183_v9 = vld [vmem:[%s8737_s10 + $0x60] sm:$0xf] }
 0x26e   : > { %v8743_v17 = vpop.f32.mrf.mxu1  ;;  %v8747_v63 = vpop.f32.mrf.mxu2  ;;  %v3208_v25 = vld [vmem:[%s9803_s5 + $0x100] sm:$0xff] }
 0x26f   : > { %v2931_v39 = vadd.f32 %v2930_v16, %v8739_v18  ;;  %v2596_v60 = vpop.f32.mrf.mxu3  ;;  %v3207_v16 = vld [vmem:[%s9803_s5 + $0xf8] sm:$0xff]  ;;  %3280 = vxpose.xlu0.b32.start [1/8] (short) (narrow) %v3208_v25, 56 }
 0x270   : > { %v2597_v8 = vadd.f32 %v2596_v60, %v8584_v1 }
 0x271   : > { %2812 = vmatmul.bf16.vlgmr.msra.gmra.mxu3 %v9870_v11  ;;  %v5171_v11 = vld [vmem:[%s8737_s10 + $0x48] sm:$0xf] }
 0x272   : > { %v2624_v34 = vpop.f32.mrf.mxu0  ;;  %3261 = vxpose.xlu2.b32.cont [14/16] (narrow) %v3205_v57, 56  ;;  %4237 = vmatpush.bf16.xpose.msra.mxu3 %v5220_v3  ;;  %v5184_v57 = vor.u32 %v5721_v40, %v5183_v9  ;;  %v5745_v3 = vld [vmem:[%s8737_s10 + $0x128] sm:$0xf0] }
 0x273   : > { %v2625_v44 = vadd.f32 %v2624_v34, %v2597_v8  ;;  %v9873_v8 = vld [vmem:[#allocation19_spill] sm:$0xff]  ;;  %v5279_v34 = vld [vmem:[%s8737_s10 + $0x120] sm:$0xf] }
 0x275   : > { %v8753_v47 = vadd.f32 %v2652_v45, %v2625_v44 }
 0x276   : > { %v8758_v61 = vpop.f32.mrf.mxu1  ;;  %v2634_v15 = vpop.f32.mrf.mxu2 }
 0x277   : > { %v8763_v19 = vadd.f32 %v2931_v39, %v8753_v47  ;;  %v2599_v1 = vpop.f32.mrf.mxu3  ;;  %3281 = vxpose.xlu0.b32.cont [2/8] (short) (narrow) %v3209_v36, 56 }
 0x278   : > { %v2600_v59 = vadd.f32 %v2599_v1, %v8617_v28  ;;  %v5195_v28 = vld [vmem:[%s8737_s10 + $0x78] sm:$0xf]  ;;  %v5280_v1 = vor.u32 %v5745_v3, %v5279_v34 }
 0x279   : > { %v5196_v53 = vor.u32 %v5724_v5, %v5195_v28  ;;  %v5729_v28 = vld [vmem:[%s8737_s10 + $0xac] sm:$0xf]  ;;  %v5221_v5 = vld [vmem:[%s8737_s10 + $0xb4] sm:$0xf0] }
 0x27a   : > { %v8766_v51 = vpop.f32.mrf.mxu0  ;;  %v2628_v23 = vadd.f32 %v2627_v14, %v2600_v59  ;;  %3262 = vxpose.xlu2.b32.cont [15/16] (narrow) %v3206_v55, 56  ;;  %4238 = vmatpush.bf16.xpose.msra.mxu3 %v5208_v58  ;;  %v5172_v59 = vor.u32 %v5718_v29, %v5171_v11  ;;  %v5159_v58 = vld [vmem:[%s8737_s10 + $0x30] sm:$0xf]  ;;  %v5267_v55 = vld [vmem:[%s8737_s10 + $0x108] sm:$0xf] }
 0x27b   : > { %2896 = vmatmul.bf16.vlgmr.msra.gmra.mxu2 %v9871_v35  ;;  %v5742_v35 = vld [vmem:[%s8737_s10 + $0x110] sm:$0xf0]  ;;  %v5160_v40 = vor.u32 %v5715_v30, %v5159_v58  ;;  %v5712_v11 = vld [vmem:[%s8737_s10 + $0x20] sm:$0xf0]  ;;  %v5243_v30 = vld [vmem:[%s8737_s10 + $0xd8] sm:$0xf] }
 0x27c   : > { %4321 = vmatpush.bf16.xpose.msra.mxu2 %v5316_v27  ;;  %v9874_v27 = vld [vmem:[#allocation9_spill] sm:$0xff]  ;;  %v5268_v10 = vor.u32 %v5742_v35, %v5267_v55  ;;  %v5726_v29 = vld [vmem:[%s8737_s10 + $0x94] sm:$0xf] }
 0x27d   : > { %v9875_v55 = vld [vmem:[#allocation13_spill] sm:$0xff] }
 0x27e   : > { %v8774_v45 = vpop.f32.mrf.mxu1  ;;  %v8778_v52 = vpop.f32.mrf.mxu2  ;;  %v5135_v35 = vld [vmem:[%s8737_s10] sm:$0xf] }
 0x27f   : > { %v2601_v50 = vpop.f32.mrf.mxu3 }
 0x280   : > { %v2602_v25 = vadd.f32 %v2601_v50, %v8631_v38 }
 0x281   : > { %2817 = vmatmul.bf16.gmra.mxu3 %v9872_v49  ;;  %v5224_v49 = vor.u32 %v5729_v28, %v5221_v5  ;;  %v5736_v28 = vld [vmem:[%s8737_s10 + $0xe0] sm:$0xf0] }
 0x282   : > { %v8780_v14 = vpop.f32.mrf.mxu0  ;;  %3263 = vxpose.xlu2.b32.end [16/16] (narrow) %v3207_v16, 56  ;;  %4239 = vmatpush.bf16.xpose.msra.mxu3 %v5196_v53  ;;  %v3210_v16 = vld [vmem:[%s9803_s5 + $0x110] sm:$0xff]  ;;  %v2630_v3 = vadd.f32 %v8727_v31, %v2602_v25 }
 0x283   : > { %3282 = vxpose.xlu0.b32.cont [3/8] (short) (narrow) %v3210_v16, 56  ;;  %4265 = vmatpush.bf16.xpose.msra.mxu0 %v5224_v49  ;;  %v5709_v16 = vld [vmem:[%s8737_s10 + $0x8] sm:$0xf0]  ;;  %v5723_v49 = vld [vmem:[%s8737_s10 + $0x7c] sm:$0xf] }
 0x284   : > { %4322 = vmatpush.bf16.xpose.msra.mxu2 %v5304_v0 }
 0x286   : > { %v8788_v22 = vpop.f32.mrf.mxu1  ;;  %v8797_v46 = vpop.f32.mrf.mxu2 }
 0x287   : > { %v8795_v39 = vpop.f32.mrf.mxu3 }
 0x28a   : > { %v8799_v60 = vpop.f32.mrf.mxu0  ;;  %4240 = vmatpush.bf16.xpose.msra.mxu3 %v5184_v57  ;;  %v5255_v57 = vld [vmem:[%s8737_s10 + $0xf0] sm:$0xf] }
 0x28b   : > { %2901 = vmatmul.bf16.gmra.mxu2 %v9873_v8  ;;  %v5739_v8 = vld [vmem:[%s8737_s10 + $0xf8] sm:$0xf0] }
 0x28c   : > { %4323 = vmatpush.bf16.xpose.msra.mxu2 %v5292_v4 }
 0x28e   : > { %v8804_v44 = vpop.f32.mrf.mxu1  ;;  %v8808_v62 = vpop.f32.mrf.mxu2 }
 0x28f   : > { %v2606_v13 = vpop.f32.mrf.mxu3 }
 0x290   : > { %v5209_v13 = vld [vmem:[%s8737_s10 + $0x9c] sm:$0xf0] }
 0x291   : > { %2822 = vmatmul.bf16.gmra.mxu3 %v9874_v27  ;;  %v2605_v27 = vadd.f32 %v8795_v39, %v8679_v42  ;;  %v3212_v42 = vld [vmem:[%s9803_s5 + $0x120] sm:$0xff] }
 0x292   : > { %v8813_v15 = vpop.f32.mrf.mxu0  ;;  %4241 = vmatpush.bf16.xpose.msra.mxu3 %v5172_v59 }
 0x294   : > { %4324 = vmatpush.bf16.xpose.msra.mxu2 %v5280_v1  ;;  %v5256_v1 = vor.u32 %v5739_v8, %v5255_v57  ;;  %v5136_v57 = vor.u32 %v5709_v16, %v5135_v35 }
 0x296   : > { %v8819_v12 = vpop.f32.mrf.mxu1  ;;  %v8824_v53 = vpop.f32.mrf.mxu2 }
 0x297   : > { %v2655_v0 = vpop.f32.mrf.mxu3 }
 0x298   : > { %v8829_v56 = vadd.f32 %v2655_v0, %v2628_v23  ;;  %v5147_v23 = vld [vmem:[%s8737_s10 + $0x18] sm:$0xf]  ;;  %v2633_v0 = vadd.f32 %v8747_v63, %v2605_v27 }
 0x299   : > { %v5148_v59 = vor.u32 %v5712_v11, %v5147_v23  ;;  %v5244_v23 = vor.u32 %v5736_v28, %v5243_v30 }
 0x29a   : > { %v8831_v9 = vpop.f32.mrf.mxu0  ;;  %v2933_v4 = vadd.f32 %v8763_v19, %v8829_v56  ;;  %4242 = vmatpush.bf16.xpose.msra.mxu3 %v5160_v40  ;;  %v5212_v19 = vor.u32 %v5726_v29, %v5209_v13  ;;  %v5733_v29 = vld [vmem:[%s8737_s10 + $0xc8] sm:$0xf0] }
 0x29b   : > { %2906 = vmatmul.bf16.gmra.mxu2 %v8453_v6  ;;  %v3211_v6 = vld [vmem:[%s9803_s5 + $0x118] sm:$0xff]  ;;  %v5753_v13 = vld [vmem:[%s8737_s10 + $0x16c] sm:$0xf] }
 0x29c   : > { %4325 = vmatpush.bf16.xpose.msra.mxu2 %v5268_v10  ;;  %3283 = vxpose.xlu0.b32.cont [4/8] (short) (narrow) %v3211_v6, 56  ;;  %v5197_v10 = vld [vmem:[%s8737_s10 + $0x84] sm:$0xf0]  ;;  %v5317_v6 = vld [vmem:[%s8737_s10 + $0x174] sm:$0xf0] }
 0x29d   : > { %4266 = vmatpush.bf16.xpose.msra.mxu0 %v5212_v19  ;;  %v5200_v39 = vor.u32 %v5723_v49, %v5197_v10  ;;  %v5720_v19 = vld [vmem:[%s8737_s10 + $0x64] sm:$0xf]  ;;  %v5777_v49 = vld [vmem:[%s8737_s10 + $0x22c] sm:$0xf] }
 0x29e   : > { %v2774_v34 = vpop.f32.mrf.mxu1  ;;  %v8844_v38 = vpop.f32.mrf.mxu2 }
 0x29f   : > { %v2657_v36 = vpop.f32.mrf.mxu3 }
 0x2a0   : > { %v8849_v50 = vadd.f32 %v2657_v36, %v2630_v3  ;;  %v5231_v3 = vld [vmem:[%s8737_s10 + $0xc0] sm:$0xf] }
 0x2a1   : > { %2827 = vmatmul.bf16.gmra.mxu3 %v9875_v55  ;;  %v5232_v35 = vor.u32 %v5733_v29, %v5231_v3  ;;  %v3214_v29 = vld [vmem:[%s9803_s5 + $0x130] sm:$0xff] }
 0x2a2   : > { %v8851_v31 = vpop.f32.mrf.mxu0  ;;  %v2934_v58 = vadd.f32 %v2933_v4, %v8849_v50  ;;  %4243 = vmatpush.bf16.xpose.msra.mxu3 %v5148_v59 }
 0x2a4   : > { %4326 = vmatpush.bf16.xpose.msra.mxu2 %v5256_v1  ;;  %3284 = vxpose.xlu0.b32.cont [5/8] (short) (narrow) %v3212_v42, 56  ;;  %v5185_v1 = vld [vmem:[%s8737_s10 + $0x6c] sm:$0xf0]  ;;  %v5750_v42 = vld [vmem:[%s8737_s10 + $0x154] sm:$0xf] }
 0x2a5   : > { %4267 = vmatpush.bf16.xpose.msra.mxu0 %v5200_v39 }
 0x2a6   : > { %v8860_v5 = vpop.f32.mrf.mxu1  ;;  %v8866_v25 = vpop.f32.mrf.mxu2 }
 0x2a7   : > { %v2660_v40 = vpop.f32.mrf.mxu3 }
 0x2a8   : > { %v2661_v4 = vadd.f32 %v2660_v40, %v2633_v0  ;;  %v5320_v0 = vor.u32 %v5753_v13, %v5317_v6  ;;  %v5413_v40 = vld [vmem:[%s8737_s10 + $0x234] sm:$0xf0] }
 0x2aa   : > { %v8871_v63 = vpop.f32.mrf.mxu0  ;;  %v2935_v8 = vsel %vm2921_vm8, %v2661_v4, 0.0  ;;  %4244 = vmatpush.bf16.xpose.msra.mxu3 %v5136_v57  ;;  %v5717_v57 = vld [vmem:[%s8737_s10 + $0x4c] sm:$0xf] }
 0x2ab   : > { %v2936_v34 = vadd.f32 %v2935_v8, %v2934_v58  ;;  %2911 = vmatmul.bf16.gmra.mxu2 %v8519_v41  ;;  %v3213_v41 = vld [vmem:[%s9803_s5 + $0x128] sm:$0xff]  ;;  %v5188_v58 = vor.u32 %v5720_v19, %v5185_v1  ;;  %v5173_v8 = vld [vmem:[%s8737_s10 + $0x54] sm:$0xf0]  ;;  %v5416_v19 = vor.u32 %v5777_v49, %v5413_v40  ;;  %v5161_v40 = vld [vmem:[%s8737_s10 + $0x3c] sm:$0xf0] }
 0x2ac   : > { %4327 = vmatpush.bf16.xpose.msra.mxu2 %v5244_v23  ;;  %3285 = vxpose.xlu0.b32.cont [6/8] (short) (narrow) %v3213_v41, 56  ;;  %v5305_v23 = vld [vmem:[%s8737_s10 + $0x15c] sm:$0xf0]  ;;  %v5176_v13 = vor.u32 %v5717_v57, %v5173_v8  ;;  %v3215_v8 = vld [vmem:[%s9803_s5 + $0x138] sm:$0xff] }
 0x2ad   : > { %v2937_v11 = vrot.slane %v2936_v34, 4  ;;  %4268 = vmatpush.bf16.xpose.msra.mxu0 %v5188_v58 }
 0x2ae   : > { %v8878_v36 = vpop.f32.mrf.mxu1  ;;  %v8883_v55 = vpop.f32.mrf.mxu2 }
 0x2af   : > { %v2938_v59 = vadd.f32 %v2937_v11, %v2936_v34  ;;  %v2662_v27 = vpop.f32.mrf.mxu3 }
 0x2b0   : > { %v5308_v27 = vor.u32 %v5750_v42, %v5305_v23 }
 0x2b1   : > { %v2939_v30 = vrot.slane %v2938_v59, 2  ;;  %4245 = vmatmul.bf16.vlgmr.msra.gmra.mxu3 %v8698_v24 }
 0x2b2   : > { %v2746_v28 = vpop.f32.mrf.mxu0  ;;  %4349 = vmatpush.bf16.xpose.msra.mxu3 %v5320_v0  ;;  %v5401_v0 = vld [vmem:[%s8737_s10 + $0x21c] sm:$0xf0] }
 0x2b3   : > { %v2940_v16 = vadd.f32 %v2939_v30, %v2938_v59 }
 0x2b4   : > { %4328 = vmatpush.bf16.xpose.msra.mxu2 %v5232_v35  ;;  %3286 = vxpose.xlu0.b32.cont [7/8] (short) (narrow) %v3214_v29, 56  ;;  %v8947_v29 = vpop.trf.xlu2 }
 0x2b5   : > { %v2941_v10 = vrot.slane %v2940_v16, 1  ;;  %4269 = vmatpush.bf16.xpose.msra.mxu0 %v5176_v13 }
 0x2b6   : > { %v8892_v39 = vpop.f32.mrf.mxu1  ;;  %v2690_v3 = vpop.f32.mrf.mxu2 }
 0x2b7   : > { %v2942_v34 = vadd.f32 %v2941_v10, %v2940_v16  ;;  %v2701_v11 = vpop.f32.mrf.mxu3  ;;  %v5747_v16 = vld [vmem:[%s8737_s10 + $0x13c] sm:$0xf]  ;;  %v5293_v10 = vld [vmem:[%s8737_s10 + $0x144] sm:$0xf0] }
 0x2b8   : > { %v2702_v6 = vadd.f32 %v2701_v11, %v8778_v52 }
 0x2b9   : > { %v2972_v1 = vmul.f32 %v8474_v20, %v2942_v34 }
 0x2ba   : > { %v8902_v59 = vpop.f32.mrf.mxu0  ;;  %v2730_v41 = vadd.f32 %v8766_v51, %v2702_v6  ;;  %4350 = vmatpush.bf16.xpose.msra.mxu3 %v5308_v27 }
 0x2bb   : > { %v8906_v58 = vsub.f32 %v8713_v7, %v2972_v1  ;;  %v8909_v35 = vsub.f32 %v8721_v21, %v2972_v1  ;;  %v8912_v52 = vsub.f32 %v8739_v18, %v2972_v1  ;;  %v8915_v30 = vsub.f32 %v8753_v47, %v2972_v1  ;;  %4329 = vmatmul.bf16.vlgmr.msra.gmra.mxu2 %v8698_v24  ;;  %v5774_v47 = vld [vmem:[%s8737_s10 + $0x214] sm:$0xf] }
 0x2bc   : > { %v8919_v28 = vsub.f32 %v8829_v56, %v2972_v1  ;;  %v8922_v7 = vsub.f32 %v8849_v50, %v2972_v1  ;;  %v8924_v51 = vsub.f32 %v2661_v4, %v2972_v1  ;;  %4433 = vmatpush.bf16.xpose.msra.mxu2 %v5416_v19  ;;  %v2758_v56 = vadd.f32 %v8725_v48, %v2730_v41  ;;  %v5714_v50 = vld [vmem:[%s8737_s10 + $0x34] sm:$0xf] }
 0x2bd   : > { %v2996_v21 = vmul.f32 %v8906_v58, %v8906_v58  ;;  %v2999_v18 = vmul.f32 %v8909_v35, %v8909_v35  ;;  %v3002_v4 = vmul.f32 %v8912_v52, %v8912_v52  ;;  %v5164_v34 = vor.u32 %v5714_v50, %v5161_v40  ;;  %3287 = vxpose.xlu0.b32.end [8/8] (short) (narrow) %v3215_v8, 56  ;;  %v5281_v50 = vld [vmem:[%s8737_s10 + $0x12c] sm:$0xf0]  ;;  %v5711_v40 = vld [vmem:[%s8737_s10 + $0x1c] sm:$0xf] }
 0x2be   : > { %v8933_v49 = vpop.f32.mrf.mxu1  ;;  %v2785_v57 = vpop.f32.mrf.mxu2  ;;  %v5404_v48 = vor.u32 %v5774_v47, %v5401_v0  ;;  %v3005_v13 = vmul.f32 %v8915_v30, %v8915_v30  ;;  %v5296_v1 = vor.u32 %v5747_v16, %v5293_v10  ;;  %v3008_v27 = vmul.f32 %v8919_v28, %v8919_v28  ;;  %v5771_v0 = vld [vmem:[%s8737_s10 + $0x1fc] sm:$0xf]  ;;  %v5389_v16 = vld [vmem:[%s8737_s10 + $0x204] sm:$0xf0] }
 0x2bf   : > { %v3029_v42 = vadd.f32 %v2999_v18, %v2996_v21  ;;  %v2703_v23 = vpop.f32.mrf.mxu3  ;;  %v8945_v11 = vadd.f32 %v2785_v57, %v2758_v56  ;;  %4270 = vmatpush.bf16.xpose.msra.mxu0 %v5164_v34  ;;  %v3014_v21 = vmul.f32 %v8924_v51, %v8924_v51  ;;  %v3011_v18 = vmul.f32 %v8922_v7, %v8922_v7  ;;  %v5744_v56 = vld [vmem:[%s8737_s10 + $0x124] sm:$0xf] }
 0x2c0   : > { %v2704_v3 = vadd.f32 %v2703_v23, %v8797_v46 }
 0x2c1   : > { %v3030_v6 = vadd.f32 %v3029_v42, %v3002_v4  ;;  %4250 = vmatmul.bf16.gmra.mxu3 %v8701_v26  ;;  %v5149_v4 = vld [vmem:[%s8737_s10 + $0x24] sm:$0xf0]  ;;  %v3034_v34 = vsel %vm2921_vm8, %v3014_v21, 0.0  ;;  %v5768_v21 = vld [vmem:[%s8737_s10 + $0x1e4] sm:$0xf] }
 0x2c2   : > { %v8951_v19 = vpop.f32.mrf.mxu0  ;;  %v2732_v46 = vadd.f32 %v8780_v14, %v2704_v3  ;;  %4351 = vmatpush.bf16.xpose.msra.mxu3 %v5296_v1  ;;  %v5152_v8 = vor.u32 %v5711_v40, %v5149_v4  ;;  %v5284_v1 = vor.u32 %v5744_v56, %v5281_v50  ;;  %v5269_v56 = vld [vmem:[%s8737_s10 + $0x114] sm:$0xf0]  ;;  %v5137_v50 = vld [vmem:[%s8737_s10 + $0xc] sm:$0xf0] }
 0x2c3   : > { %v3031_v41 = vadd.f32 %v3030_v6, %v3005_v13  ;;  %v5392_v13 = vor.u32 %v5771_v0, %v5389_v16 }
 0x2c4   : > { %4434 = vmatpush.bf16.xpose.msra.mxu2 %v5404_v48  ;;  %v2760_v10 = vadd.f32 %v8743_v17, %v2732_v46 }
 0x2c5   : > { %v3032_v47 = vadd.f32 %v3031_v41, %v3008_v27  ;;  %v8977_v27 = vpop.trf.xlu2 }
 0x2c6   : > { %v8964_v14 = vpop.f32.mrf.mxu1  ;;  %v2787_v57 = vpop.f32.mrf.mxu2 }
 0x2c7   : > { %v3033_v42 = vadd.f32 %v3032_v47, %v3011_v18  ;;  %v2706_v23 = vpop.f32.mrf.mxu3  ;;  %v8972_v48 = vadd.f32 %v2787_v57, %v2760_v10  ;;  %4271 = vmatpush.bf16.xpose.msra.mxu0 %v5152_v8  ;;  %v5377_v18 = vld [vmem:[%s8737_s10 + $0x1ec] sm:$0xf0]  ;;  %v5741_v47 = vld [vmem:[%s8737_s10 + $0x10c] sm:$0xf]  ;;  %v5708_v10 = vld [vmem:[%s8737_s10 + $0x4] sm:$0xf] }
 0x2c8   : > { %v2707_v3 = vadd.f32 %v2706_v23, %v8808_v62  ;;  %v5380_v8 = vor.u32 %v5768_v21, %v5377_v18 }
 0x2c9   : > { %v3035_v6 = vadd.f32 %v3034_v34, %v3033_v42  ;;  %v5140_v42 = vor.u32 %v5708_v10, %v5137_v50 }
 0x2ca   : > { %v8974_v17 = vpop.f32.mrf.mxu0  ;;  %v2735_v46 = vadd.f32 %v8799_v60, %v2707_v3  ;;  %4352 = vmatpush.bf16.xpose.msra.mxu3 %v5284_v1 }
 0x2cb   : > { %v3036_v41 = vrot.slane %v3035_v6, 4  ;;  %4334 = vmatmul.bf16.gmra.mxu2 %v8701_v26 }
 0x2cc   : > { %4435 = vmatpush.bf16.xpose.msra.mxu2 %v5392_v13  ;;  %v2763_v16 = vadd.f32 %v8758_v61, %v2735_v46  ;;  %v5272_v61 = vor.u32 %v5741_v47, %v5269_v56  ;;  %v5738_v47 = vld [vmem:[%s8737_s10 + $0xf4] sm:$0xf] }
 0x2cd   : > { %v3037_v62 = vadd.f32 %v3036_v41, %v3035_v6  ;;  %v8995_v1 = vpop.trf.xlu2  ;;  %v5365_v41 = vld [vmem:[%s8737_s10 + $0x1d4] sm:$0xf0] }
 0x2ce   : > { %v8983_v0 = vpop.f32.mrf.mxu1  ;;  %v2790_v4 = vpop.f32.mrf.mxu2 }
 0x2cf   : > { %v3038_v40 = vrot.slane %v3037_v62, 2  ;;  %v2708_v60 = vpop.f32.mrf.mxu3  ;;  %v8990_v57 = vadd.f32 %v2790_v4, %v2763_v16  ;;  %4272 = vmatpush.bf16.xpose.msra.mxu0 %v5140_v42  ;;  %v5257_v16 = vld [vmem:[%s8737_s10 + $0xfc] sm:$0xf0] }
 0x2d0   : > { %v2709_v23 = vadd.f32 %v2708_v60, %v8824_v53  ;;  %v5765_v53 = vld [vmem:[%s8737_s10 + $0x1cc] sm:$0xf] }
 0x2d1   : > { %v3039_v34 = vadd.f32 %v3038_v40, %v3037_v62  ;;  %4255 = vmatmul.bf16.gmra.mxu3 %v8703_v54  ;;  %v3144_v62 = vmul.f32 %v8652_v32, %v8660_v33  ;;  %v5368_v60 = vor.u32 %v5765_v53, %v5365_v41  ;;  %v5260_v33 = vor.u32 %v5738_v47, %v5257_v16  ;;  %v5245_v53 = vld [vmem:[%s8737_s10 + $0xe4] sm:$0xf0] }
 0x2d2   : > { %v8992_v3 = vpop.f32.mrf.mxu0  ;;  %v2737_v13 = vadd.f32 %v8813_v15, %v2709_v23  ;;  %4353 = vmatpush.bf16.xpose.msra.mxu3 %v5272_v61  ;;  %v3238_v23 = vpop.trf.xlu1 }
 0x2d3   : > { %v3040_v6 = vrot.slane %v3039_v34, 1 }
 0x2d4   : > { %4436 = vmatpush.bf16.xpose.msra.mxu2 %v5380_v8  ;;  %v2765_v18 = vadd.f32 %v8774_v45, %v2737_v13  ;;  %v3173_v45 = vadd.f32 %v8657_v2, %v3144_v62  ;;  %v5353_v8 = vld [vmem:[%s8737_s10 + $0x1bc] sm:$0xf0] }
 0x2d5   : > { %v3041_v46 = vadd.f32 %v3040_v6, %v3039_v34  ;;  %v9018_v61 = vpop.trf.xlu2 }
 0x2d6   : > { %v9002_v21 = vpop.f32.mrf.mxu1  ;;  %v2792_v10 = vpop.f32.mrf.mxu2  ;;  %v3330_v34 = vadd.f32 %v3238_v23, %v3173_v45  ;;  %v5233_v45 = vld [vmem:[%s8737_s10 + $0xcc] sm:$0xf0] }
 0x2d7   : > { %v3062_v15 = vmul.f32 %v3041_v46, %v8474_v20  ;;  %v2711_v56 = vpop.f32.mrf.mxu3  ;;  %v9009_v40 = vadd.f32 %v2792_v10, %v2765_v18  ;;  %v5735_v46 = vld [vmem:[%s8737_s10 + $0xdc] sm:$0xf] }
 0x2d8   : > { %v2712_v50 = vadd.f32 %v2711_v56, %v8844_v38  ;;  %v5762_v38 = vld [vmem:[%s8737_s10 + $0x1b4] sm:$0xf]  ;;  %v9030_v56 = vpack.c.bf16 %v3330_v34, %v3330_v34 }
 0x2d9   : > { %v3065_v4 = vadd.f32 1e-05, %v3062_v15  ;;  %v5356_v18 = vor.u32 %v5762_v38, %v5353_v8  ;;  %v5248_v15 = vor.u32 %v5735_v46, %v5245_v53 }
 0x2da   : > { %v9011_v32 = vpop.f32.mrf.mxu0  ;;  %v2740_v42 = vadd.f32 %v8831_v9, %v2712_v50  ;;  %4354 = vmatpush.bf16.xpose.msra.mxu3 %v5260_v33  ;;  %v5759_v50 = vld [vmem:[%s8737_s10 + $0x19c] sm:$0xf]  ;;  %v5732_v33 = vld [vmem:[%s8737_s10 + $0xc4] sm:$0xf] }
 0x2db   : > { %6129 = vrsqrt.f32 %v3065_v4  ;;  %4339 = vmatmul.bf16.gmra.mxu2 %v8703_v54  ;;  %v5236_v46 = vor.u32 %v5732_v33, %v5233_v45  ;;  %vm3083_vm14 = vweird.f32 %v3065_v4 }
 0x2dc   : > { %4437 = vmatpush.bf16.xpose.msra.mxu2 %v5368_v60  ;;  %v2768_v6 = vadd.f32 %v8788_v22, %v2740_v42  ;;  %v5341_v60 = vld [vmem:[%s8737_s10 + $0x1a4] sm:$0xf0] }
 0x2dd   : > { %v5344_v34 = vor.u32 %v5759_v50, %v5341_v60 }
 0x2de   : > { %v2886_v13 = vpop.f32.mrf.mxu1  ;;  %v2795_v9 = vpop.f32.mrf.mxu2 }
 0x2df   : > { %v2713_v2 = vpop.f32.mrf.mxu3  ;;  %v9026_v62 = vadd.f32 %v2795_v9, %v2768_v6  ;;  %v3268_v13 = vpop.trf.xlu2  ;;  %v9046_v9 = vperm.slane %v8641_v37, 1  ;;  %v5329_v37 = vld [vmem:[%s8737_s10 + $0x18c] sm:$0xf0] }
 0x2e0   : > { %v9024_v41 = vadd.f32 %v2713_v2, %v8866_v25 }
 0x2e1   : > { %v6130_v47 = vpop.eup %6129  ;;  %4260 = vmatmul.bf16.gmra.mxu3 %v9030_v56 }
 0x2e2   : > { %v9028_v16 = vpop.f32.mrf.mxu0  ;;  %v3078_v22 = vmul.f32 %v6130_v47, %v3065_v4  ;;  %4355 = vmatpush.bf16.xpose.msra.mxu3 %v5248_v15  ;;  %vm3084_vm13 = vweird.f32 %v6130_v47 }
 0x2e3   : > { %vm3085_vm15 = vmor %vm3083_vm14, %vm3084_vm13 }
 0x2e4   : > { %v3079_v10 = vmul.f32 %v6130_v47, %v3078_v22  ;;  %4438 = vmatpush.bf16.xpose.msra.mxu2 %v5356_v18 }
 0x2e6   : > { %v3080_v25 = vmul.f32 0.5, %v3079_v10  ;;  %v9037_v23 = vpop.f32.mrf.mxu2  ;;  %v5756_v10 = vld [vmem:[%s8737_s10 + $0x184] sm:$0xf] }
 0x2e7   : > { %v2716_v42 = vpop.f32.mrf.mxu3 }
 0x2e8   : > { %v3081_v38 = vsub.f32 1.5, %v3080_v25  ;;  %v2717_v8 = vadd.f32 %v2716_v42, %v8883_v55  ;;  %v9050_v55 = vperm.slane %v8647_v43, 1 }
 0x2ea   : > { %v9040_v6 = vpop.f32.mrf.mxu0  ;;  %v3082_v53 = vmul.f32 %v6130_v47, %v3081_v38  ;;  %v9043_v2 = vadd.f32 %v8871_v63, %v2717_v8  ;;  %4356 = vmatpush.bf16.xpose.msra.mxu3 %v5236_v46 }
 0x2eb   : > { %4344 = vmatmul.bf16.gmra.mxu2 %v9030_v56 }
 0x2ec   : > { %v3086_v18 = vsel %vm3085_vm15, %v6130_v47, %v3082_v53  ;;  %4439 = vmatpush.bf16.xpose.msra.mxu2 %v5344_v34 }
 0x2ed   : > { %v9053_v15 = vmul.f32 %v3086_v18, %v8924_v51  ;;  %v3098_v22 = vmul.f32 %v3086_v18, %v8906_v58  ;;  %v3101_v4 = vmul.f32 %v3086_v18, %v8909_v35  ;;  %v3104_v63 = vmul.f32 %v3086_v18, %v8912_v52 }
 0x2ee   : > { %v3107_v50 = vmul.f32 %v3086_v18, %v8915_v30  ;;  %v3110_v47 = vmul.f32 %v3086_v18, %v8919_v28  ;;  %v3113_v43 = vmul.f32 %v3086_v18, %v8922_v7  ;;  %v9066_v33 = vpop.f32.mrf.mxu2  ;;  %v5332_v30 = vor.u32 %v5756_v10, %v5329_v37 }
 0x2ef   : > { %v3127_v60 = vmul.f32 %v9046_v9, %v3098_v22  ;;  %v3130_v51 = vmul.f32 %v9046_v9, %v3101_v4  ;;  %v3133_v25 = vmul.f32 %v9046_v9, %v3104_v63  ;;  %v2718_v58 = vpop.f32.mrf.mxu3  ;;  %v3269_v4 = vpop.trf.xlu2 }
 0x2f0   : > { %v3136_v35 = vmul.f32 %v9046_v9, %v3107_v50  ;;  %v3139_v52 = vmul.f32 %v9046_v9, %v3110_v47  ;;  %v3142_v45 = vmul.f32 %v9046_v9, %v3113_v43 }
 0x2f1   : > { %v3156_v28 = vadd.f32 %v9050_v55, %v3127_v60  ;;  %v3159_v7 = vadd.f32 %v9050_v55, %v3130_v51  ;;  %v3162_v42 = vadd.f32 %v9050_v55, %v3133_v25 }
 0x2f2   : > { %v2858_v38 = vpop.f32.mrf.mxu0  ;;  %v3165_v8 = vadd.f32 %v9050_v55, %v3136_v35  ;;  %v3168_v34 = vadd.f32 %v9050_v55, %v3139_v52  ;;  %v3171_v46 = vadd.f32 %v9050_v55, %v3142_v45 }
 0x2f3   : > { %v3313_v53 = vadd.f32 %v8947_v29, %v3156_v28  ;;  %v3316_v18 = vadd.f32 %v8977_v27, %v3159_v7  ;;  %v3319_v22 = vadd.f32 %v8995_v1, %v3162_v42 }
 0x2f4   : > { %v3322_v63 = vadd.f32 %v9018_v61, %v3165_v8  ;;  %v3325_v10 = vadd.f32 %v3268_v13, %v3168_v34  ;;  %v3328_v37 = vadd.f32 %v3269_v4, %v3171_v46  ;;  %4440 = vmatpush.bf16.xpose.msra.mxu2 %v5332_v30 }
 0x2f5   : > { %v9081_v50 = vpack.c.bf16 %v3316_v18, %v3313_v53 }
 0x2f6   : > { %v9083_v47 = vpack.c.bf16 %v3322_v63, %v3319_v22  ;;  %v9085_v43 = vpack.c.bf16 %v3328_v37, %v3325_v10  ;;  %v2802_v60 = vpop.f32.mrf.mxu2  ;;  %v3145_v22 = vmul.f32 %v9046_v9, %v9053_v15  ;;  %v5731_v15 = vld [vmem:[%s8737_s10 + $0xb8] sm:$0xf0]  ;;  %v5323_v37 = vld [vmem:[%s8737_s10 + $0x170] sm:$0xf] }
 0x2f7   : > { %v2813_v51 = vpop.f32.mrf.mxu3  ;;  %4273 = vmatmul.bf16.vlgmr.msra.gmra.mxu0 %v9081_v50  ;;  %4357 = vmatmul.bf16.vlgmr.msra.gmra.mxu3 %v9081_v50  ;;  %v3270_v10 = vpop.trf.xlu2 }
 0x2f8   : > { %v2814_v29 = vadd.f32 %v2813_v51, %v8945_v11 }
 0x2fa   : > { %v2842_v27 = vadd.f32 %v8902_v59, %v2814_v29 }
 0x2fb   : > { %4441 = vmatmul.bf16.vlgmr.msra.gmra.mxu2 %v9081_v50 }
 0x2fc   : > { %v2870_v58 = vadd.f32 %v8860_v5, %v2842_v27  ;;  %v5755_v27 = vld [vmem:[%s8737_s10 + $0x178] sm:$0xf0] }
 0x2fe   : > { %v2897_v61 = vpop.f32.mrf.mxu2 }
 0x2ff   : > { %v2815_v1 = vpop.f32.mrf.mxu3  ;;  %v9095_v35 = vadd.f32 %v2897_v61, %v2870_v58  ;;  %v5779_v61 = vld [vmem:[%s8737_s10 + $0x238] sm:$0xf0] }
 0x300   : > { %v2816_v13 = vadd.f32 %v2815_v1, %v8972_v48  ;;  %v5419_v1 = vld [vmem:[%s8737_s10 + $0x230] sm:$0xf]  ;;  %v5803_v58 = vld [vmem:[%s8737_s10 + $0x2f8] sm:$0xf0] }
 0x302   : > { %v2844_v25 = vadd.f32 %v8951_v19, %v2816_v13  ;;  %v2944_v19 = vsel %vm2943_vm0, %v9095_v35, 0.0 }
 0x304   : > { %v2872_v52 = vadd.f32 %v8878_v36, %v2844_v25  ;;  %v5420_v25 = vor.u32 %v5779_v61, %v5419_v1  ;;  %v5749_v1 = vld [vmem:[%s8737_s10 + $0x148] sm:$0xf0]  ;;  %v5395_v61 = vld [vmem:[%s8737_s10 + $0x200] sm:$0xf] }
 0x306   : > { %v2899_v30 = vpop.f32.mrf.mxu2 }
 0x307   : > { %v2818_v45 = vpop.f32.mrf.mxu3  ;;  %4278 = vmatmul.bf16.gmra.mxu0 %v9083_v47  ;;  %4362 = vmatmul.bf16.gmra.mxu3 %v9083_v47  ;;  %v9101_v11 = vadd.f32 %v2899_v30, %v2872_v52 }
 0x308   : > { %v2819_v59 = vadd.f32 %v2818_v45, %v8990_v57 }
 0x309   : > { %v2945_v48 = vsel %vm2943_vm0, %v9101_v11, 0.0 }
 0x30a   : > { %v2847_v5 = vadd.f32 %v8974_v17, %v2819_v59  ;;  %v2946_v36 = vadd.f32 %v2945_v48, %v2944_v19 }
 0x30b   : > { %4446 = vmatmul.bf16.gmra.mxu2 %v9083_v47 }
 0x30c   : > { %v2875_v28 = vadd.f32 %v8892_v39, %v2847_v5  ;;  %v2742_v39 = vadd.f32 %v8851_v31, %v9024_v41  ;;  %v3174_v41 = vadd.f32 %v9050_v55, %v3145_v22  ;;  %v5324_v55 = vor.u32 %v5755_v27, %v5323_v37  ;;  %v5503_v22 = vld [vmem:[%s8737_s10 + $0x2d8] sm:$0xf]  ;;  %v5725_v37 = vld [vmem:[%s8737_s10 + $0x88] sm:$0xf0] }
 0x30d   : > { %v4187_v5 = vsel %vm2943_vm0, %v5420_v25, 0 }
 0x30e   : > { %v2902_v42 = vpop.f32.mrf.mxu2  ;;  %v2770_v31 = vadd.f32 %v8804_v44, %v2742_v39  ;;  %v3331_v52 = vadd.f32 %v3270_v10, %v3174_v41  ;;  %v4163_v19 = vsel %vm2943_vm0, %v5324_v55, 0  ;;  %4461 = vmatpush.bf16.xpose.msra.mxu3 %v4187_v5 }
 0x30f   : > { %v2820_v7 = vpop.f32.mrf.mxu3  ;;  %v9111_v57 = vadd.f32 %v2902_v42, %v2875_v28  ;;  %4377 = vmatpush.bf16.xpose.msra.mxu0 %v4163_v19 }
 0x310   : > { %v2821_v38 = vadd.f32 %v2820_v7, %v9009_v40  ;;  %v9153_v28 = vpack.c.bf16 %v3331_v52, %v3331_v52  ;;  %v5797_v52 = vld [vmem:[%s8737_s10 + $0x2c8] sm:$0xf0] }
 0x311   : > { %v2947_v34 = vsel %vm2943_vm0, %v9111_v57, 0.0 }
 0x312   : > { %v2849_v8 = vadd.f32 %v8992_v3, %v2821_v38  ;;  %v2948_v17 = vadd.f32 %v2947_v34, %v2946_v36  ;;  %v5215_v38 = vld [vmem:[%s8737_s10 + $0x98] sm:$0xf] }
 0x313   : > { %v5311_v34 = vld [vmem:[%s8737_s10 + $0x158] sm:$0xf] }
 0x314   : > { %v2877_v46 = vadd.f32 %v8933_v49, %v2849_v8  ;;  %v5728_v8 = vld [vmem:[%s8737_s10 + $0xa0] sm:$0xf0] }
 0x316   : > { %v2904_v18 = vpop.f32.mrf.mxu2 }
 0x317   : > { %v2823_v53 = vpop.f32.mrf.mxu3  ;;  %4283 = vmatmul.bf16.gmra.mxu0 %v9085_v43  ;;  %4367 = vmatmul.bf16.gmra.mxu3 %v9085_v43  ;;  %v9122_v40 = vadd.f32 %v2904_v18, %v2877_v46  ;;  %v5776_v18 = vld [vmem:[%s8737_s10 + $0x220] sm:$0xf0] }
 0x318   : > { %v2824_v3 = vadd.f32 %v2823_v53, %v9026_v62  ;;  %v2798_v62 = vadd.f32 %v9037_v23, %v2770_v31  ;;  %v5515_v23 = vld [vmem:[%s8737_s10 + $0x2f0] sm:$0xf]  ;;  %v5216_v53 = vor.u32 %v5728_v8, %v5215_v38 }
 0x319   : > { %v2949_v4 = vsel %vm2943_vm0, %v9122_v40, 0.0 }
 0x31a   : > { %v2852_v49 = vadd.f32 %v9011_v32, %v2824_v3  ;;  %v2950_v63 = vadd.f32 %v2949_v4, %v2948_v17  ;;  %v5227_v32 = vld [vmem:[%s8737_s10 + $0xb0] sm:$0xf]  ;;  %v4136_v4 = vsel %vm2943_vm0, %v5216_v53, 0  ;;  %v5770_v53 = vld [vmem:[%s8737_s10 + $0x1f0] sm:$0xf0] }
 0x31b   : > { %4451 = vmatmul.bf16.gmra.mxu2 %v9085_v43  ;;  %v5228_v29 = vor.u32 %v5731_v15, %v5227_v32  ;;  %v5203_v15 = vld [vmem:[%s8737_s10 + $0x80] sm:$0xf] }
 0x31c   : > { %v2880_v9 = vadd.f32 %v8964_v14, %v2852_v49  ;;  %v5516_v14 = vor.u32 %v5803_v58, %v5515_v23  ;;  %v5800_v49 = vld [vmem:[%s8737_s10 + $0x2e0] sm:$0xf0]  ;;  %v5204_v27 = vor.u32 %v5725_v37, %v5203_v15  ;;  %v5491_v58 = vld [vmem:[%s8737_s10 + $0x2c0] sm:$0xf] }
 0x31d   : > { %v4139_v45 = vsel %vm2943_vm0, %v5228_v29, 0 }
 0x31e   : > { %v2907_v51 = vpop.f32.mrf.mxu2  ;;  %4293 = vmatpush.bf16.xpose.msra.mxu1 %v4139_v45  ;;  %v4211_v36 = vsel %vm2943_vm0, %v5516_v14, 0  ;;  %v5492_v45 = vor.u32 %v5797_v52, %v5491_v58 }
 0x31f   : > { %v2825_v60 = vpop.f32.mrf.mxu3  ;;  %v9140_v44 = vadd.f32 %v2907_v51, %v2880_v9  ;;  %4545 = vmatpush.bf16.xpose.msra.mxu2 %v4211_v36  ;;  %v5191_v36 = vld [vmem:[%s8737_s10 + $0x68] sm:$0xf] }
 0x320   : > { %v2826_v13 = vadd.f32 %v2825_v60, %v2798_v62  ;;  %v5299_v60 = vld [vmem:[%s8737_s10 + $0x140] sm:$0xf]  ;;  %v4205_v5 = vsel %vm2943_vm0, %v5492_v45, 0 }
 0x321   : > { %v2951_v59 = vsel %vm2943_vm0, %v9140_v44, 0.0  ;;  %v5300_v25 = vor.u32 %v5749_v1, %v5299_v60  ;;  %v5743_v60 = vld [vmem:[%s8737_s10 + $0x118] sm:$0xf0] }
 0x322   : > { %v2854_v30 = vadd.f32 %v9028_v16, %v2826_v13  ;;  %v2952_v48 = vadd.f32 %v2951_v59, %v2950_v63  ;;  %v2773_v16 = vadd.f32 %v8819_v12, %v9043_v2  ;;  %v5752_v12 = vld [vmem:[%s8737_s10 + $0x160] sm:$0xf0]  ;;  %v5407_v2 = vld [vmem:[%s8737_s10 + $0x218] sm:$0xf]  ;;  %v5504_v63 = vor.u32 %v5800_v49, %v5503_v22  ;;  %v5773_v13 = vld [vmem:[%s8737_s10 + $0x208] sm:$0xf0] }
 0x323   : > { %v5396_v23 = vor.u32 %v5773_v13, %v5395_v61  ;;  %v5467_v61 = vld [vmem:[%s8737_s10 + $0x290] sm:$0xf]  ;;  %v5791_v13 = vld [vmem:[%s8737_s10 + $0x298] sm:$0xf0] }
 0x324   : > { %v2801_v7 = vadd.f32 %v9066_v33, %v2773_v16  ;;  %v2882_v42 = vadd.f32 %v8983_v0, %v2854_v30  ;;  %v5312_v33 = vor.u32 %v5752_v12, %v5311_v34  ;;  %v5408_v0 = vor.u32 %v5776_v18, %v5407_v2  ;;  %v5722_v16 = vld [vmem:[%s8737_s10 + $0x70] sm:$0xf0]  ;;  %v5479_v18 = vld [vmem:[%s8737_s10 + $0x2a8] sm:$0xf] }
 0x325   : > { %v4208_v32 = vsel %vm2943_vm0, %v5504_v63, 0  ;;  %v4157_v30 = vsel %vm2943_vm0, %v5300_v25, 0  ;;  %v4181_v59 = vsel %vm2943_vm0, %v5396_v23, 0  ;;  %v5192_v34 = vor.u32 %v5722_v16, %v5191_v36 }
 0x326   : > { %v2909_v46 = vpop.f32.mrf.mxu2  ;;  %4294 = vmatpush.bf16.xpose.msra.mxu1 %v4136_v4  ;;  %v4160_v62 = vsel %vm2943_vm0, %v5312_v33, 0  ;;  %v4184_v10 = vsel %vm2943_vm0, %v5408_v0, 0  ;;  %v5468_v58 = vor.u32 %v5791_v13, %v5467_v61  ;;  %v5713_v61 = vld [vmem:[%s8737_s10 + $0x28] sm:$0xf0]  ;;  %v5251_v13 = vld [vmem:[%s8737_s10 + $0xe0] sm:$0xf] }
 0x327   : > { %v2828_v17 = vpop.f32.mrf.mxu3  ;;  %4288 = vmatmul.bf16.gmra.mxu0 %v9153_v28  ;;  %4372 = vmatmul.bf16.gmra.mxu3 %v9153_v28  ;;  %v9165_v3 = vadd.f32 %v2909_v46, %v2882_v42  ;;  %v5383_v46 = vld [vmem:[%s8737_s10 + $0x1e8] sm:$0xf]  ;;  %v4130_v0 = vsel %vm2943_vm0, %v5192_v34, 0  ;;  %v5740_v34 = vld [vmem:[%s8737_s10 + $0x100] sm:$0xf0] }
 0x328   : > { %v2829_v39 = vadd.f32 %v2828_v17, %v2801_v7  ;;  %4378 = vmatpush.bf16.xpose.msra.mxu0 %v4160_v62  ;;  %4462 = vmatpush.bf16.xpose.msra.mxu3 %v4184_v10  ;;  %v5287_v7 = vld [vmem:[%s8737_s10 + $0x128] sm:$0xf]  ;;  %v5746_v17 = vld [vmem:[%s8737_s10 + $0x130] sm:$0xf0]  ;;  %v5384_v2 = vor.u32 %v5770_v53, %v5383_v46  ;;  %v5179_v62 = vld [vmem:[%s8737_s10 + $0x50] sm:$0xf] }
 0x329   : > { %v2953_v41 = vsel %vm2943_vm0, %v9165_v3, 0.0  ;;  %4546 = vmatpush.bf16.xpose.msra.mxu2 %v4208_v32  ;;  %v5288_v12 = vor.u32 %v5746_v17, %v5287_v7  ;;  %v5719_v10 = vld [vmem:[%s8737_s10 + $0x58] sm:$0xf0]  ;;  %v5359_v53 = vld [vmem:[%s8737_s10 + $0x1b8] sm:$0xf] }
 0x32a   : > { %v2857_v31 = vadd.f32 %v9040_v6, %v2829_v39  ;;  %v2954_v9 = vadd.f32 %v2953_v41, %v2952_v48  ;;  %v5794_v39 = vld [vmem:[%s8737_s10 + $0x2b0] sm:$0xf0]  ;;  %v4178_v4 = vsel %vm2943_vm0, %v5384_v2, 0  ;;  %v5180_v37 = vor.u32 %v5719_v10, %v5179_v62 }
 0x32b   : > { %4456 = vmatmul.bf16.gmra.mxu2 %v9153_v28  ;;  %v5480_v22 = vor.u32 %v5794_v39, %v5479_v18  ;;  %v4154_v49 = vsel %vm2943_vm0, %v5288_v12, 0 }
 0x32c   : > { %v2885_v6 = vadd.f32 %v9002_v21, %v2857_v31  ;;  %v4133_v21 = vsel %vm2943_vm0, %v5204_v27, 0  ;;  %v4127_v23 = vsel %vm2943_vm0, %v5180_v37, 0 }
 0x32d   : > { %v4202_v31 = vsel %vm2943_vm0, %v5480_v22, 0  ;;  %v5788_v22 = vld [vmem:[%s8737_s10 + $0x280] sm:$0xf0] }
 0x32e   : > { %v2912_v29 = vpop.f32.mrf.mxu2  ;;  %4295 = vmatpush.bf16.xpose.msra.mxu1 %v4133_v21 }
 0x32f   : > { %v2830_v51 = vpop.f32.mrf.mxu3  ;;  %v9184_v55 = vadd.f32 %v2912_v29, %v2885_v6  ;;  %v5767_v29 = vld [vmem:[%s8737_s10 + $0x1d8] sm:$0xf0] }
 0x330   : > { %4379 = vmatpush.bf16.xpose.msra.mxu0 %v4157_v30  ;;  %4463 = vmatpush.bf16.xpose.msra.mxu3 %v4181_v59  ;;  %v5371_v51 = vld [vmem:[%s8737_s10 + $0x1d0] sm:$0xf] }
 0x331   : > { %v2956_v14 = vsel %vm2955_vm1, %v9184_v55, 0.0  ;;  %4547 = vmatpush.bf16.xpose.msra.mxu2 %v4205_v5  ;;  %v5372_v1 = vor.u32 %v5767_v29, %v5371_v51 }
 0x332   : > { %v2957_v19 = vadd.f32 %v2956_v14, %v2954_v9  ;;  %v5275_v9 = vld [vmem:[%s8737_s10 + $0x110] sm:$0xf] }
 0x333   : > { %v5276_v27 = vor.u32 %v5743_v60, %v5275_v9  ;;  %v4175_v21 = vsel %vm2943_vm0, %v5372_v1, 0  ;;  %v5155_v1 = vld [vmem:[%s8737_s10 + $0x20] sm:$0xf] }
 0x334   : > { %v2958_v48 = vrot.slane %v2957_v19, 4 }
 0x335   : > { %v4151_v52 = vsel %vm2943_vm0, %v5276_v27, 0 }
 0x336   : > { %v2959_v42 = vadd.f32 %v2958_v48, %v2957_v19  ;;  %v2914_v38 = vpop.f32.mrf.mxu2  ;;  %4296 = vmatpush.bf16.xpose.msra.mxu1 %v4130_v0  ;;  %v5716_v48 = vld [vmem:[%s8737_s10 + $0x40] sm:$0xf0]  ;;  %v5455_v0 = vld [vmem:[%s8737_s10 + $0x278] sm:$0xf] }
 0x337   : > { %v9197_v8 = vpop.f32.mrf.mxu3 }
 0x338   : > { %v2960_v33 = vrot.slane %v2959_v42, 2  ;;  %4380 = vmatpush.bf16.xpose.msra.mxu0 %v4154_v49  ;;  %4464 = vmatpush.bf16.xpose.msra.mxu3 %v4178_v4  ;;  %v9273_v4 = vpop.trf.xlu0 }
 0x339   : > { %4548 = vmatpush.bf16.xpose.msra.mxu2 %v4202_v31  ;;  %v5456_v31 = vor.u32 %v5788_v22, %v5455_v0 }
 0x33a   : > { %v2961_v63 = vadd.f32 %v2960_v33, %v2959_v42  ;;  %v5764_v33 = vld [vmem:[%s8737_s10 + $0x1c0] sm:$0xf0] }
 0x33b   : > { %v4196_v37 = vsel %vm2943_vm0, %v5456_v31, 0  ;;  %v5335_v31 = vld [vmem:[%s8737_s10 + $0x188] sm:$0xf] }
 0x33c   : > { %v2962_v41 = vrot.slane %v2961_v63, 1 }
 0x33e   : > { %v2963_v32 = vadd.f32 %v2962_v41, %v2961_v63  ;;  %v9213_v15 = vpop.f32.mrf.mxu2  ;;  %4297 = vmatpush.bf16.xpose.msra.mxu1 %v4127_v23  ;;  %v5360_v63 = vor.u32 %v5764_v33, %v5359_v53 }
 0x33f   : > { %v9211_v6 = vpop.f32.mrf.mxu3 }
 0x340   : > { %v2973_v25 = vmul.f32 %v8474_v20, %v2963_v32  ;;  %4381 = vmatpush.bf16.xpose.msra.mxu0 %v4151_v52  ;;  %4465 = vmatpush.bf16.xpose.msra.mxu3 %v4175_v21  ;;  %v4172_v32 = vsel %vm2943_vm0, %v5360_v63, 0  ;;  %v5737_v52 = vld [vmem:[%s8737_s10 + $0xe8] sm:$0xf0]  ;;  %v5347_v21 = vld [vmem:[%s8737_s10 + $0x1a0] sm:$0xf] }
 0x341   : > { %v5734_v63 = vld [vmem:[%s8737_s10 + $0xd0] sm:$0xf0] }
 0x342   : > { %v9225_v45 = vsub.f32 %v9095_v35, %v2973_v25  ;;  %v9228_v14 = vsub.f32 %v9101_v11, %v2973_v25  ;;  %v9231_v30 = vsub.f32 %v9111_v57, %v2973_v25  ;;  %v9234_v59 = vsub.f32 %v9122_v40, %v2973_v25 }
 0x343   : > { %v9237_v19 = vsub.f32 %v9140_v44, %v2973_v25  ;;  %v9240_v5 = vsub.f32 %v9165_v3, %v2973_v25  ;;  %v9243_v35 = vsub.f32 %v9184_v55, %v2973_v25  ;;  %v4199_v11 = vsel %vm2943_vm0, %v5468_v58, 0  ;;  %v5167_v3 = vld [vmem:[%s8737_s10 + $0x38] sm:$0xf] }
 0x344   : > { %v2997_v57 = vmul.f32 %v9225_v45, %v9225_v45  ;;  %v3000_v40 = vmul.f32 %v9228_v14, %v9228_v14  ;;  %v3003_v44 = vmul.f32 %v9231_v30, %v9231_v30  ;;  %4549 = vmatpush.bf16.xpose.msra.mxu2 %v4199_v11  ;;  %v5263_v55 = vld [vmem:[%s8737_s10 + $0xf8] sm:$0xf]  ;;  %v3006_v36 = vmul.f32 %v9234_v59, %v9234_v59  ;;  %v5761_v11 = vld [vmem:[%s8737_s10 + $0x1a8] sm:$0xf0] }
 0x345   : > { %v3009_v12 = vmul.f32 %v9237_v19, %v9237_v19  ;;  %v3012_v2 = vmul.f32 %v9240_v5, %v9240_v5  ;;  %v5168_v18 = vor.u32 %v5716_v48, %v5167_v3  ;;  %v5264_v39 = vor.u32 %v5740_v34, %v5263_v55  ;;  %v5443_v3 = vld [vmem:[%s8737_s10 + $0x260] sm:$0xf]  ;;  %v5785_v48 = vld [vmem:[%s8737_s10 + $0x268] sm:$0xf0] }
 0x346   : > { %v3042_v16 = vsel %vm2943_vm0, %v2997_v57, 0.0  ;;  %v3043_v7 = vsel %vm2943_vm0, %v3000_v40, 0.0  ;;  %v9261_v38 = vpop.f32.mrf.mxu2  ;;  %v3045_v46 = vsel %vm2943_vm0, %v3003_v44, 0.0  ;;  %v3047_v41 = vsel %vm2943_vm0, %v3006_v36, 0.0 }
 0x347   : > { %v9259_v42 = vpop.f32.mrf.mxu3  ;;  %v3044_v17 = vadd.f32 %v3043_v7, %v3042_v16  ;;  %v4124_v62 = vsel %vm2943_vm0, %v5168_v18, 0  ;;  %v4148_v10 = vsel %vm2943_vm0, %v5264_v39, 0  ;;  %v3015_v60 = vmul.f32 %v9243_v35, %v9243_v35  ;;  %v5143_v18 = vld [vmem:[%s8737_s10 + $0x8] sm:$0xf]  ;;  %v5710_v39 = vld [vmem:[%s8737_s10 + $0x10] sm:$0xf0] }
 0x348   : > { %4298 = vmatpush.bf16.xpose.msra.mxu1 %v4124_v62  ;;  %4382 = vmatpush.bf16.xpose.msra.mxu0 %v4148_v10  ;;  %v3049_v51 = vsel %vm2943_vm0, %v3009_v12, 0.0  ;;  %v3051_v29 = vsel %vm2943_vm0, %v3012_v2, 0.0  ;;  %v5156_v58 = vor.u32 %v5713_v61, %v5155_v1  ;;  %v5252_v40 = vor.u32 %v5737_v52, %v5251_v13  ;;  %v9301_v12 = vpop.trf.xlu0  ;;  %v5758_v10 = vld [vmem:[%s8737_s10 + $0x190] sm:$0xf0] }
 0x349   : > { %v3046_v49 = vadd.f32 %v3045_v46, %v3044_v17  ;;  %4466 = vmatpush.bf16.xpose.msra.mxu3 %v4172_v32  ;;  %v5348_v44 = vor.u32 %v5761_v11, %v5347_v21  ;;  %v3053_v55 = vsel %vm2955_vm1, %v3015_v60, 0.0  ;;  %v5444_v16 = vor.u32 %v5785_v48, %v5443_v3  ;;  %v5782_v60 = vld [vmem:[%s8737_s10 + $0x250] sm:$0xf0] }
 0x34a   : > { %v4121_v36 = vsel %vm2943_vm0, %v5156_v58, 0  ;;  %v4145_v34 = vsel %vm2943_vm0, %v5252_v40, 0  ;;  %v5144_v22 = vor.u32 %v5710_v39, %v5143_v18 }
 0x34b   : > { %v3048_v9 = vadd.f32 %v3047_v41, %v3046_v49  ;;  %v4169_v17 = vsel %vm2943_vm0, %v5348_v44, 0  ;;  %v4193_v46 = vsel %vm2943_vm0, %v5444_v16, 0  ;;  %v5239_v49 = vld [vmem:[%s8737_s10 + $0xc8] sm:$0xf] }
 0x34c   : > { %4550 = vmatpush.bf16.xpose.msra.mxu2 %v4196_v37  ;;  %v5240_v62 = vor.u32 %v5734_v63, %v5239_v49  ;;  %v4118_v32 = vsel %vm2943_vm0, %v5144_v22, 0  ;;  %v5336_v37 = vor.u32 %v5758_v10, %v5335_v31  ;;  %v6150_v49 = vld [vmem:[%s9802_s4] sm:$0x7] }
 0x34d   : > { %v3050_v27 = vadd.f32 %v3049_v51, %v3048_v9  ;;  %v5431_v9 = vld [vmem:[%s8737_s10 + $0x248] sm:$0xf]  ;;  %v9338_v63 = vperm.slane %v6150_v49, 2 }
 0x34e   : > { %v9289_v23 = vpop.f32.mrf.mxu2  ;;  %v4166_v1 = vsel %vm2943_vm0, %v5336_v37, 0 }
 0x34f   : > { %v9287_v25 = vpop.f32.mrf.mxu3  ;;  %v3052_v57 = vadd.f32 %v3051_v29, %v3050_v27  ;;  %v4142_v29 = vsel %vm2943_vm0, %v5240_v62, 0  ;;  %v5432_v27 = vor.u32 %v5782_v60, %v5431_v9 }
 0x350   : > { %4299 = vmatpush.bf16.xpose.msra.mxu1 %v4121_v36  ;;  %4383 = vmatpush.bf16.xpose.msra.mxu0 %v4145_v34  ;;  %v3298_v52 = vpop.trf.xlu0 }
 0x351   : > { %v3054_v7 = vadd.f32 %v3053_v55, %v3052_v57  ;;  %4467 = vmatpush.bf16.xpose.msra.mxu3 %v4169_v17  ;;  %v4190_v13 = vsel %vm2943_vm0, %v5432_v27, 0 }
 0x353   : > { %v3055_v53 = vrot.slane %v3054_v7, 4 }
 0x354   : > { %4551 = vmatpush.bf16.xpose.msra.mxu2 %v4193_v46 }
 0x355   : > { %v3056_v2 = vadd.f32 %v3055_v53, %v3054_v7 }
 0x356   : > { %v9307_v0 = vpop.f32.mrf.mxu2 }
 0x357   : > { %v9305_v33 = vpop.f32.mrf.mxu3  ;;  %v3057_v41 = vrot.slane %v3056_v2, 2 }
 0x358   : > { %4300 = vmatpush.bf16.xpose.msra.mxu1 %v4118_v32  ;;  %4384 = vmatpush.bf16.xpose.msra.mxu0 %v4142_v29  ;;  %v3299_v48 = vpop.trf.xlu0 }
 0x359   : > { %v3058_v51 = vadd.f32 %v3057_v41, %v3056_v2  ;;  %4468 = vmatpush.bf16.xpose.msra.mxu3 %v4166_v1  ;;  %v5411_v1 = vld [vmem:[%s8737_s10 + $0x228] sm:$0xf] }
 0x35b   : > { %v3059_v61 = vrot.slane %v3058_v51, 1 }
 0x35c   : > { %4552 = vmatpush.bf16.xpose.msra.mxu2 %v4190_v13 }
 0x35d   : > { %v3060_v58 = vadd.f32 %v3059_v61, %v3058_v51  ;;  %v5778_v61 = vld [vmem:[%s8737_s10 + $0x230] sm:$0xf0] }
 0x35e   : > { %v9321_v11 = vpop.f32.mrf.mxu2 }
 0x35f   : > { %v9319_v21 = vpop.f32.mrf.mxu3  ;;  %v3063_v57 = vmul.f32 %v3060_v58, %v8474_v20  ;;  %v6149_v20 = vld [vmem:[%s9801_s3] sm:$0x7] }
 0x360   : > { %v3300_v53 = vpop.trf.xlu0  ;;  %v9333_v18 = vperm.slane %v6149_v20, 2  ;;  %v5603_v20 = vld [vmem:[%s8737_s10 + $0x3a8] sm:$0xf] }
 0x361   : > { %v3066_v40 = vadd.f32 1e-05, %v3063_v57 }
 0x363   : > { %6131 = vrsqrt.f32 %v3066_v40  ;;  %vm3093_vm3 = vweird.f32 %v3066_v40 }
 0x366   : > { %v9326_v3 = vpop.f32.mrf.mxu2 }
 0x367   : > { %v9324_v44 = vpop.f32.mrf.mxu3 }
 0x369   : > { %v6132_v55 = vpop.eup %6131 }
 0x36a   : > { %v3088_v36 = vmul.f32 %v6132_v55, %v3066_v40  ;;  %vm3094_vm2 = vweird.f32 %v6132_v55 }
 0x36b   : > { %vm3095_vm4 = vmor %vm3093_vm3, %vm3094_vm2 }
 0x36c   : > { %v3089_v16 = vmul.f32 %v6132_v55, %v3088_v36  ;;  %v5802_v36 = vld [vmem:[%s8737_s10 + $0x2f0] sm:$0xf0] }
 0x36e   : > { %v3090_v7 = vmul.f32 0.5, %v3089_v16  ;;  %v9328_v17 = vpop.f32.mrf.mxu2 }
 0x36f   : > { %v4263_v34 = vpop.f32.mrf.mxu3 }
 0x370   : > { %v3091_v46 = vsub.f32 1.5, %v3090_v7 }
 0x372   : > { %v3092_v2 = vmul.f32 %v6132_v55, %v3091_v46  ;;  %v3301_v46 = vpop.trf.xlu0 }
 0x374   : > { %v4274_v39 = vpop.f32.mrf.mxu0  ;;  %v3096_v22 = vsel %vm3095_vm4, %v6132_v55, %v3092_v2  ;;  %v5507_v55 = vld [vmem:[%s8737_s10 + $0x2e8] sm:$0xf] }
 0x375   : > { %v9341_v31 = vadd.f32 %v4274_v39, %v9197_v8  ;;  %v9344_v41 = vmul.f32 %v3096_v22, %v9243_v35  ;;  %v3099_v62 = vmul.f32 %v3096_v22, %v9225_v45  ;;  %v3102_v10 = vmul.f32 %v3096_v22, %v9228_v14  ;;  %v5826_v39 = vld [vmem:[%s8737_s10 + $0x3b0] sm:$0xf0] }
 0x376   : > { %v3105_v9 = vmul.f32 %v3096_v22, %v9231_v30  ;;  %v3108_v32 = vmul.f32 %v3096_v22, %v9234_v59  ;;  %v3111_v37 = vmul.f32 %v3096_v22, %v9237_v19  ;;  %v3114_v60 = vmul.f32 %v3096_v22, %v9240_v5  ;;  %v4347_v51 = vpop.f32.mrf.mxu2 }
 0x377   : > { %v3128_v8 = vmul.f32 %v9333_v18, %v3099_v62  ;;  %v3131_v35 = vmul.f32 %v9333_v18, %v3102_v10  ;;  %v5412_v10 = vor.u32 %v5778_v61, %v5411_v1  ;;  %v5495_v51 = vld [vmem:[%s8737_s10 + $0x2d0] sm:$0xf]  ;;  %v5772_v1 = vld [vmem:[%s8737_s10 + $0x200] sm:$0xf0] }
 0x378   : > { %v3134_v45 = vmul.f32 %v9333_v18, %v3105_v9  ;;  %v3137_v14 = vmul.f32 %v9333_v18, %v3108_v32  ;;  %v3140_v30 = vmul.f32 %v9333_v18, %v3111_v37  ;;  %v3143_v29 = vmul.f32 %v9333_v18, %v3114_v60  ;;  %v5775_v37 = vld [vmem:[%s8737_s10 + $0x218] sm:$0xf0] }
 0x379   : > { %v3157_v59 = vadd.f32 %v9338_v63, %v3128_v8  ;;  %v3160_v19 = vadd.f32 %v9338_v63, %v3131_v35  ;;  %v5508_v9 = vor.u32 %v5802_v36, %v5507_v55  ;;  %v5799_v8 = vld [vmem:[%s8737_s10 + $0x2d8] sm:$0xf0]  ;;  %v5820_v55 = vld [vmem:[%s8737_s10 + $0x380] sm:$0xf0] }
 0x37a   : > { %v3163_v5 = vadd.f32 %v9338_v63, %v3134_v45  ;;  %v4358_v27 = vpop.f32.mrf.mxu3  ;;  %v3166_v13 = vadd.f32 %v9338_v63, %v3137_v14  ;;  %v3169_v58 = vadd.f32 %v9338_v63, %v3140_v30  ;;  %v3172_v57 = vadd.f32 %v9338_v63, %v3143_v29  ;;  %v5591_v45 = vld [vmem:[%s8737_s10 + $0x390] sm:$0xf]  ;;  %v5823_v14 = vld [vmem:[%s8737_s10 + $0x398] sm:$0xf0] }
 0x37b   : > { %v9367_v40 = vadd.f32 %v4358_v27, %v9213_v15  ;;  %v3314_v16 = vadd.f32 %v9273_v4, %v3157_v59  ;;  %v3317_v7 = vadd.f32 %v9301_v12, %v3160_v19  ;;  %v5496_v59 = vor.u32 %v5799_v8, %v5495_v51  ;;  %v5387_v27 = vld [vmem:[%s8737_s10 + $0x1f8] sm:$0xf]  ;;  %v5363_v8 = vld [vmem:[%s8737_s10 + $0x1c8] sm:$0xf] }
 0x37c   : > { %v3320_v34 = vadd.f32 %v3298_v52, %v3163_v5  ;;  %v9373_v2 = vpop.f32.mrf.mxu0  ;;  %v3323_v22 = vadd.f32 %v3299_v48, %v3166_v13  ;;  %v3326_v49 = vadd.f32 %v3300_v53, %v3169_v58  ;;  %v3329_v62 = vadd.f32 %v3301_v46, %v3172_v57  ;;  %v5399_v53 = vld [vmem:[%s8737_s10 + $0x210] sm:$0xf]  ;;  %v5483_v13 = vld [vmem:[%s8737_s10 + $0x2b8] sm:$0xf]  ;;  %v5796_v58 = vld [vmem:[%s8737_s10 + $0x2c0] sm:$0xf0] }
 0x37d   : > { %v9377_v15 = vpack.c.bf16 %v3317_v7, %v3314_v16  ;;  %v5604_v52 = vor.u32 %v5826_v39, %v5603_v20  ;;  %v5400_v29 = vor.u32 %v5775_v37, %v5399_v53  ;;  %v5592_v5 = vor.u32 %v5823_v14, %v5591_v45  ;;  %v5579_v57 = vld [vmem:[%s8737_s10 + $0x378] sm:$0xf]  ;;  %v5375_v46 = vld [vmem:[%s8737_s10 + $0x1e0] sm:$0xf]  ;;  %v5769_v20 = vld [vmem:[%s8737_s10 + $0x1e8] sm:$0xf0] }
 0x37e   : > { %v9379_v32 = vpack.c.bf16 %v3323_v22, %v3320_v34  ;;  %v9381_v4 = vpack.c.bf16 %v3329_v62, %v3326_v49  ;;  %v9383_v12 = vpop.f32.mrf.mxu2  ;;  %v5388_v36 = vor.u32 %v5772_v1, %v5387_v27  ;;  %v5484_v16 = vor.u32 %v5796_v58, %v5483_v13  ;;  %v5471_v22 = vld [vmem:[%s8737_s10 + $0x2a0] sm:$0xf]  ;;  %v5793_v49 = vld [vmem:[%s8737_s10 + $0x2a8] sm:$0xf0]  ;;  %v5459_v14 = vld [vmem:[%s8737_s10 + $0x288] sm:$0xf] }
 0x37f   : > { %5613 = vmatmul.msk.bf16.vlgmr.msra.gmra.mxu1 %vm2943_vm0, %v9377_v15  ;;  %5617 = vmatmul.msk.bf16.vlgmr.msra.gmra.mxu0 %vm2943_vm0, %v9377_v15  ;;  %v5580_v34 = vor.u32 %v5820_v55, %v5579_v57  ;;  %v5472_v53 = vor.u32 %v5793_v49, %v5471_v22  ;;  %v5351_v57 = vld [vmem:[%s8737_s10 + $0x1b0] sm:$0xf]  ;;  %v5763_v55 = vld [vmem:[%s8737_s10 + $0x1b8] sm:$0xf0] }
 0x380   : > { %4405 = vmatpush.bf16.xpose.msra.mxu1 %v5412_v10  ;;  %5621 = vmatmul.msk.bf16.vlgmr.msra.gmra.mxu3 %vm2943_vm0, %v9377_v15  ;;  %v5567_v10 = vld [vmem:[%s8737_s10 + $0x360] sm:$0xf] }
 0x381   : > { %5625 = vmatmul.msk.bf16.vlgmr.msra.gmra.mxu2 %vm2943_vm0, %v9377_v15  ;;  %4489 = vmatpush.bf16.xpose.msra.mxu0 %v5508_v9  ;;  %v5817_v9 = vld [vmem:[%s8737_s10 + $0x368] sm:$0xf0] }
 0x382   : > { %v4360_v48 = vpop.f32.mrf.mxu3  ;;  %4573 = vmatpush.bf16.xpose.msra.mxu3 %v5604_v52  ;;  %v5568_v51 = vor.u32 %v5817_v9, %v5567_v10 }
 0x383   : > { %v9396_v60 = vadd.f32 %v4360_v48, %v9261_v38  ;;  %v5376_v48 = vor.u32 %v5769_v20, %v5375_v46  ;;  %v5543_v46 = vld [vmem:[%s8737_s10 + $0x330] sm:$0xf]  ;;  %v5811_v20 = vld [vmem:[%s8737_s10 + $0x338] sm:$0xf0] }
 0x384   : > { %v4279_v35 = vpop.f32.mrf.mxu0  ;;  %v5544_v10 = vor.u32 %v5811_v20, %v5543_v46 }
 0x385   : > { %v9403_v30 = vadd.f32 %v4279_v35, %v9259_v42  ;;  %v5766_v35 = vld [vmem:[%s8737_s10 + $0x1d0] sm:$0xf0] }
 0x386   : > { %v9405_v19 = vpop.f32.mrf.mxu2 }
 0x388   : > { %4406 = vmatpush.bf16.xpose.msra.mxu1 %v5400_v29  ;;  %v5790_v29 = vld [vmem:[%s8737_s10 + $0x290] sm:$0xf0] }
 0x389   : > { %4490 = vmatpush.bf16.xpose.msra.mxu0 %v5496_v59  ;;  %v5555_v59 = vld [vmem:[%s8737_s10 + $0x348] sm:$0xf]  ;;  %v5460_v27 = vor.u32 %v5790_v29, %v5459_v14  ;;  %v5808_v14 = vld [vmem:[%s8737_s10 + $0x320] sm:$0xf0] }
 0x38a   : > { %v4363_v38 = vpop.f32.mrf.mxu3  ;;  %4574 = vmatpush.bf16.xpose.msra.mxu3 %v5592_v5  ;;  %v5814_v5 = vld [vmem:[%s8737_s10 + $0x350] sm:$0xf0] }
 0x38b   : > { %v9410_v61 = vadd.f32 %v4363_v38, %v9289_v23  ;;  %v5364_v38 = vor.u32 %v5766_v35, %v5363_v8  ;;  %v5556_v13 = vor.u32 %v5814_v5, %v5555_v59  ;;  %v5784_v8 = vld [vmem:[%s8737_s10 + $0x260] sm:$0xf0]  ;;  %v5531_v35 = vld [vmem:[%s8737_s10 + $0x318] sm:$0xf] }
 0x38c   : > { %v9414_v42 = vpop.f32.mrf.mxu0 }
 0x38e   : > { %v9418_v7 = vpop.f32.mrf.mxu2 }
 0x38f   : > { %5614 = vmatmul.msk.bf16.gmra.mxu1 %vm2943_vm0, %v9379_v32  ;;  %5618 = vmatmul.msk.bf16.gmra.mxu0 %vm2943_vm0, %v9379_v32 }
 0x390   : > { %4407 = vmatpush.bf16.xpose.msra.mxu1 %v5388_v36  ;;  %5622 = vmatmul.msk.bf16.gmra.mxu3 %vm2943_vm0, %v9379_v32 }
 0x391   : > { %5626 = vmatmul.msk.bf16.gmra.mxu2 %vm2943_vm0, %v9379_v32  ;;  %4491 = vmatpush.bf16.xpose.msra.mxu0 %v5484_v16  ;;  %v5447_v16 = vld [vmem:[%s8737_s10 + $0x270] sm:$0xf] }
 0x392   : > { %v4365_v23 = vpop.f32.mrf.mxu3  ;;  %4575 = vmatpush.bf16.xpose.msra.mxu3 %v5580_v34  ;;  %v5787_v34 = vld [vmem:[%s8737_s10 + $0x278] sm:$0xf0] }
 0x393   : > { %v9431_v39 = vadd.f32 %v4365_v23, %v9307_v0  ;;  %v5448_v49 = vor.u32 %v5787_v34, %v5447_v16  ;;  %v5805_v16 = vld [vmem:[%s8737_s10 + $0x308] sm:$0xf0] }
 0x394   : > { %v4284_v62 = vpop.f32.mrf.mxu0 }
 0x395   : > { %v9438_v52 = vadd.f32 %v4284_v62, %v9305_v33 }
 0x396   : > { %v9440_v37 = vpop.f32.mrf.mxu2 }
 0x398   : > { %4408 = vmatpush.bf16.xpose.msra.mxu1 %v5376_v48 }
 0x399   : > { %4492 = vmatpush.bf16.xpose.msra.mxu0 %v5472_v53  ;;  %v5339_v53 = vld [vmem:[%s8737_s10 + $0x198] sm:$0xf] }
 0x39a   : > { %v4368_v0 = vpop.f32.mrf.mxu3  ;;  %4576 = vmatpush.bf16.xpose.msra.mxu3 %v5568_v51  ;;  %v5760_v51 = vld [vmem:[%s8737_s10 + $0x1a0] sm:$0xf0] }
 0x39b   : > { %v9445_v45 = vadd.f32 %v4368_v0, %v9321_v11  ;;  %v3146_v11 = vmul.f32 %v9333_v18, %v9344_v41  ;;  %v5352_v41 = vor.u32 %v5763_v55, %v5351_v57  ;;  %v5435_v0 = vld [vmem:[%s8737_s10 + $0x258] sm:$0xf]  ;;  %v5340_v29 = vor.u32 %v5760_v51, %v5339_v53  ;;  %v5781_v57 = vld [vmem:[%s8737_s10 + $0x248] sm:$0xf0]  ;;  %v5519_v55 = vld [vmem:[%s8737_s10 + $0x300] sm:$0xf] }
 0x39c   : > { %v9449_v33 = vpop.f32.mrf.mxu0  ;;  %v5436_v5 = vor.u32 %v5784_v8, %v5435_v0  ;;  %v5520_v20 = vor.u32 %v5805_v16, %v5519_v55  ;;  %v5497_v53 = vld [vmem:[%s8737_s10 + $0x2dc] sm:$0xf0]  ;;  %v5822_v51 = vld [vmem:[%s8737_s10 + $0x394] sm:$0xf]  ;;  %v5789_v16 = vld [vmem:[%s8737_s10 + $0x28c] sm:$0xf] }
 0x39d   : > { %v3175_v22 = vadd.f32 %v9338_v63, %v3146_v11  ;;  %v5757_v11 = vld [vmem:[%s8737_s10 + $0x188] sm:$0xf0]  ;;  %v5593_v0 = vld [vmem:[%s8737_s10 + $0x39c] sm:$0xf0] }
 0x39e   : > { %v9453_v1 = vpop.f32.mrf.mxu2 }
 0x39f   : > { %5615 = vmatmul.msk.bf16.gmra.mxu1 %vm2943_vm0, %v9381_v4  ;;  %5619 = vmatmul.msk.bf16.gmra.mxu0 %vm2943_vm0, %v9381_v4 }
 0x3a0   : > { %4409 = vmatpush.bf16.xpose.msra.mxu1 %v5364_v38  ;;  %5623 = vmatmul.msk.bf16.gmra.mxu3 %vm2943_vm0, %v9381_v4 }
 0x3a1   : > { %5627 = vmatmul.msk.bf16.gmra.mxu2 %vm2943_vm0, %v9381_v4  ;;  %4493 = vmatpush.bf16.xpose.msra.mxu0 %v5460_v27  ;;  %v5532_v27 = vor.u32 %v5808_v14, %v5531_v35  ;;  %v5795_v35 = vld [vmem:[%s8737_s10 + $0x2bc] sm:$0xf]  ;;  %v5485_v14 = vld [vmem:[%s8737_s10 + $0x2c4] sm:$0xf0] }
 0x3a2   : > { %v4370_v58 = vpop.f32.mrf.mxu3  ;;  %4577 = vmatpush.bf16.xpose.msra.mxu3 %v5556_v13  ;;  %v5327_v13 = vld [vmem:[%s8737_s10 + $0x180] sm:$0xf] }
 0x3a3   : > { %v9468_v36 = vadd.f32 %v4370_v58, %v9326_v3  ;;  %v3302_v3 = vpop.trf.xlu0  ;;  %v5423_v58 = vld [vmem:[%s8737_s10 + $0x240] sm:$0xf]  ;;  %v5328_v34 = vor.u32 %v5757_v11, %v5327_v13  ;;  %v5473_v13 = vld [vmem:[%s8737_s10 + $0x2ac] sm:$0xf0]  ;;  %v5816_v11 = vld [vmem:[%s8737_s10 + $0x364] sm:$0xf] }
 0x3a4   : > { %v4289_v23 = vpop.f32.mrf.mxu0  ;;  %v3332_v9 = vadd.f32 %v3302_v3, %v3175_v22  ;;  %v5509_v22 = vld [vmem:[%s8737_s10 + $0x2f4] sm:$0xf0] }
 0x3a5   : > { %v9475_v18 = vadd.f32 %v4289_v23, %v9324_v44  ;;  %v5424_v23 = vor.u32 %v5781_v57, %v5423_v58  ;;  %v5605_v3 = vld [vmem:[%s8737_s10 + $0x3b4] sm:$0xf0]  ;;  %v5569_v58 = vld [vmem:[%s8737_s10 + $0x36c] sm:$0xf0] }
 0x3a6   : > { %v9478_v62 = vpop.f32.mrf.mxu2  ;;  %v9489_v59 = vpack.c.bf16 %v3332_v9, %v3332_v9  ;;  %v5572_v55 = vor.u32 %v5816_v11, %v5569_v58 }
 0x3a8   : > { %4410 = vmatpush.bf16.xpose.msra.mxu1 %v5352_v41  ;;  %v5801_v41 = vld [vmem:[%s8737_s10 + $0x2ec] sm:$0xf] }
 0x3a9   : > { %4494 = vmatpush.bf16.xpose.msra.mxu0 %v5448_v49  ;;  %v5825_v49 = vld [vmem:[%s8737_s10 + $0x3ac] sm:$0xf] }
 0x3aa   : > { %v4373_v48 = vpop.f32.mrf.mxu3  ;;  %4578 = vmatpush.bf16.xpose.msra.mxu3 %v5544_v10  ;;  %v5512_v10 = vor.u32 %v5801_v41, %v5509_v22  ;;  %v5608_v9 = vor.u32 %v5825_v49, %v5605_v3  ;;  %v5786_v41 = vld [vmem:[%s8737_s10 + $0x274] sm:$0xf]  ;;  %v5449_v22 = vld [vmem:[%s8737_s10 + $0x27c] sm:$0xf0] }
 0x3ab   : > { %v9483_v44 = vadd.f32 %v4373_v48, %v9328_v17  ;;  %v5798_v48 = vld [vmem:[%s8737_s10 + $0x2d4] sm:$0xf]  ;;  %v5545_v3 = vld [vmem:[%s8737_s10 + $0x33c] sm:$0xf0] }
 0x3ac   : > { %v4291_v63 = vpop.f32.mrf.mxu0  ;;  %v5500_v8 = vor.u32 %v5798_v48, %v5497_v53  ;;  %v5810_v49 = vld [vmem:[%s8737_s10 + $0x334] sm:$0xf]  ;;  %v5783_v48 = vld [vmem:[%s8737_s10 + $0x25c] sm:$0xf]  ;;  %v5437_v53 = vld [vmem:[%s8737_s10 + $0x264] sm:$0xf0] }
 0x3ad   : > { %v5596_v63 = vor.u32 %v5822_v51, %v5593_v0  ;;  %v5807_v51 = vld [vmem:[%s8737_s10 + $0x31c] sm:$0xf]  ;;  %v5533_v0 = vld [vmem:[%s8737_s10 + $0x324] sm:$0xf0] }
 0x3ae   : > { %v9491_v38 = vpop.f32.mrf.mxu2 }
 0x3af   : > { %5616 = vmatmul.msk.bf16.gmra.mxu1 %vm2943_vm0, %v9489_v59  ;;  %5620 = vmatmul.msk.bf16.gmra.mxu0 %vm2943_vm0, %v9489_v59 }
 0x3b0   : > { %4411 = vmatpush.bf16.xpose.msra.mxu1 %v5340_v29  ;;  %5624 = vmatmul.msk.bf16.gmra.mxu3 %vm2943_vm0, %v9489_v59  ;;  %v5819_v29 = vld [vmem:[%s8737_s10 + $0x37c] sm:$0xf] }
 0x3b1   : > { %5628 = vmatmul.msk.bf16.gmra.mxu2 %vm2943_vm0, %v9489_v59  ;;  %4495 = vmatpush.bf16.xpose.msra.mxu0 %v5436_v5  ;;  %v5581_v5 = vld [vmem:[%s8737_s10 + $0x384] sm:$0xf0] }
 0x3b2   : > { %v4375_v17 = vpop.f32.mrf.mxu3  ;;  %4579 = vmatpush.bf16.xpose.msra.mxu3 %v5532_v27  ;;  %v5488_v27 = vor.u32 %v5795_v35, %v5485_v14  ;;  %v5425_v35 = vld [vmem:[%s8737_s10 + $0x24c] sm:$0xf0]  ;;  %v5804_v14 = vld [vmem:[%s8737_s10 + $0x304] sm:$0xf] }
 0x3b3   : > { %v5792_v17 = vld [vmem:[%s8737_s10 + $0x2a4] sm:$0xf] }
 0x3b4   : > { %v5476_v57 = vor.u32 %v5792_v17, %v5473_v13  ;;  %v5827_v17 = vld [vmem:[%s8737_s10 + $0x3b8] sm:$0xf0] }
 0x3b6   : > { %v4459_v46 = vpop.f32.mrf.mxu2 }
 0x3b7   : > { %v5557_v46 = vld [vmem:[%s8737_s10 + $0x354] sm:$0xf0] }
 0x3b8   : > { %4412 = vmatpush.bf16.xpose.msra.mxu1 %v5328_v34  ;;  %v5461_v34 = vld [vmem:[%s8737_s10 + $0x294] sm:$0xf0] }
 0x3b9   : > { %4496 = vmatpush.bf16.xpose.msra.mxu0 %v5424_v23  ;;  %v5813_v23 = vld [vmem:[%s8737_s10 + $0x34c] sm:$0xf] }
 0x3ba   : > { %4580 = vmatpush.bf16.xpose.msra.mxu3 %v5520_v20  ;;  %v5464_v20 = vor.u32 %v5789_v16, %v5461_v34  ;;  %v5599_v16 = vld [vmem:[%s8737_s10 + $0x398] sm:$0xf]  ;;  %v5824_v34 = vld [vmem:[%s8737_s10 + $0x3a0] sm:$0xf0] }
 0x3bf   : > { %4413 = vmatmul.bf16.vlgmr.msra.gmra.mxu1 %v8698_v24 }
 0x3c0   : > { %4497 = vmatmul.bf16.vlgmr.msra.gmra.mxu0 %v8698_v24  ;;  %4517 = vmatpush.bf16.xpose.msra.mxu1 %v5512_v10  ;;  %v5452_v10 = vor.u32 %v5786_v41, %v5449_v22 }
 0x3c1   : > { %4581 = vmatmul.bf16.vlgmr.msra.gmra.mxu3 %v8698_v24  ;;  %4601 = vmatpush.bf16.xpose.msra.mxu0 %v5608_v9  ;;  %v5584_v24 = vor.u32 %v5819_v29, %v5581_v5  ;;  %v5548_v9 = vor.u32 %v5810_v49, %v5545_v3  ;;  %v5521_v29 = vld [vmem:[%s8737_s10 + $0x30c] sm:$0xf0]  ;;  %v5821_v3 = vld [vmem:[%s8737_s10 + $0x388] sm:$0xf0] }
 0x3c8   : > { %4518 = vmatpush.bf16.xpose.msra.mxu1 %v5500_v8  ;;  %v5536_v8 = vor.u32 %v5807_v51, %v5533_v0  ;;  %v5575_v0 = vld [vmem:[%s8737_s10 + $0x368] sm:$0xf] }
 0x3c9   : > { %4602 = vmatpush.bf16.xpose.msra.mxu0 %v5596_v63  ;;  %v5780_v63 = vld [vmem:[%s8737_s10 + $0x244] sm:$0xf] }
 0x3ca   : > { %v5428_v5 = vor.u32 %v5780_v63, %v5425_v35 }
 0x3cf   : > { %4418 = vmatmul.bf16.gmra.mxu1 %v8701_v26 }
 0x3d0   : > { %4502 = vmatmul.bf16.gmra.mxu0 %v8701_v26  ;;  %4519 = vmatpush.bf16.xpose.msra.mxu1 %v5488_v27  ;;  %v5524_v27 = vor.u32 %v5804_v14, %v5521_v29 }
 0x3d1   : > { %4586 = vmatmul.bf16.gmra.mxu3 %v8701_v26  ;;  %4603 = vmatpush.bf16.xpose.msra.mxu0 %v5584_v24  ;;  %v5560_v26 = vor.u32 %v5813_v23, %v5557_v46  ;;  %v5611_v24 = vld [vmem:[%s8737_s10 + $0x3b0] sm:$0xf] }
 0x3d2   : > { %v5612_v13 = vor.u32 %v5827_v17, %v5611_v24  ;;  %v5815_v24 = vld [vmem:[%s8737_s10 + $0x358] sm:$0xf0] }
 0x3d8   : > { %4520 = vmatpush.bf16.xpose.msra.mxu1 %v5476_v57 }
 0x3d9   : > { %4604 = vmatpush.bf16.xpose.msra.mxu0 %v5572_v55  ;;  %v4235_v55 = vsel %vm2943_vm0, %v5612_v13, 0 }
 0x3df   : > { %4423 = vmatmul.bf16.gmra.mxu1 %v8703_v54 }
 0x3e0   : > { %4507 = vmatmul.bf16.gmra.mxu0 %v8703_v54  ;;  %4521 = vmatpush.bf16.xpose.msra.mxu1 %v5464_v20 }
 0x3e1   : > { %4591 = vmatmul.bf16.gmra.mxu3 %v8703_v54  ;;  %4605 = vmatpush.bf16.xpose.msra.mxu0 %v5560_v26  ;;  %v5440_v54 = vor.u32 %v5783_v48, %v5437_v53 }
 0x3e8   : > { %4522 = vmatpush.bf16.xpose.msra.mxu1 %v5452_v10 }
 0x3e9   : > { %4606 = vmatpush.bf16.xpose.msra.mxu0 %v5548_v9 }
 0x3ef   : > { %4428 = vmatmul.bf16.gmra.mxu1 %v9030_v56 }
 0x3f0   : > { %4512 = vmatmul.bf16.gmra.mxu0 %v9030_v56  ;;  %4523 = vmatpush.bf16.xpose.msra.mxu1 %v5440_v54  ;;  %v5818_v54 = vld [vmem:[%s8737_s10 + $0x370] sm:$0xf0] }
 0x3f1   : > { %4596 = vmatmul.bf16.gmra.mxu3 %v9030_v56  ;;  %4607 = vmatpush.bf16.xpose.msra.mxu0 %v5536_v8  ;;  %v5576_v8 = vor.u32 %v5818_v54, %v5575_v0 }
 0x3f8   : > { %4524 = vmatpush.bf16.xpose.msra.mxu1 %v5428_v5  ;;  %v4226_v5 = vsel %vm2943_vm0, %v5576_v8, 0 }
 0x3f9   : > { %4608 = vmatpush.bf16.xpose.msra.mxu0 %v5524_v27 }
 0x3fc   : > { %v4302_v11 = vpop.f32.mrf.mxu1  ;;  %v4386_v58 = vpop.f32.mrf.mxu0 }
 0x3fd   : > { %v4303_v56 = vadd.f32 %v4302_v11, %v9341_v31  ;;  %v4387_v57 = vadd.f32 %v4386_v58, %v9367_v40  ;;  %v5600_v31 = vor.u32 %v5824_v34, %v5599_v16  ;;  %v4277_v40 = vadd.f32 %v9373_v2, %v9211_v6 }
 0x3ff   : > { %4657 = vst [vmem:[%s9559_s23] sm:$0xff] %v4303_v56  ;;  %4525 = vmatmul.bf16.vlgmr.msra.gmra.mxu1 %v9081_v50  ;;  %v4232_v22 = vsel %vm2943_vm0, %v5600_v31, 0 }
 0x400   : > { %4658 = vst [vmem:[%s9559_s23 + $0x8] sm:$0xff] %v4387_v57  ;;  %4609 = vmatmul.bf16.vlgmr.msra.gmra.mxu0 %v9081_v50  ;;  %4629 = vmatpush.bf16.xpose.msra.mxu1 %v4235_v55  ;;  %v5587_v50 = vld [vmem:[%s8737_s10 + $0x380] sm:$0xf]  ;;  %v5551_v57 = vld [vmem:[%s8737_s10 + $0x338] sm:$0xf] }
 0x401   : > { %v5588_v6 = vor.u32 %v5821_v3, %v5587_v50  ;;  %v5812_v55 = vld [vmem:[%s8737_s10 + $0x340] sm:$0xf0] }
 0x402   : > { %v5552_v16 = vor.u32 %v5812_v55, %v5551_v57 }
 0x403   : > { %v9567_v23 = vpop.f32.mrf.mxu3  ;;  %v4229_v51 = vsel %vm2943_vm0, %v5588_v6, 0 }
 0x404   : > { %v9569_v46 = vpop.f32.mrf.mxu2  ;;  %v4304_v20 = vpop.f32.mrf.mxu1 }
 0x405   : > { %v4305_v26 = vadd.f32 %v4304_v20, %v4277_v40  ;;  %v4388_v41 = vpop.f32.mrf.mxu0 }
 0x406   : > { %v4389_v49 = vadd.f32 %v4388_v41, %v9396_v60 }
 0x407   : > { %4662 = vst [vmem:[%s9559_s23 + $0x28] sm:$0xff] %v4305_v26  ;;  %v4220_v26 = vsel %vm2943_vm0, %v5552_v16, 0 }
 0x408   : > { %4663 = vst [vmem:[%s9559_s23 + $0x30] sm:$0xff] %v4389_v49  ;;  %4630 = vmatpush.bf16.xpose.msra.mxu1 %v4232_v22  ;;  %v5809_v22 = vld [vmem:[%s8737_s10 + $0x328] sm:$0xf0] }
 0x40b   : > { %v9577_v2 = vpop.f32.mrf.mxu3 }
 0x40c   : > { %v9579_v10 = vpop.f32.mrf.mxu2  ;;  %v4307_v9 = vpop.f32.mrf.mxu1 }
 0x40d   : > { %v4308_v48 = vadd.f32 %v4307_v9, %v9403_v30  ;;  %v4391_v53 = vpop.f32.mrf.mxu0  ;;  %v4282_v30 = vadd.f32 %v9414_v42, %v9287_v25 }
 0x40e   : > { %v4392_v60 = vadd.f32 %v4391_v53, %v9410_v61  ;;  %v5806_v53 = vld [vmem:[%s8737_s10 + $0x310] sm:$0xf0] }
 0x40f   : > { %4667 = vst [vmem:[%s9559_s23 + $0x50] sm:$0xff] %v4308_v48  ;;  %4530 = vmatmul.bf16.gmra.mxu1 %v9083_v47 }
 0x410   : > { %4668 = vst [vmem:[%s9559_s23 + $0x58] sm:$0xff] %v4392_v60  ;;  %4614 = vmatmul.bf16.gmra.mxu0 %v9083_v47  ;;  %4631 = vmatpush.bf16.xpose.msra.mxu1 %v4229_v51  ;;  %v5563_v47 = vld [vmem:[%s8737_s10 + $0x350] sm:$0xf] }
 0x411   : > { %v5564_v25 = vor.u32 %v5815_v24, %v5563_v47 }
 0x413   : > { %v9592_v63 = vpop.f32.mrf.mxu3  ;;  %v4223_v56 = vsel %vm2943_vm0, %v5564_v25, 0 }
 0x414   : > { %v9594_v61 = vpop.f32.mrf.mxu2  ;;  %v4309_v35 = vpop.f32.mrf.mxu1 }
 0x415   : > { %v4310_v14 = vadd.f32 %v4309_v35, %v4282_v30  ;;  %v4393_v29 = vpop.f32.mrf.mxu0 }
 0x416   : > { %v4394_v27 = vadd.f32 %v4393_v29, %v9431_v39 }
 0x417   : > { %4672 = vst [vmem:[%s9559_s23 + $0x78] sm:$0xff] %v4310_v14 }
 0x418   : > { %4673 = vst [vmem:[%s9559_s23 + $0x80] sm:$0xff] %v4394_v27  ;;  %4632 = vmatpush.bf16.xpose.msra.mxu1 %v4226_v5 }
 0x41b   : > { %v9602_v42 = vpop.f32.mrf.mxu3 }
 0x41c   : > { %v9604_v17 = vpop.f32.mrf.mxu2  ;;  %v4312_v13 = vpop.f32.mrf.mxu1 }
 0x41d   : > { %v4313_v11 = vadd.f32 %v4312_v13, %v9438_v52  ;;  %v4396_v58 = vpop.f32.mrf.mxu0  ;;  %v4287_v52 = vadd.f32 %v9449_v33, %v9319_v21 }
 0x41e   : > { %v4397_v39 = vadd.f32 %v4396_v58, %v9445_v45 }
 0x41f   : > { %4677 = vst [vmem:[%s9559_s23 + $0xa0] sm:$0xff] %v4313_v11  ;;  %4535 = vmatmul.bf16.gmra.mxu1 %v9085_v43 }
 0x420   : > { %4678 = vst [vmem:[%s9559_s23 + $0xa8] sm:$0xff] %v4397_v39  ;;  %4619 = vmatmul.bf16.gmra.mxu0 %v9085_v43  ;;  %4633 = vmatpush.bf16.xpose.msra.mxu1 %v4223_v56  ;;  %v5539_v43 = vld [vmem:[%s8737_s10 + $0x320] sm:$0xf] }
 0x421   : > { %v5540_v21 = vor.u32 %v5809_v22, %v5539_v43 }
 0x423   : > { %v9617_v34 = vpop.f32.mrf.mxu3  ;;  %v4217_v9 = vsel %vm2943_vm0, %v5540_v21, 0 }
 0x424   : > { %v9619_v45 = vpop.f32.mrf.mxu2  ;;  %v4314_v31 = vpop.f32.mrf.mxu1 }
 0x425   : > { %v4315_v40 = vadd.f32 %v4314_v31, %v4287_v52  ;;  %v4398_v20 = vpop.f32.mrf.mxu0 }
 0x426   : > { %v4399_v41 = vadd.f32 %v4398_v20, %v9468_v36  ;;  %v5527_v36 = vld [vmem:[%s8737_s10 + $0x308] sm:$0xf] }
 0x427   : > { %4682 = vst [vmem:[%s9559_s23 + $0xc8] sm:$0xff] %v4315_v40  ;;  %v5528_v51 = vor.u32 %v5806_v53, %v5527_v36 }
 0x428   : > { %4683 = vst [vmem:[%s9559_s23 + $0xd0] sm:$0xff] %v4399_v41  ;;  %4634 = vmatpush.bf16.xpose.msra.mxu1 %v4220_v26 }
 0x429   : > { %v4214_v8 = vsel %vm2943_vm0, %v5528_v51, 0 }
 0x42b   : > { %v4482_v33 = vpop.f32.mrf.mxu3 }
 0x42c   : > { %v9627_v49 = vpop.f32.mrf.mxu2  ;;  %v4317_v50 = vpop.f32.mrf.mxu1 }
 0x42d   : > { %v4318_v3 = vadd.f32 %v4317_v50, %v9475_v18  ;;  %v4401_v6 = vpop.f32.mrf.mxu0 }
 0x42e   : > { %v4402_v48 = vadd.f32 %v4401_v6, %v9483_v44 }
 0x42f   : > { %4687 = vst [vmem:[%s9559_s23 + $0xf0] sm:$0x1] %v4318_v3  ;;  %4540 = vmatmul.bf16.gmra.mxu1 %v9153_v28 }
 0x430   : > { %4688 = vst [vmem:[%s9559_s23 + $0xf8] sm:$0x1] %v4402_v48  ;;  %4624 = vmatmul.bf16.gmra.mxu0 %v9153_v28  ;;  %4635 = vmatpush.bf16.xpose.msra.mxu1 %v4217_v9 }
 0x433   : > { %v4485_v60 = vpop.f32.mrf.mxu3 }
 0x434   : > { %v9638_v0 = vpop.f32.mrf.mxu2  ;;  %v4319_v18 = vpop.f32.mrf.mxu1 }
 0x435   : > { %v4403_v54 = vpop.f32.mrf.mxu0 }
 0x438   : > { %4636 = vmatpush.bf16.xpose.msra.mxu1 %v4214_v8 }
 0x43b   : > { %v4487_v44 = vpop.f32.mrf.mxu3 }
 0x43c   : > { %v4571_v30 = vpop.f32.mrf.mxu2  ;;  %v4414_v35 = vpop.f32.mrf.mxu1 }
 0x43d   : > { %v4443_v14 = vadd.f32 %v9383_v12, %v4414_v35  ;;  %v4498_v29 = vpop.f32.mrf.mxu0 }
 0x43f   : > { %v4471_v28 = vadd.f32 %v9567_v23, %v4443_v14  ;;  %5629 = vmatmul.msk.bf16.vlgmr.msra.gmra.mxu1 %vm2943_vm0, %v9377_v15 }
 0x441   : > { %4659 = vst [vmem:[%s9559_s23 + $0x10] sm:$0xff] %v4471_v28 }
 0x444   : > { %v9646_v5 = vpop.f32.mrf.mxu3  ;;  %v4416_v27 = vpop.f32.mrf.mxu1 }
 0x445   : > { %v4445_v47 = vadd.f32 %v9405_v19, %v4416_v27  ;;  %v4500_v24 = vpop.f32.mrf.mxu0 }
 0x447   : > { %v4473_v25 = vadd.f32 %v9577_v2, %v4445_v47 }
 0x449   : > { %4664 = vst [vmem:[%s9559_s23 + $0x38] sm:$0xff] %v4473_v25 }
 0x44c   : > { %v9651_v13 = vpop.f32.mrf.mxu3  ;;  %v4419_v12 = vpop.f32.mrf.mxu1 }
 0x44d   : > { %v4448_v11 = vadd.f32 %v9418_v7, %v4419_v12  ;;  %v4503_v23 = vpop.f32.mrf.mxu0 }
 0x44f   : > { %v4476_v15 = vadd.f32 %v9592_v63, %v4448_v11  ;;  %5630 = vmatmul.msk.bf16.gmra.mxu1 %vm2943_vm0, %v9379_v32 }
 0x451   : > { %4669 = vst [vmem:[%s9559_s23 + $0x60] sm:$0xff] %v4476_v15 }
 0x454   : > { %v9658_v58 = vpop.f32.mrf.mxu3  ;;  %v4421_v19 = vpop.f32.mrf.mxu1 }
 0x455   : > { %v4450_v56 = vadd.f32 %v9440_v37, %v4421_v19  ;;  %v4505_v2 = vpop.f32.mrf.mxu0 }
 0x457   : > { %v4478_v39 = vadd.f32 %v9602_v42, %v4450_v56 }
 0x459   : > { %4674 = vst [vmem:[%s9559_s23 + $0x88] sm:$0xff] %v4478_v39 }
 0x45c   : > { %v9663_v57 = vpop.f32.mrf.mxu3  ;;  %v4424_v7 = vpop.f32.mrf.mxu1 }
 0x45d   : > { %v4453_v55 = vadd.f32 %v9453_v1, %v4424_v7  ;;  %v4508_v63 = vpop.f32.mrf.mxu0 }
 0x45f   : > { %v4481_v32 = vadd.f32 %v9617_v34, %v4453_v55  ;;  %5631 = vmatmul.msk.bf16.gmra.mxu1 %vm2943_vm0, %v9381_v4 }
 0x461   : > { %4679 = vst [vmem:[%s9559_s23 + $0xb0] sm:$0xff] %v4481_v32 }
 0x464   : > { %v9670_v16 = vpop.f32.mrf.mxu3  ;;  %v4426_v37 = vpop.f32.mrf.mxu1 }
 0x465   : > { %v4455_v52 = vadd.f32 %v9478_v62, %v4426_v37  ;;  %v4510_v42 = vpop.f32.mrf.mxu0 }
 0x467   : > { %v4483_v31 = vadd.f32 %v4482_v33, %v4455_v52 }
 0x469   : > { %4684 = vst [vmem:[%s9559_s23 + $0xd8] sm:$0xff] %v4483_v31  ;;  %v4718_v31 = vld [vmem:[%s9559_s23 + $0x10] sm:$0xff] (%p6251_p4) }
 0x46a   : > { %4719 = vst [vmem:[%s9718_s29 + $0x10] sm:$0xff] (%p6251_p4), %v4718_v31 }
 0x46c   : > { %v9674_v40 = vpop.f32.mrf.mxu3  ;;  %v4429_v1 = vpop.f32.mrf.mxu1 }
 0x46d   : > { %v4458_v20 = vadd.f32 %v9491_v38, %v4429_v1  ;;  %v4513_v26 = vpop.f32.mrf.mxu0 }
 0x46f   : > { %v4486_v34 = vadd.f32 %v4485_v60, %v4458_v20  ;;  %5632 = vmatmul.msk.bf16.gmra.mxu1 %vm2943_vm0, %v9489_v59  ;;  %v4724_v20 = vld [vmem:[%s9559_s23 + $0x28] sm:$0xff] (%p6251_p4) }
 0x470   : > { %4725 = vst [vmem:[%s9718_s29 + $0x50] sm:$0xff] (%p6251_p4), %v4724_v20 }
 0x471   : > { %4689 = vst [vmem:[%s9559_s23 + $0x100] sm:$0x1] %v4486_v34  ;;  %v4728_v34 = vld [vmem:[%s9559_s23 + $0x38] sm:$0xff] (%p6251_p4) }
 0x472   : > { %4729 = vst [vmem:[%s9718_s29 + $0x60] sm:$0xff] (%p6251_p4), %v4728_v34 }
 0x474   : > { %v9680_v4 = vpop.f32.mrf.mxu3  ;;  %v4431_v41 = vpop.f32.mrf.mxu1 }
 0x475   : > { %v4515_v62 = vpop.f32.mrf.mxu0 }
 0x476   : > { %v4734_v62 = vld [vmem:[%s9559_s23 + $0x50] sm:$0xff] (%p6251_p4) }
 0x477   : > { %4735 = vst [vmem:[%s9718_s29 + $0xa0] sm:$0xff] (%p6251_p4), %v4734_v62 }
 0x47c   : > { %v4599_v43 = vpop.f32.mrf.mxu3  ;;  %v4526_v22 = vpop.f32.mrf.mxu1 }
 0x47d   : > { %v4527_v21 = vadd.f32 %v4526_v22, %v4498_v29  ;;  %v4610_v33 = vpop.f32.mrf.mxu0  ;;  %v4736_v43 = vld [vmem:[%s9559_s23 + $0x58] sm:$0xff] (%p6251_p4)  ;;  %v4738_v22 = vld [vmem:[%s9559_s23 + $0x60] sm:$0xff] (%p6251_p4) }
 0x47e   : > { %4737 = vst [vmem:[%s9718_s29 + $0xa8] sm:$0xff] (%p6251_p4), %v4736_v43 }
 0x47f   : > { %v4555_v50 = vadd.f32 %v9569_v46, %v4527_v21  ;;  %4739 = vst [vmem:[%s9718_s29 + $0xb0] sm:$0xff] (%p6251_p4), %v4738_v22 }
 0x481   : > { %4660 = vst [vmem:[%s9559_s23 + $0x18] sm:$0xff] %v4555_v50  ;;  %v4744_v50 = vld [vmem:[%s9559_s23 + $0x78] sm:$0xff] (%p6251_p4) }
 0x482   : > { %4745 = vst [vmem:[%s9718_s29 + $0xf0] sm:$0xff] (%p6251_p4), %v4744_v50 }
 0x484   : > { %v4528_v38 = vpop.f32.mrf.mxu1 }
 0x485   : > { %v4529_v3 = vadd.f32 %v4528_v38, %v4500_v24  ;;  %v4612_v6 = vpop.f32.mrf.mxu0  ;;  %v4746_v38 = vld [vmem:[%s9559_s23 + $0x80] sm:$0xff] (%p6251_p4) }
 0x486   : > { %4747 = vst [vmem:[%s9718_s29 + $0xf8] sm:$0xff] (%p6251_p4), %v4746_v38 }
 0x487   : > { %v4557_v9 = vadd.f32 %v9579_v10, %v4529_v3  ;;  %v4748_v3 = vld [vmem:[%s9559_s23 + $0x88] sm:$0xff] (%p6251_p4) }
 0x488   : > { %4749 = vst [vmem:[%s9718_s29 + $0x100] sm:$0xff] (%p6251_p4), %v4748_v3 }
 0x489   : > { %4665 = vst [vmem:[%s9559_s23 + $0x40] sm:$0xff] %v4557_v9 }
 0x48c   : > { %v4531_v59 = vpop.f32.mrf.mxu1 }
 0x48d   : > { %v4532_v48 = vadd.f32 %v4531_v59, %v4503_v23  ;;  %v4615_v36 = vpop.f32.mrf.mxu0  ;;  %v4754_v59 = vld [vmem:[%s9559_s23 + $0xa0] sm:$0xff] (%p6251_p4) }
 0x48e   : > { %v4616_v15 = vadd.f32 %v4615_v36, %v9658_v58  ;;  %v4758_v36 = vld [vmem:[%s9559_s23 + $0xb0] sm:$0xff] (%p6251_p4)  ;;  %4755 = vst [vmem:[%s9718_s29 + $0x140] sm:$0xff] (%p6251_p4), %v4754_v59 }
 0x48f   : > { %v4560_v53 = vadd.f32 %v9594_v61, %v4532_v48  ;;  %v4756_v48 = vld [vmem:[%s9559_s23 + $0xa8] sm:$0xff] (%p6251_p4)  ;;  %4759 = vst [vmem:[%s9718_s29 + $0x150] sm:$0xff] (%p6251_p4), %v4758_v36 }
 0x490   : > { %4757 = vst [vmem:[%s9718_s29 + $0x148] sm:$0xff] (%p6251_p4), %v4756_v48 }
 0x491   : > { %4670 = vst [vmem:[%s9559_s23 + $0x68] sm:$0xff] %v4560_v53 }
 0x494   : > { %v4533_v51 = vpop.f32.mrf.mxu1 }
 0x495   : > { %v4534_v60 = vadd.f32 %v4533_v51, %v4505_v2  ;;  %v4617_v18 = vpop.f32.mrf.mxu0 }
 0x496   : > { %v4618_v56 = vadd.f32 %v4617_v18, %v9663_v57  ;;  %v4714_v57 = vld [vmem:[%s9559_s23] sm:$0xff] (%p6251_p4)  ;;  %v4766_v18 = vld [vmem:[%s9559_s23 + $0xd0] sm:$0xff] (%p6251_p4) }
 0x497   : > { %v4562_v46 = vadd.f32 %v9604_v17, %v4534_v60  ;;  %4715 = vst [vmem:[%s9718_s29] sm:$0xff] (%p6251_p4), %v4714_v57  ;;  %v4764_v60 = vld [vmem:[%s9559_s23 + $0xc8] sm:$0xff] (%p6251_p4) }
 0x498   : > { %v4740_v21 = vld [vmem:[%s9559_s23 + $0x68] sm:$0xff] (%p6251_p4)  ;;  %4765 = vst [vmem:[%s9718_s29 + $0x190] sm:$0xff] (%p6251_p4), %v4764_v60 }
 0x499   : > { %4675 = vst [vmem:[%s9559_s23 + $0x90] sm:$0xff] %v4562_v46  ;;  %v4768_v46 = vld [vmem:[%s9559_s23 + $0xd8] sm:$0xff] (%p6251_p4) }
 0x49a   : > { %4741 = vst [vmem:[%s9718_s29 + $0xb8] sm:$0xff] (%p6251_p4), %v4740_v21 }
 0x49b   : > { %4767 = vst [vmem:[%s9718_s29 + $0x198] sm:$0xff] (%p6251_p4), %v4766_v18 }
 0x49c   : > { %v4536_v54 = vpop.f32.mrf.mxu1  ;;  %4769 = vst [vmem:[%s9718_s29 + $0x1a0] sm:$0xff] (%p6251_p4), %v4768_v46 }
 0x49d   : > { %v4537_v8 = vadd.f32 %v4536_v54, %v4508_v63  ;;  %v4620_v44 = vpop.f32.mrf.mxu0 }
 0x49e   : > { %v4621_v39 = vadd.f32 %v4620_v44, %v9670_v16  ;;  %v4716_v16 = vld [vmem:[%s9559_s23 + $0x8] sm:$0xff] (%p6251_p4)  ;;  %v4774_v44 = vld [vmem:[%s9559_s23 + $0xf0] sm:$0xff] (%p6251_p4) }
 0x49f   : > { %v4565_v10 = vadd.f32 %v9619_v45, %v4537_v8  ;;  %v4611_v45 = vadd.f32 %v4610_v33, %v9646_v5  ;;  %4717 = vst [vmem:[%s9718_s29 + $0x8] sm:$0xff] (%p6251_p4), %v4716_v16 }
 0x4a0   : > { %4775 = vst [vmem:[%s9718_s29 + $0x1e0] sm:$0xff] (%p6251_p4), %v4774_v44 }
 0x4a1   : > { %4680 = vst [vmem:[%s9559_s23 + $0xb8] sm:$0xff] %v4565_v10  ;;  %v4776_v10 = vld [vmem:[%s9559_s23 + $0xf8] sm:$0xff] (%p6251_p4) }
 0x4a2   : > { %4777 = vst [vmem:[%s9718_s29 + $0x1e8] sm:$0xff] (%p6251_p4), %v4776_v10 }
 0x4a4   : > { %v4538_v30 = vpop.f32.mrf.mxu1 }
 0x4a5   : > { %v4539_v35 = vadd.f32 %v4538_v30, %v4510_v42  ;;  %v4622_v14 = vpop.f32.mrf.mxu0  ;;  %v4778_v30 = vld [vmem:[%s9559_s23 + $0x100] sm:$0xff] (%p6251_p4) }
 0x4a6   : > { %4779 = vst [vmem:[%s9718_s29 + $0x1f0] sm:$0xff] (%p6251_p4), %v4778_v30 }
 0x4a7   : > { %v4567_v61 = vadd.f32 %v9627_v49, %v4539_v35  ;;  %v4613_v49 = vadd.f32 %v4612_v6, %v9651_v13  ;;  %v4623_v13 = vadd.f32 %v4622_v14, %v9674_v40  ;;  %v4720_v40 = vld [vmem:[%s9559_s23 + $0x18] sm:$0xff] (%p6251_p4)  ;;  %v4750_v6 = vld [vmem:[%s9559_s23 + $0x90] sm:$0xff] (%p6251_p4) }
 0x4a8   : > { %4721 = vst [vmem:[%s9718_s29 + $0x18] sm:$0xff] (%p6251_p4), %v4720_v40  ;;  %v4760_v53 = vld [vmem:[%s9559_s23 + $0xb8] sm:$0xff] (%p6251_p4) }
 0x4a9   : > { %4685 = vst [vmem:[%s9559_s23 + $0xe0] sm:$0xff] %v4567_v61 }
 0x4aa   : > { %4751 = vst [vmem:[%s9718_s29 + $0x108] sm:$0xff] (%p6251_p4), %v4750_v6 }
 0x4ab   : > { %4761 = vst [vmem:[%s9718_s29 + $0x158] sm:$0xff] (%p6251_p4), %v4760_v53 }
 0x4ac   : > { %v4541_v29 = vpop.f32.mrf.mxu1 }
 0x4ad   : > { %v4542_v28 = vadd.f32 %v4541_v29, %v4513_v26  ;;  %v4625_v27 = vpop.f32.mrf.mxu0  ;;  %v4726_v26 = vld [vmem:[%s9559_s23 + $0x30] sm:$0xff] (%p6251_p4) }
 0x4ae   : > { %v4626_v58 = vadd.f32 %v4625_v27, %v9680_v4  ;;  %v4730_v4 = vld [vmem:[%s9559_s23 + $0x40] sm:$0xff] (%p6251_p4)  ;;  %4727 = vst [vmem:[%s9718_s29 + $0x58] sm:$0xff] (%p6251_p4), %v4726_v26 }
 0x4af   : > { %v4570_v17 = vadd.f32 %v9638_v0, %v4542_v28  ;;  %4731 = vst [vmem:[%s9718_s29 + $0x68] sm:$0xff] (%p6251_p4), %v4730_v4 }
 0x4b0   : > { %v4770_v54 = vld [vmem:[%s9559_s23 + $0xe0] sm:$0xff] (%p6251_p4) }
 0x4b1   : > { %4690 = vst [vmem:[%s9559_s23 + $0x108] sm:$0x1] %v4570_v17 }
 0x4b2   : > { %4771 = vst [vmem:[%s9718_s29 + $0x1a8] sm:$0xff] (%p6251_p4), %v4770_v54 }
 0x4b4   : > { %v4543_v47 = vpop.f32.mrf.mxu1 }
 0x4b5   : > { %v4627_v24 = vpop.f32.mrf.mxu0 }
 0x4b8   : > { %v4780_v35 = vld [vmem:[%s9559_s23 + $0x108] sm:$0xff] (%p6251_p4) }
 0x4b9   : > { %4781 = vst [vmem:[%s9718_s29 + $0x1f8] sm:$0xff] (%p6251_p4), %v4780_v35 }
 0x4bc   : > { %v4638_v25 = vpop.f32.mrf.mxu1 }
 0x4bd   : > { %v4639_v12 = vadd.f32 %v4638_v25, %v4611_v45 }
 0x4bf   : > { %4661 = vst [vmem:[%s9559_s23 + $0x20] sm:$0xff] %v4639_v12 }
 0x4c4   : > { %v4640_v11 = vpop.f32.mrf.mxu1 }
 0x4c5   : > { %v4641_v23 = vadd.f32 %v4640_v11, %v4613_v49 }
 0x4c6   : > { %v4722_v1 = vld [vmem:[%s9559_s23 + $0x20] sm:$0xff] (%p6251_p4) }
 0x4c7   : > { %4666 = vst [vmem:[%s9559_s23 + $0x48] sm:$0xff] %v4641_v23 }
 0x4c8   : > { %4723 = vst [vmem:[%s9718_s29 + $0x20] sm:$0xff] (%p6251_p4), %v4722_v1 }
 0x4cc   : > { %v4643_v19 = vpop.f32.mrf.mxu1 }
 0x4cd   : > { %v4644_v0 = vadd.f32 %v4643_v19, %v4616_v15 }
 0x4ce   : > { %v4732_v41 = vld [vmem:[%s9559_s23 + $0x48] sm:$0xff] (%p6251_p4) }
 0x4cf   : > { %4671 = vst [vmem:[%s9559_s23 + $0x70] sm:$0xff] %v4644_v0 }
 0x4d0   : > { %4733 = vst [vmem:[%s9718_s29 + $0x70] sm:$0xff] (%p6251_p4), %v4732_v41 }
 0x4d4   : > { %v4645_v2 = vpop.f32.mrf.mxu1 }
 0x4d5   : > { %v4646_v5 = vadd.f32 %v4645_v2, %v4618_v56 }
 0x4d6   : > { %v4742_v33 = vld [vmem:[%s9559_s23 + $0x70] sm:$0xff] (%p6251_p4) }
 0x4d7   : > { %4676 = vst [vmem:[%s9559_s23 + $0x98] sm:$0xff] %v4646_v5 }
 0x4d8   : > { %4743 = vst [vmem:[%s9718_s29 + $0xc0] sm:$0xff] (%p6251_p4), %v4742_v33 }
 0x4dc   : > { %v4648_v7 = vpop.f32.mrf.mxu1 }
 0x4dd   : > { %v4649_v55 = vadd.f32 %v4648_v7, %v4621_v39 }
 0x4de   : > { %v4752_v9 = vld [vmem:[%s9559_s23 + $0x98] sm:$0xff] (%p6251_p4) }
 0x4df   : > { %4681 = vst [vmem:[%s9559_s23 + $0xc0] sm:$0xff] %v4649_v55 }
 0x4e0   : > { %4753 = vst [vmem:[%s9718_s29 + $0x110] sm:$0xff] (%p6251_p4), %v4752_v9 }
 0x4e4   : > { %v4650_v63 = vpop.f32.mrf.mxu1 }
 0x4e5   : > { %v4651_v32 = vadd.f32 %v4650_v63, %v4623_v13 }
 0x4e6   : > { %v4762_v51 = vld [vmem:[%s9559_s23 + $0xc0] sm:$0xff] (%p6251_p4) }
 0x4e7   : > { %4686 = vst [vmem:[%s9559_s23 + $0xe8] sm:$0xff] %v4651_v32 }
 0x4e8   : > { %4763 = vst [vmem:[%s9718_s29 + $0x160] sm:$0xff] (%p6251_p4), %v4762_v51 }
 0x4ec   : > { %v4653_v37 = vpop.f32.mrf.mxu1 }
 0x4ed   : > { %v4654_v52 = vadd.f32 %v4653_v37, %v4626_v58 }
 0x4ee   : > { %v4772_v8 = vld [vmem:[%s9559_s23 + $0xe8] sm:$0xff] (%p6251_p4) }
 0x4ef   : > { %4691 = vst [vmem:[%s9559_s23 + $0x110] sm:$0x1] %v4654_v52 }
 0x4f0   : > { %4698 = sbr.rel (!%p6251_p4) target bundleno = 1272 (0x4f8), region = 52  ;;  %4773 = vst [vmem:[%s9718_s29 + $0x1b0] sm:$0xff] (%p6251_p4), %v4772_v8 }
 0x4f4   : > { %v4655_v42 = vpop.f32.mrf.mxu1 }
 0x4f6   : > { %v4782_v14 = vld [vmem:[%s9559_s23 + $0x110] sm:$0xff] }
 0x4f7   : > { %4783 = vst [vmem:[%s9718_s29 + $0x200] sm:$0xff] %v4782_v14 }
 0x4f8 PF: > { %p14_p8 = scmp.ge.s32.totalorder %s6241_s28, 4   ;;  %s9876_s24 = smov %s6169_s25 }
 0x4f9   : > { %s9877_s25 = smov %s6249_s8  ;;  %s9878_s26 = smov %s6241_s28 }
 0x4fa   :  { %16 = sbr.rel (!%p14_p8) target bundleno = 2 (0x2), region = 101 }

</bundles_post_ra>
